<compile_context>
chip_gen: v7x
topology: tpu7x:2x2x1
jax: 0.10.0
libtpu: 0.0.40
codegen_flags: <defaults>
</compile_context>

<pallas_src>
import functools

import jax
import jax.numpy as jnp
from jax import lax
from jax.experimental import pallas as pl
from jax.experimental.pallas import tpu as pltpu


# ----------------------------------------------------------------------------
# helpers
# ----------------------------------------------------------------------------
def _round_up(x, m):
    return (x + m - 1) // m * m


def _pick_row_tile(m, cap=512):
    """Row tile: multiple of 8, <= cap, preferring one that divides ceil8(m)."""
    m8 = _round_up(m, 8)
    if m8 <= cap:
        return m8
    for tm in range(cap, cap // 2 - 1, -8):
        if m8 % tm == 0:
            return tm
    return cap


def _pick_col_tile(n):
    for tn in (1024, 512, 256, 128):
        if n % tn == 0:
            return tn
    return n  # small/odd widths (e.g. final layer K*K*n_out): full width block


def _pick_group(m, c):
    """Group factor g (dividing the row count m) so the BN/activation kernels
    see a lane-dense last dim g*c >= 128 when the channel count is small."""
    if c >= 128:
        return 1
    for g in range(2, 129):
        if m % g == 0 and g * c >= 128:
            return g
    return 1


def _pad_rows(x2d, m_pad):
    m = x2d.shape[0]
    if m_pad == m:
        return x2d
    return jnp.pad(x2d, ((0, m_pad - m), (0, 0)))


def _vmem_limit(bytes_needed):
    return int(min(max(bytes_needed + (2 << 20), 16 << 20), 48 << 20))


# ----------------------------------------------------------------------------
# Pallas kernel 1: tiled lane-dense matmul (bf16 operands, f32 accumulate)
#   (B*H*W, Cin) @ (Cin, K*K*Cout)
# ----------------------------------------------------------------------------
def _matmul_kernel(x_ref, w_ref, o_ref):
    o_ref[...] = jnp.dot(x_ref[...], w_ref[...],
                         preferred_element_type=jnp.float32)


def _cols_matmul(x2d, wmat):
    m, kd = x2d.shape
    n = wmat.shape[1]
    tm = _pick_row_tile(m)
    tn = _pick_col_tile(n)
    m_pad = _round_up(m, tm)
    x2d = _pad_rows(x2d.astype(jnp.bfloat16), m_pad)
    # double-buffered footprint of one (x, w, out) block set
    need = 2 * (tm * kd * 2 + kd * tn * 2 + tm * tn * 4)
    out = pl.pallas_call(
        _matmul_kernel,
        out_shape=jax.ShapeDtypeStruct((m_pad, n), jnp.float32),
        grid=(m_pad // tm, n // tn),
        in_specs=[
            pl.BlockSpec((tm, kd), lambda i, j: (i, 0)),
            pl.BlockSpec((kd, tn), lambda i, j: (0, j)),
        ],
        out_specs=pl.BlockSpec((tm, tn), lambda i, j: (i, j)),
        compiler_params=pltpu.CompilerParams(
            dimension_semantics=("parallel", "parallel"),
            vmem_limit_bytes=_vmem_limit(need)),
    )(x2d, wmat.astype(jnp.bfloat16))
    return out[:m]


# ----------------------------------------------------------------------------
# Pallas kernel 2: BatchNorm statistics pass (global over all rows)
# ----------------------------------------------------------------------------
def _bn_stats_kernel(y_ref, sum_ref, ssq_ref):
    @pl.when(pl.program_id(0) == 0)
    def _():
        sum_ref[...] = jnp.zeros_like(sum_ref)
        ssq_ref[...] = jnp.zeros_like(ssq_ref)

    y = y_ref[...]
    sum_ref[...] += jnp.sum(y, axis=0, keepdims=True)
    ssq_ref[...] += jnp.sum(y * y, axis=0, keepdims=True)


def _bn_stats(y2d_pad, tm):
    m_pad, c = y2d_pad.shape
    need = 2 * (tm * c * 4) + 4 * c * 4
    return pl.pallas_call(
        _bn_stats_kernel,
        out_shape=(jax.ShapeDtypeStruct((1, c), jnp.float32),
                   jax.ShapeDtypeStruct((1, c), jnp.float32)),
        grid=(m_pad // tm,),
        in_specs=[pl.BlockSpec((tm, c), lambda i: (i, 0))],
        out_specs=(pl.BlockSpec((1, c), lambda i: (0, 0)),
                   pl.BlockSpec((1, c), lambda i: (0, 0))),
        compiler_params=pltpu.CompilerParams(
            dimension_semantics=("arbitrary",),
            vmem_limit_bytes=_vmem_limit(need)),
    )(y2d_pad)


# ----------------------------------------------------------------------------
# Pallas kernel 3: fused per-channel scale/shift (BN or bias) + activation
# ----------------------------------------------------------------------------
def _affine_act_kernel(y_ref, sc_ref, sh_ref, o_ref, *, act):
    y = y_ref[...] * sc_ref[...] + sh_ref[...]
    if act == "relu":
        y = jnp.maximum(y, 0.0)
    elif act == "lrelu":
        y = jnp.where(y > 0.0, y, 0.2 * y)
    elif act == "tanh":
        y = jnp.tanh(y)
    o_ref[...] = y.astype(o_ref.dtype)


def _affine_act(y2d_pad, scale, shift, *, act, tm, out_dtype):
    m_pad, c = y2d_pad.shape
    osize = jnp.dtype(out_dtype).itemsize
    need = 2 * (tm * c * 4 + 2 * c * 4 + tm * c * osize)
    kernel = functools.partial(_affine_act_kernel, act=act)
    return pl.pallas_call(
        kernel,
        out_shape=jax.ShapeDtypeStruct((m_pad, c), out_dtype),
        grid=(m_pad // tm,),
        in_specs=[pl.BlockSpec((tm, c), lambda i: (i, 0)),
                  pl.BlockSpec((1, c), lambda i: (0, 0)),
                  pl.BlockSpec((1, c), lambda i: (0, 0))],
        out_specs=pl.BlockSpec((tm, c), lambda i: (i, 0)),
        compiler_params=pltpu.CompilerParams(
            dimension_semantics=("parallel",),
            vmem_limit_bytes=_vmem_limit(need)),
    )(y2d_pad, scale, shift)


# ----------------------------------------------------------------------------
# One ConvTranspose2d (+BN +activation) block
# ----------------------------------------------------------------------------
def deconv_block(x_nhwc, wmat, bias, gamma, beta, *, k, stride, pad,
                 use_bn, act, out_dtype):
    b, hin, win, cin = x_nhwc.shape
    n = wmat.shape[1]
    cout = n // (k * k)
    m = b * hin * win

    # --- lane-dense Pallas matmul (no im2col, no dilation zeros) ------------
    cols = _cols_matmul(x_nhwc.reshape(m, cin), wmat)
    cols = cols.reshape(b, hin, win, k, k, cout)

    # --- col2im overlap-add (cheap XLA glue; overlapping scatter-add) -------
    oh = (hin - 1) * stride - 2 * pad + k
    ow = (win - 1) * stride - 2 * pad + k
    hp = (hin - 1) * stride + k
    wp = (win - 1) * stride + k
    y = jnp.zeros((b, hp, wp, cout), jnp.float32)
    for kh in range(k):
        for kw in range(k):
            y = y.at[:, kh:kh + (hin - 1) * stride + 1:stride,
                        kw:kw + (win - 1) * stride + 1:stride, :].add(
                            cols[:, :, :, kh, kw, :])
    y = y[:, pad:pad + oh, pad:pad + ow, :]

    # --- BatchNorm (training-mode batch stats) + activation, fused ----------
    mo = b * oh * ow
    g = _pick_group(mo, cout)        # group rows so last dim >= 128 lanes
    cg = g * cout
    mg = mo // g
    tm = _pick_row_tile(mg)
    mg_pad = _round_up(mg, tm)
    y2d = _pad_rows(y.reshape(mg, cg), mg_pad)   # zero rows: no effect on sums

    if use_bn:
        s, q = _bn_stats(y2d, tm)
        ch_sum = jnp.sum(s.reshape(g, cout), axis=0)
        ch_ssq = jnp.sum(q.reshape(g, cout), axis=0)
        mean = ch_sum / mo
        var = ch_ssq / mo - mean * mean          # biased var, like BatchNorm2d
        inv = lax.rsqrt(var + 1e-5)
        scale = gamma * inv
        shift = beta - mean * scale
        # conv bias omitted: it cancels exactly in the BN mean subtraction
    else:
        scale = jnp.ones((cout,), jnp.float32)
        shift = bias
    scale_g = jnp.tile(scale, g).reshape(1, cg)
    shift_g = jnp.tile(shift, g).reshape(1, cg)

    out2d = _affine_act(y2d, scale_g, shift_g, act=act, tm=tm,
                        out_dtype=out_dtype)
    return out2d[:mg].reshape(b, oh, ow, cout)


# ----------------------------------------------------------------------------
# Model
# ----------------------------------------------------------------------------
_LAYER_CFG = (
    # (name, kernel, stride, padding)
    ("deconv1", 4, 1, 0),
    ("deconv2", 4, 2, 1),
    ("deconv3", 4, 2, 2),
    ("deconv4", 4, 2, 1),
    ("deconv5", 3, 1, 1),
)


def dcgan28_generator(z, params, *, batchnorm=True, activation="relu"):
    """z: (B, n_in) -> (B, n_out, 28, 28) NCHW, matching the PyTorch module."""
    b = z.shape[0]
    x = z.reshape(b, 1, 1, -1)          # NHWC view of z.view(-1, n_in, 1, 1)
    n_layers = len(_LAYER_CFG)
    for idx, (name, k, s, p) in enumerate(_LAYER_CFG):
        last = idx == n_layers - 1
        wmat, bias, gamma, beta = params[name]
        x = deconv_block(
            x, wmat, bias, gamma, beta, k=k, stride=s, pad=p,
            use_bn=(batchnorm and not last),
            act="tanh" if last else activation,
            # intermediate activations feed the next bf16 MXU matmul
            out_dtype=jnp.float32 if last else jnp.bfloat16)
    return jnp.transpose(x, (0, 3, 1, 2))   # back to NCHW


def _convt_weight_to_matrix(w):
    # w: (Cin, Cout, K, K) PyTorch ConvTranspose2d layout -> (Cin, K*K*Cout),
    # column ordering (kh, kw, co) with co fastest (matches col2im above).
    cin, cout, k, _ = w.shape
    return jnp.transpose(w, (0, 2, 3, 1)).reshape(cin, k * k * cout)


def init_params(key, n_in, n_out, n_filters):
    shapes = {
        "deconv1": (n_in, n_filters * 8, 4),
        "deconv2": (n_filters * 8, n_filters * 4, 4),
        "deconv3": (n_filters * 4, n_filters * 2, 4),
        "deconv4": (n_filters * 2, n_filters, 4),
        "deconv5": (n_filters, n_out, 3),
    }
    params = {}
    for i, (name, (cin, cout, k)) in enumerate(shapes.items()):
        kw, kb = jax.random.split(jax.random.fold_in(key, i))
        bound = 1.0 / float(cin * k * k) ** 0.5
        w = jax.random.uniform(kw, (cin, cout, k, k), jnp.float32, -bound, bound)
        b = jax.random.uniform(kb, (cout,), jnp.float32, -bound, bound)
        gamma = jnp.ones((cout,), jnp.float32)   # BatchNorm2d default init
        beta = jnp.zeros((cout,), jnp.float32)
        # Pre-transpose + bf16-cast the weight matrix once (not per call).
        wmat = _convt_weight_to_matrix(w).astype(jnp.bfloat16)
        params[name] = (wmat, b, gamma, beta)
    return params


if __name__ == "__main__":
    # Small shapes consistent with the module: n_filters scaled down to 16.
    B, N_IN, N_OUT, NF = 2, 16, 3, 16
    key = jax.random.PRNGKey(0)
    kz, kp = jax.random.split(key)
    z = jax.random.normal(kz, (B, N_IN), jnp.float32)
    params = init_params(kp, N_IN, N_OUT, NF)

    fwd = jax.jit(functools.partial(dcgan28_generator, batchnorm=True,
                                    activation="relu"))
    out = jax.block_until_ready(fwd(z, params))

    assert out.shape == (B, N_OUT, 28, 28), out.shape
    assert out.dtype == jnp.float32
    assert bool(jnp.all(jnp.isfinite(out)))
    assert bool(jnp.all(jnp.abs(out) <= 1.0 + 1e-6))  # tanh output range
    print("KERNEL_OK")
</pallas_src>

<mosaic_0001>
module attributes {stable_mosaic.version = 11 : i64} {
  func.func @_matmul_kernel(%arg0: i32, %arg1: i32, %arg2: memref<8x16xbf16, #tpu.memory_space<vmem>>, %arg3: memref<16x1024xbf16, #tpu.memory_space<vmem>>, %arg4: memref<8x1024xf32, #tpu.memory_space<vmem>>) attributes {dimension_semantics = [#tpu.dimension_semantics<parallel>, #tpu.dimension_semantics<parallel>], iteration_bounds = array<i64: 1, 2>, scalar_prefetch = 0 : i64, scratch_operands = 0 : i64, tpu.core_type = #tpu.core_type<tc>, window_params = [{transform_indices = @transform_0, window_bounds = array<i64: 8, 16>}, {transform_indices = @transform_1, window_bounds = array<i64: 16, 1024>}, {transform_indices = @transform_2, window_bounds = array<i64: 8, 1024>}]} {
    %c0 = arith.constant 0 : index
    %c0_0 = arith.constant 0 : index
    %0 = vector.load %arg2[%c0, %c0_0] : memref<8x16xbf16, #tpu.memory_space<vmem>>, vector<8x16xbf16>
    %c0_1 = arith.constant 0 : index
    %c0_2 = arith.constant 0 : index
    %1 = vector.load %arg3[%c0_1, %c0_2] : memref<16x1024xbf16, #tpu.memory_space<vmem>>, vector<16x1024xbf16>
    %cst = arith.constant dense<0.000000e+00> : vector<8x1024xf32>
    %2 = tpu.matmul %0, %1, %cst {dimension_numbers = #tpu.dot_dimension_numbers<[1], [0], [0], [1], [0, 0, 1, 1], [], []>} : vector<8x16xbf16>, vector<16x1024xbf16>, vector<8x1024xf32> -> vector<8x1024xf32>
    %c0_3 = arith.constant 0 : index
    %c0_4 = arith.constant 0 : index
    %3 = vector.load %arg4[%c0_3, %c0_4] : memref<8x1024xf32, #tpu.memory_space<vmem>>, vector<8x1024xf32>
    tpu.vector_store %arg4[%c0_3, %c0_4], %2 {strides = array<i32>} : memref<8x1024xf32, #tpu.memory_space<vmem>>, vector<8x1024xf32>,
    return
  }
  func.func @transform_0(%arg0: i32, %arg1: i32) -> (i32, i32) {
    %c0_i32 = arith.constant 0 : i32
    %c0_i32_0 = arith.constant 0 : i32
    return %arg0, %c0_i32 : i32, i32
  }
  func.func @transform_1(%arg0: i32, %arg1: i32) -> (i32, i32) {
    %c0_i32 = arith.constant 0 : i32
    %c0_i32_0 = arith.constant 0 : i32
    return %c0_i32, %arg1 : i32, i32
  }
  func.func @transform_2(%arg0: i32, %arg1: i32) -> (i32, i32) {
    %c0_i32 = arith.constant 0 : i32
    return %arg0, %arg1 : i32, i32
  }
}

module attributes {stable_mosaic.version = 11 : i64} {
  func.func @_matmul_kernel(%arg0: i32, %arg1: i32, %arg2: memref<32x128xbf16, #tpu.memory_space<vmem>>, %arg3: memref<128x1024xbf16, #tpu.memory_space<vmem>>, %arg4: memref<32x1024xf32, #tpu.memory_space<vmem>>) attributes {dimension_semantics = [#tpu.dimension_semantics<parallel>, #tpu.dimension_semantics<parallel>], iteration_bounds = array<i64: 1, 1>, scalar_prefetch = 0 : i64, scratch_operands = 0 : i64, tpu.core_type = #tpu.core_type<tc>, window_params = [{transform_indices = @transform_0, window_bounds = array<i64: 32, 128>}, {transform_indices = @transform_1, window_bounds = array<i64: 128, 1024>}, {transform_indices = @transform_2, window_bounds = array<i64: 32, 1024>}]} {
    %c0 = arith.constant 0 : index
    %c0_0 = arith.constant 0 : index
    %0 = vector.load %arg2[%c0, %c0_0] : memref<32x128xbf16, #tpu.memory_space<vmem>>, vector<32x128xbf16>
    %c0_1 = arith.constant 0 : index
    %c0_2 = arith.constant 0 : index
    %1 = vector.load %arg3[%c0_1, %c0_2] : memref<128x1024xbf16, #tpu.memory_space<vmem>>, vector<128x1024xbf16>
    %cst = arith.constant dense<0.000000e+00> : vector<32x1024xf32>
    %2 = tpu.matmul %0, %1, %cst {dimension_numbers = #tpu.dot_dimension_numbers<[1], [0], [0], [1], [0, 0, 1, 1], [], []>} : vector<32x128xbf16>, vector<128x1024xbf16>, vector<32x1024xf32> -> vector<32x1024xf32>
    %c0_3 = arith.constant 0 : index
    %c0_4 = arith.constant 0 : index
    %3 = vector.load %arg4[%c0_3, %c0_4] : memref<32x1024xf32, #tpu.memory_space<vmem>>, vector<32x1024xf32>
    tpu.vector_store %arg4[%c0_3, %c0_4], %2 {strides = array<i32>} : memref<32x1024xf32, #tpu.memory_space<vmem>>, vector<32x1024xf32>,
    return
  }
  func.func @transform_0(%arg0: i32, %arg1: i32) -> (i32, i32) {
    %c0_i32 = arith.constant 0 : i32
    %c0_i32_0 = arith.constant 0 : i32
    return %arg0, %c0_i32 : i32, i32
  }
  func.func @transform_1(%arg0: i32, %arg1: i32) -> (i32, i32) {
    %c0_i32 = arith.constant 0 : i32
    %c0_i32_0 = arith.constant 0 : i32
    return %c0_i32, %arg1 : i32, i32
  }
  func.func @transform_2(%arg0: i32, %arg1: i32) -> (i32, i32) {
    %c0_i32 = arith.constant 0 : i32
    return %arg0, %arg1 : i32, i32
  }
}

module attributes {stable_mosaic.version = 11 : i64} {
  func.func @_affine_act_kernel(%arg0: i32, %arg1: memref<32x128xf32, #tpu.memory_space<vmem>>, %arg2: memref<1x128xf32, #tpu.memory_space<vmem>>, %arg3: memref<1x128xf32, #tpu.memory_space<vmem>>, %arg4: memref<32x128xbf16, #tpu.memory_space<vmem>>) attributes {dimension_semantics = [#tpu.dimension_semantics<parallel>], iteration_bounds = array<i64: 1>, scalar_prefetch = 0 : i64, scratch_operands = 0 : i64, tpu.core_type = #tpu.core_type<tc>, window_params = [{transform_indices = @transform_0, window_bounds = array<i64: 32, 128>}, {pipeline_mode = #tpu.pipeline_mode<synchronous>, transform_indices = @transform_1, window_bounds = array<i64: 1, 128>}, {pipeline_mode = #tpu.pipeline_mode<synchronous>, transform_indices = @transform_2, window_bounds = array<i64: 1, 128>}, {transform_indices = @transform_3, window_bounds = array<i64: 32, 128>}]} {
    %c0 = arith.constant 0 : index
    %c0_0 = arith.constant 0 : index
    %0 = vector.load %arg1[%c0, %c0_0] : memref<32x128xf32, #tpu.memory_space<vmem>>, vector<32x128xf32>
    %c0_1 = arith.constant 0 : index
    %c0_2 = arith.constant 0 : index
    %1 = vector.load %arg2[%c0_1, %c0_2] : memref<1x128xf32, #tpu.memory_space<vmem>>, vector<1x128xf32>
    %2 = vector.broadcast %1 : vector<1x128xf32> to vector<32x128xf32>
    %3 = arith.mulf %0, %2 : vector<32x128xf32>
    %c0_3 = arith.constant 0 : index
    %c0_4 = arith.constant 0 : index
    %4 = vector.load %arg3[%c0_3, %c0_4] : memref<1x128xf32, #tpu.memory_space<vmem>>, vector<1x128xf32>
    %5 = vector.broadcast %4 : vector<1x128xf32> to vector<32x128xf32>
    %6 = arith.addf %3, %5 : vector<32x128xf32>
    %cst = arith.constant 0.000000e+00 : f32
    %7 = vector.broadcast %cst : f32 to vector<32x128xf32>
    %8 = arith.maximumf %6, %7 : vector<32x128xf32>
    %9 = arith.truncf %8 : vector<32x128xf32> to vector<32x128xbf16>
    %c0_5 = arith.constant 0 : index
    %c0_6 = arith.constant 0 : index
    %10 = vector.load %arg4[%c0_5, %c0_6] : memref<32x128xbf16, #tpu.memory_space<vmem>>, vector<32x128xbf16>
    tpu.vector_store %arg4[%c0_5, %c0_6], %9 {strides = array<i32>} : memref<32x128xbf16, #tpu.memory_space<vmem>>, vector<32x128xbf16>,
    return
  }
  func.func @transform_0(%arg0: i32) -> (i32, i32) {
    %c0_i32 = arith.constant 0 : i32
    %c0_i32_0 = arith.constant 0 : i32
    return %arg0, %c0_i32 : i32, i32
  }
  func.func @transform_1(%arg0: i32) -> (i32, i32) {
    %c0_i32 = arith.constant 0 : i32
    %c0_i32_0 = arith.constant 0 : i32
    %c0_i32_1 = arith.constant 0 : i32
    return %c0_i32, %c0_i32_0 : i32, i32
  }
  func.func @transform_2(%arg0: i32) -> (i32, i32) {
    %c0_i32 = arith.constant 0 : i32
    %c0_i32_0 = arith.constant 0 : i32
    %c0_i32_1 = arith.constant 0 : i32
    return %c0_i32, %c0_i32_0 : i32, i32
  }
  func.func @transform_3(%arg0: i32) -> (i32, i32) {
    %c0_i32 = arith.constant 0 : i32
    %c0_i32_0 = arith.constant 0 : i32
    return %arg0, %c0_i32 : i32, i32
  }
}

module attributes {stable_mosaic.version = 11 : i64} {
  func.func @_bn_stats_kernel(%arg0: i32, %arg1: memref<32x128xf32, #tpu.memory_space<vmem>>, %arg2: memref<1x128xf32, #tpu.memory_space<vmem>>, %arg3: memref<1x128xf32, #tpu.memory_space<vmem>>) attributes {dimension_semantics = [#tpu.dimension_semantics<arbitrary>], iteration_bounds = array<i64: 1>, scalar_prefetch = 0 : i64, scratch_operands = 0 : i64, tpu.core_type = #tpu.core_type<tc>, window_params = [{transform_indices = @transform_0, window_bounds = array<i64: 32, 128>}, {pipeline_mode = #tpu.pipeline_mode<synchronous>, transform_indices = @transform_1, window_bounds = array<i64: 1, 128>}, {pipeline_mode = #tpu.pipeline_mode<synchronous>, transform_indices = @transform_2, window_bounds = array<i64: 1, 128>}]} {
    %c0_i32 = arith.constant 0 : i32
    %0 = arith.cmpi eq, %arg0, %c0_i32 : i32
    %1 = arith.extui %0 : i1 to i32
    %c0_i32_0 = arith.constant 0 : i32
    %2 = arith.cmpi ne, %1, %c0_i32_0 : i32
    scf.if %2 {
      %cst_11 = arith.constant 0.000000e+00 : f32
      %15 = vector.broadcast %cst_11 : f32 to vector<1x128xf32>
      %c0_12 = arith.constant 0 : index
      %c0_13 = arith.constant 0 : index
      %16 = vector.load %arg2[%c0_12, %c0_13] : memref<1x128xf32, #tpu.memory_space<vmem>>, vector<1x128xf32>
      tpu.vector_store %arg2[%c0_12, %c0_13], %15 {strides = array<i32>} : memref<1x128xf32, #tpu.memory_space<vmem>>, vector<1x128xf32>,
      %cst_14 = arith.constant 0.000000e+00 : f32
      %17 = vector.broadcast %cst_14 : f32 to vector<1x128xf32>
      %c0_15 = arith.constant 0 : index
      %c0_16 = arith.constant 0 : index
      %18 = vector.load %arg3[%c0_15, %c0_16] : memref<1x128xf32, #tpu.memory_space<vmem>>, vector<1x128xf32>
      tpu.vector_store %arg3[%c0_15, %c0_16], %17 {strides = array<i32>} : memref<1x128xf32, #tpu.memory_space<vmem>>, vector<1x128xf32>,
    } else {
    }
    %c0 = arith.constant 0 : index
    %c0_1 = arith.constant 0 : index
    %3 = vector.load %arg1[%c0, %c0_1] : memref<32x128xf32, #tpu.memory_space<vmem>>, vector<32x128xf32>
    %c0_2 = arith.constant 0 : index
    %c0_3 = arith.constant 0 : index
    %4 = vector.load %arg2[%c0_2, %c0_3] : memref<1x128xf32, #tpu.memory_space<vmem>>, vector<1x128xf32>
    %cst = arith.constant dense<0.000000e+00> : vector<128xf32>
    %5 = vector.multi_reduction <add>, %3, %cst [0] : vector<32x128xf32> to vector<128xf32>
    %6 = vector.shape_cast %5 : vector<128xf32> to vector<1x128xf32>
    %7 = arith.addf %4, %6 : vector<1x128xf32>
    %c0_4 = arith.constant 0 : index
    %c0_5 = arith.constant 0 : index
    %8 = vector.load %arg2[%c0_4, %c0_5] : memref<1x128xf32, #tpu.memory_space<vmem>>, vector<1x128xf32>
    tpu.vector_store %arg2[%c0_4, %c0_5], %7 {strides = array<i32>} : memref<1x128xf32, #tpu.memory_space<vmem>>, vector<1x128xf32>,
    %c0_6 = arith.constant 0 : index
    %c0_7 = arith.constant 0 : index
    %9 = vector.load %arg3[%c0_6, %c0_7] : memref<1x128xf32, #tpu.memory_space<vmem>>, vector<1x128xf32>
    %10 = arith.mulf %3, %3 : vector<32x128xf32>
    %cst_8 = arith.constant dense<0.000000e+00> : vector<128xf32>
    %11 = vector.multi_reduction <add>, %10, %cst_8 [0] : vector<32x128xf32> to vector<128xf32>
    %12 = vector.shape_cast %11 : vector<128xf32> to vector<1x128xf32>
    %13 = arith.addf %9, %12 : vector<1x128xf32>
    %c0_9 = arith.constant 0 : index
    %c0_10 = arith.constant 0 : index
    %14 = vector.load %arg3[%c0_9, %c0_10] : memref<1x128xf32, #tpu.memory_space<vmem>>, vector<1x128xf32>
    tpu.vector_store %arg3[%c0_9, %c0_10], %13 {strides = array<i32>} : memref<1x128xf32, #tpu.memory_space<vmem>>, vector<1x128xf32>,
    return
  }
  func.func @transform_0(%arg0: i32) -> (i32, i32) {
    %c0_i32 = arith.constant 0 : i32
    %c0_i32_0 = arith.constant 0 : i32
    return %arg0, %c0_i32 : i32, i32
  }
  func.func @transform_1(%arg0: i32) -> (i32, i32) {
    %c0_i32 = arith.constant 0 : i32
    %c0_i32_0 = arith.constant 0 : i32
    %c0_i32_1 = arith.constant 0 : i32
    return %c0_i32, %c0_i32_0 : i32, i32
  }
  func.func @transform_2(%arg0: i32) -> (i32, i32) {
    %c0_i32 = arith.constant 0 : i32
    %c0_i32_0 = arith.constant 0 : i32
    %c0_i32_1 = arith.constant 0 : i32
    return %c0_i32, %c0_i32_0 : i32, i32
  }
}

module attributes {stable_mosaic.version = 11 : i64} {
  func.func @_bn_stats_kernel(%arg0: i32, %arg1: memref<64x128xf32, #tpu.memory_space<vmem>>, %arg2: memref<1x128xf32, #tpu.memory_space<vmem>>, %arg3: memref<1x128xf32, #tpu.memory_space<vmem>>) attributes {dimension_semantics = [#tpu.dimension_semantics<arbitrary>], iteration_bounds = array<i64: 1>, scalar_prefetch = 0 : i64, scratch_operands = 0 : i64, tpu.core_type = #tpu.core_type<tc>, window_params = [{transform_indices = @transform_0, window_bounds = array<i64: 64, 128>}, {pipeline_mode = #tpu.pipeline_mode<synchronous>, transform_indices = @transform_1, window_bounds = array<i64: 1, 128>}, {pipeline_mode = #tpu.pipeline_mode<synchronous>, transform_indices = @transform_2, window_bounds = array<i64: 1, 128>}]} {
    %c0_i32 = arith.constant 0 : i32
    %0 = arith.cmpi eq, %arg0, %c0_i32 : i32
    %1 = arith.extui %0 : i1 to i32
    %c0_i32_0 = arith.constant 0 : i32
    %2 = arith.cmpi ne, %1, %c0_i32_0 : i32
    scf.if %2 {
      %cst_11 = arith.constant 0.000000e+00 : f32
      %15 = vector.broadcast %cst_11 : f32 to vector<1x128xf32>
      %c0_12 = arith.constant 0 : index
      %c0_13 = arith.constant 0 : index
      %16 = vector.load %arg2[%c0_12, %c0_13] : memref<1x128xf32, #tpu.memory_space<vmem>>, vector<1x128xf32>
      tpu.vector_store %arg2[%c0_12, %c0_13], %15 {strides = array<i32>} : memref<1x128xf32, #tpu.memory_space<vmem>>, vector<1x128xf32>,
      %cst_14 = arith.constant 0.000000e+00 : f32
      %17 = vector.broadcast %cst_14 : f32 to vector<1x128xf32>
      %c0_15 = arith.constant 0 : index
      %c0_16 = arith.constant 0 : index
      %18 = vector.load %arg3[%c0_15, %c0_16] : memref<1x128xf32, #tpu.memory_space<vmem>>, vector<1x128xf32>
      tpu.vector_store %arg3[%c0_15, %c0_16], %17 {strides = array<i32>} : memref<1x128xf32, #tpu.memory_space<vmem>>, vector<1x128xf32>,
    } else {
    }
    %c0 = arith.constant 0 : index
    %c0_1 = arith.constant 0 : index
    %3 = vector.load %arg1[%c0, %c0_1] : memref<64x128xf32, #tpu.memory_space<vmem>>, vector<64x128xf32>
    %c0_2 = arith.constant 0 : index
    %c0_3 = arith.constant 0 : index
    %4 = vector.load %arg2[%c0_2, %c0_3] : memref<1x128xf32, #tpu.memory_space<vmem>>, vector<1x128xf32>
    %cst = arith.constant dense<0.000000e+00> : vector<128xf32>
    %5 = vector.multi_reduction <add>, %3, %cst [0] : vector<64x128xf32> to vector<128xf32>
    %6 = vector.shape_cast %5 : vector<128xf32> to vector<1x128xf32>
    %7 = arith.addf %4, %6 : vector<1x128xf32>
    %c0_4 = arith.constant 0 : index
    %c0_5 = arith.constant 0 : index
    %8 = vector.load %arg2[%c0_4, %c0_5] : memref<1x128xf32, #tpu.memory_space<vmem>>, vector<1x128xf32>
    tpu.vector_store %arg2[%c0_4, %c0_5], %7 {strides = array<i32>} : memref<1x128xf32, #tpu.memory_space<vmem>>, vector<1x128xf32>,
    %c0_6 = arith.constant 0 : index
    %c0_7 = arith.constant 0 : index
    %9 = vector.load %arg3[%c0_6, %c0_7] : memref<1x128xf32, #tpu.memory_space<vmem>>, vector<1x128xf32>
    %10 = arith.mulf %3, %3 : vector<64x128xf32>
    %cst_8 = arith.constant dense<0.000000e+00> : vector<128xf32>
    %11 = vector.multi_reduction <add>, %10, %cst_8 [0] : vector<64x128xf32> to vector<128xf32>
    %12 = vector.shape_cast %11 : vector<128xf32> to vector<1x128xf32>
    %13 = arith.addf %9, %12 : vector<1x128xf32>
    %c0_9 = arith.constant 0 : index
    %c0_10 = arith.constant 0 : index
    %14 = vector.load %arg3[%c0_9, %c0_10] : memref<1x128xf32, #tpu.memory_space<vmem>>, vector<1x128xf32>
    tpu.vector_store %arg3[%c0_9, %c0_10], %13 {strides = array<i32>} : memref<1x128xf32, #tpu.memory_space<vmem>>, vector<1x128xf32>,
    return
  }
  func.func @transform_0(%arg0: i32) -> (i32, i32) {
    %c0_i32 = arith.constant 0 : i32
    %c0_i32_0 = arith.constant 0 : i32
    return %arg0, %c0_i32 : i32, i32
  }
  func.func @transform_1(%arg0: i32) -> (i32, i32) {
    %c0_i32 = arith.constant 0 : i32
    %c0_i32_0 = arith.constant 0 : i32
    %c0_i32_1 = arith.constant 0 : i32
    return %c0_i32, %c0_i32_0 : i32, i32
  }
  func.func @transform_2(%arg0: i32) -> (i32, i32) {
    %c0_i32 = arith.constant 0 : i32
    %c0_i32_0 = arith.constant 0 : i32
    %c0_i32_1 = arith.constant 0 : i32
    return %c0_i32, %c0_i32_0 : i32, i32
  }
}

module attributes {stable_mosaic.version = 11 : i64} {
  func.func @_matmul_kernel(%arg0: i32, %arg1: i32, %arg2: memref<128x64xbf16, #tpu.memory_space<vmem>>, %arg3: memref<64x512xbf16, #tpu.memory_space<vmem>>, %arg4: memref<128x512xf32, #tpu.memory_space<vmem>>) attributes {dimension_semantics = [#tpu.dimension_semantics<parallel>, #tpu.dimension_semantics<parallel>], iteration_bounds = array<i64: 1, 1>, scalar_prefetch = 0 : i64, scratch_operands = 0 : i64, tpu.core_type = #tpu.core_type<tc>, window_params = [{transform_indices = @transform_0, window_bounds = array<i64: 128, 64>}, {transform_indices = @transform_1, window_bounds = array<i64: 64, 512>}, {transform_indices = @transform_2, window_bounds = array<i64: 128, 512>}]} {
    %c0 = arith.constant 0 : index
    %c0_0 = arith.constant 0 : index
    %0 = vector.load %arg2[%c0, %c0_0] : memref<128x64xbf16, #tpu.memory_space<vmem>>, vector<128x64xbf16>
    %c0_1 = arith.constant 0 : index
    %c0_2 = arith.constant 0 : index
    %1 = vector.load %arg3[%c0_1, %c0_2] : memref<64x512xbf16, #tpu.memory_space<vmem>>, vector<64x512xbf16>
    %cst = arith.constant dense<0.000000e+00> : vector<128x512xf32>
    %2 = tpu.matmul %0, %1, %cst {dimension_numbers = #tpu.dot_dimension_numbers<[1], [0], [0], [1], [0, 0, 1, 1], [], []>} : vector<128x64xbf16>, vector<64x512xbf16>, vector<128x512xf32> -> vector<128x512xf32>
    %c0_3 = arith.constant 0 : index
    %c0_4 = arith.constant 0 : index
    %3 = vector.load %arg4[%c0_3, %c0_4] : memref<128x512xf32, #tpu.memory_space<vmem>>, vector<128x512xf32>
    tpu.vector_store %arg4[%c0_3, %c0_4], %2 {strides = array<i32>} : memref<128x512xf32, #tpu.memory_space<vmem>>, vector<128x512xf32>,
    return
  }
  func.func @transform_0(%arg0: i32, %arg1: i32) -> (i32, i32) {
    %c0_i32 = arith.constant 0 : i32
    %c0_i32_0 = arith.constant 0 : i32
    return %arg0, %c0_i32 : i32, i32
  }
  func.func @transform_1(%arg0: i32, %arg1: i32) -> (i32, i32) {
    %c0_i32 = arith.constant 0 : i32
    %c0_i32_0 = arith.constant 0 : i32
    return %c0_i32, %arg1 : i32, i32
  }
  func.func @transform_2(%arg0: i32, %arg1: i32) -> (i32, i32) {
    %c0_i32 = arith.constant 0 : i32
    return %arg0, %arg1 : i32, i32
  }
}

module attributes {stable_mosaic.version = 11 : i64} {
  func.func @_affine_act_kernel(%arg0: i32, %arg1: memref<64x128xf32, #tpu.memory_space<vmem>>, %arg2: memref<1x128xf32, #tpu.memory_space<vmem>>, %arg3: memref<1x128xf32, #tpu.memory_space<vmem>>, %arg4: memref<64x128xbf16, #tpu.memory_space<vmem>>) attributes {dimension_semantics = [#tpu.dimension_semantics<parallel>], iteration_bounds = array<i64: 1>, scalar_prefetch = 0 : i64, scratch_operands = 0 : i64, tpu.core_type = #tpu.core_type<tc>, window_params = [{transform_indices = @transform_0, window_bounds = array<i64: 64, 128>}, {pipeline_mode = #tpu.pipeline_mode<synchronous>, transform_indices = @transform_1, window_bounds = array<i64: 1, 128>}, {pipeline_mode = #tpu.pipeline_mode<synchronous>, transform_indices = @transform_2, window_bounds = array<i64: 1, 128>}, {transform_indices = @transform_3, window_bounds = array<i64: 64, 128>}]} {
    %c0 = arith.constant 0 : index
    %c0_0 = arith.constant 0 : index
    %0 = vector.load %arg1[%c0, %c0_0] : memref<64x128xf32, #tpu.memory_space<vmem>>, vector<64x128xf32>
    %c0_1 = arith.constant 0 : index
    %c0_2 = arith.constant 0 : index
    %1 = vector.load %arg2[%c0_1, %c0_2] : memref<1x128xf32, #tpu.memory_space<vmem>>, vector<1x128xf32>
    %2 = vector.broadcast %1 : vector<1x128xf32> to vector<64x128xf32>
    %3 = arith.mulf %0, %2 : vector<64x128xf32>
    %c0_3 = arith.constant 0 : index
    %c0_4 = arith.constant 0 : index
    %4 = vector.load %arg3[%c0_3, %c0_4] : memref<1x128xf32, #tpu.memory_space<vmem>>, vector<1x128xf32>
    %5 = vector.broadcast %4 : vector<1x128xf32> to vector<64x128xf32>
    %6 = arith.addf %3, %5 : vector<64x128xf32>
    %cst = arith.constant 0.000000e+00 : f32
    %7 = vector.broadcast %cst : f32 to vector<64x128xf32>
    %8 = arith.maximumf %6, %7 : vector<64x128xf32>
    %9 = arith.truncf %8 : vector<64x128xf32> to vector<64x128xbf16>
    %c0_5 = arith.constant 0 : index
    %c0_6 = arith.constant 0 : index
    %10 = vector.load %arg4[%c0_5, %c0_6] : memref<64x128xbf16, #tpu.memory_space<vmem>>, vector<64x128xbf16>
    tpu.vector_store %arg4[%c0_5, %c0_6], %9 {strides = array<i32>} : memref<64x128xbf16, #tpu.memory_space<vmem>>, vector<64x128xbf16>,
    return
  }
  func.func @transform_0(%arg0: i32) -> (i32, i32) {
    %c0_i32 = arith.constant 0 : i32
    %c0_i32_0 = arith.constant 0 : i32
    return %arg0, %c0_i32 : i32, i32
  }
  func.func @transform_1(%arg0: i32) -> (i32, i32) {
    %c0_i32 = arith.constant 0 : i32
    %c0_i32_0 = arith.constant 0 : i32
    %c0_i32_1 = arith.constant 0 : i32
    return %c0_i32, %c0_i32_0 : i32, i32
  }
  func.func @transform_2(%arg0: i32) -> (i32, i32) {
    %c0_i32 = arith.constant 0 : i32
    %c0_i32_0 = arith.constant 0 : i32
    %c0_i32_1 = arith.constant 0 : i32
    return %c0_i32, %c0_i32_0 : i32, i32
  }
  func.func @transform_3(%arg0: i32) -> (i32, i32) {
    %c0_i32 = arith.constant 0 : i32
    %c0_i32_0 = arith.constant 0 : i32
    return %arg0, %c0_i32 : i32, i32
  }
}

module attributes {stable_mosaic.version = 11 : i64} {
  func.func @_bn_stats_kernel(%arg0: i32, %arg1: memref<104x128xf32, #tpu.memory_space<vmem>>, %arg2: memref<1x128xf32, #tpu.memory_space<vmem>>, %arg3: memref<1x128xf32, #tpu.memory_space<vmem>>) attributes {dimension_semantics = [#tpu.dimension_semantics<arbitrary>], iteration_bounds = array<i64: 1>, scalar_prefetch = 0 : i64, scratch_operands = 0 : i64, tpu.core_type = #tpu.core_type<tc>, window_params = [{transform_indices = @transform_0, window_bounds = array<i64: 104, 128>}, {pipeline_mode = #tpu.pipeline_mode<synchronous>, transform_indices = @transform_1, window_bounds = array<i64: 1, 128>}, {pipeline_mode = #tpu.pipeline_mode<synchronous>, transform_indices = @transform_2, window_bounds = array<i64: 1, 128>}]} {
    %c0_i32 = arith.constant 0 : i32
    %0 = arith.cmpi eq, %arg0, %c0_i32 : i32
    %1 = arith.extui %0 : i1 to i32
    %c0_i32_0 = arith.constant 0 : i32
    %2 = arith.cmpi ne, %1, %c0_i32_0 : i32
    scf.if %2 {
      %cst_11 = arith.constant 0.000000e+00 : f32
      %15 = vector.broadcast %cst_11 : f32 to vector<1x128xf32>
      %c0_12 = arith.constant 0 : index
      %c0_13 = arith.constant 0 : index
      %16 = vector.load %arg2[%c0_12, %c0_13] : memref<1x128xf32, #tpu.memory_space<vmem>>, vector<1x128xf32>
      tpu.vector_store %arg2[%c0_12, %c0_13], %15 {strides = array<i32>} : memref<1x128xf32, #tpu.memory_space<vmem>>, vector<1x128xf32>,
      %cst_14 = arith.constant 0.000000e+00 : f32
      %17 = vector.broadcast %cst_14 : f32 to vector<1x128xf32>
      %c0_15 = arith.constant 0 : index
      %c0_16 = arith.constant 0 : index
      %18 = vector.load %arg3[%c0_15, %c0_16] : memref<1x128xf32, #tpu.memory_space<vmem>>, vector<1x128xf32>
      tpu.vector_store %arg3[%c0_15, %c0_16], %17 {strides = array<i32>} : memref<1x128xf32, #tpu.memory_space<vmem>>, vector<1x128xf32>,
    } else {
    }
    %c0 = arith.constant 0 : index
    %c0_1 = arith.constant 0 : index
    %3 = vector.load %arg1[%c0, %c0_1] : memref<104x128xf32, #tpu.memory_space<vmem>>, vector<104x128xf32>
    %c0_2 = arith.constant 0 : index
    %c0_3 = arith.constant 0 : index
    %4 = vector.load %arg2[%c0_2, %c0_3] : memref<1x128xf32, #tpu.memory_space<vmem>>, vector<1x128xf32>
    %cst = arith.constant dense<0.000000e+00> : vector<128xf32>
    %5 = vector.multi_reduction <add>, %3, %cst [0] : vector<104x128xf32> to vector<128xf32>
    %6 = vector.shape_cast %5 : vector<128xf32> to vector<1x128xf32>
    %7 = arith.addf %4, %6 : vector<1x128xf32>
    %c0_4 = arith.constant 0 : index
    %c0_5 = arith.constant 0 : index
    %8 = vector.load %arg2[%c0_4, %c0_5] : memref<1x128xf32, #tpu.memory_space<vmem>>, vector<1x128xf32>
    tpu.vector_store %arg2[%c0_4, %c0_5], %7 {strides = array<i32>} : memref<1x128xf32, #tpu.memory_space<vmem>>, vector<1x128xf32>,
    %c0_6 = arith.constant 0 : index
    %c0_7 = arith.constant 0 : index
    %9 = vector.load %arg3[%c0_6, %c0_7] : memref<1x128xf32, #tpu.memory_space<vmem>>, vector<1x128xf32>
    %10 = arith.mulf %3, %3 : vector<104x128xf32>
    %cst_8 = arith.constant dense<0.000000e+00> : vector<128xf32>
    %11 = vector.multi_reduction <add>, %10, %cst_8 [0] : vector<104x128xf32> to vector<128xf32>
    %12 = vector.shape_cast %11 : vector<128xf32> to vector<1x128xf32>
    %13 = arith.addf %9, %12 : vector<1x128xf32>
    %c0_9 = arith.constant 0 : index
    %c0_10 = arith.constant 0 : index
    %14 = vector.load %arg3[%c0_9, %c0_10] : memref<1x128xf32, #tpu.memory_space<vmem>>, vector<1x128xf32>
    tpu.vector_store %arg3[%c0_9, %c0_10], %13 {strides = array<i32>} : memref<1x128xf32, #tpu.memory_space<vmem>>, vector<1x128xf32>,
    return
  }
  func.func @transform_0(%arg0: i32) -> (i32, i32) {
    %c0_i32 = arith.constant 0 : i32
    %c0_i32_0 = arith.constant 0 : i32
    return %arg0, %c0_i32 : i32, i32
  }
  func.func @transform_1(%arg0: i32) -> (i32, i32) {
    %c0_i32 = arith.constant 0 : i32
    %c0_i32_0 = arith.constant 0 : i32
    %c0_i32_1 = arith.constant 0 : i32
    return %c0_i32, %c0_i32_0 : i32, i32
  }
  func.func @transform_2(%arg0: i32) -> (i32, i32) {
    %c0_i32 = arith.constant 0 : i32
    %c0_i32_0 = arith.constant 0 : i32
    %c0_i32_1 = arith.constant 0 : i32
    return %c0_i32, %c0_i32_0 : i32, i32
  }
}

module attributes {stable_mosaic.version = 11 : i64} {
  func.func @_affine_act_kernel(%arg0: i32, %arg1: memref<104x128xf32, #tpu.memory_space<vmem>>, %arg2: memref<1x128xf32, #tpu.memory_space<vmem>>, %arg3: memref<1x128xf32, #tpu.memory_space<vmem>>, %arg4: memref<104x128xbf16, #tpu.memory_space<vmem>>) attributes {dimension_semantics = [#tpu.dimension_semantics<parallel>], iteration_bounds = array<i64: 1>, scalar_prefetch = 0 : i64, scratch_operands = 0 : i64, tpu.core_type = #tpu.core_type<tc>, window_params = [{transform_indices = @transform_0, window_bounds = array<i64: 104, 128>}, {pipeline_mode = #tpu.pipeline_mode<synchronous>, transform_indices = @transform_1, window_bounds = array<i64: 1, 128>}, {pipeline_mode = #tpu.pipeline_mode<synchronous>, transform_indices = @transform_2, window_bounds = array<i64: 1, 128>}, {transform_indices = @transform_3, window_bounds = array<i64: 104, 128>}]} {
    %c0 = arith.constant 0 : index
    %c0_0 = arith.constant 0 : index
    %0 = vector.load %arg1[%c0, %c0_0] : memref<104x128xf32, #tpu.memory_space<vmem>>, vector<104x128xf32>
    %c0_1 = arith.constant 0 : index
    %c0_2 = arith.constant 0 : index
    %1 = vector.load %arg2[%c0_1, %c0_2] : memref<1x128xf32, #tpu.memory_space<vmem>>, vector<1x128xf32>
    %2 = vector.broadcast %1 : vector<1x128xf32> to vector<104x128xf32>
    %3 = arith.mulf %0, %2 : vector<104x128xf32>
    %c0_3 = arith.constant 0 : index
    %c0_4 = arith.constant 0 : index
    %4 = vector.load %arg3[%c0_3, %c0_4] : memref<1x128xf32, #tpu.memory_space<vmem>>, vector<1x128xf32>
    %5 = vector.broadcast %4 : vector<1x128xf32> to vector<104x128xf32>
    %6 = arith.addf %3, %5 : vector<104x128xf32>
    %cst = arith.constant 0.000000e+00 : f32
    %7 = vector.broadcast %cst : f32 to vector<104x128xf32>
    %8 = arith.maximumf %6, %7 : vector<104x128xf32>
    %9 = arith.truncf %8 : vector<104x128xf32> to vector<104x128xbf16>
    %c0_5 = arith.constant 0 : index
    %c0_6 = arith.constant 0 : index
    %10 = vector.load %arg4[%c0_5, %c0_6] : memref<104x128xbf16, #tpu.memory_space<vmem>>, vector<104x128xbf16>
    tpu.vector_store %arg4[%c0_5, %c0_6], %9 {strides = array<i32>} : memref<104x128xbf16, #tpu.memory_space<vmem>>, vector<104x128xbf16>,
    return
  }
  func.func @transform_0(%arg0: i32) -> (i32, i32) {
    %c0_i32 = arith.constant 0 : i32
    %c0_i32_0 = arith.constant 0 : i32
    return %arg0, %c0_i32 : i32, i32
  }
  func.func @transform_1(%arg0: i32) -> (i32, i32) {
    %c0_i32 = arith.constant 0 : i32
    %c0_i32_0 = arith.constant 0 : i32
    %c0_i32_1 = arith.constant 0 : i32
    return %c0_i32, %c0_i32_0 : i32, i32
  }
  func.func @transform_2(%arg0: i32) -> (i32, i32) {
    %c0_i32 = arith.constant 0 : i32
    %c0_i32_0 = arith.constant 0 : i32
    %c0_i32_1 = arith.constant 0 : i32
    return %c0_i32, %c0_i32_0 : i32, i32
  }
  func.func @transform_3(%arg0: i32) -> (i32, i32) {
    %c0_i32 = arith.constant 0 : i32
    %c0_i32_0 = arith.constant 0 : i32
    return %arg0, %c0_i32 : i32, i32
  }
}

module attributes {stable_mosaic.version = 11 : i64} {
  func.func @_matmul_kernel(%arg0: i32, %arg1: i32, %arg2: memref<392x32xbf16, #tpu.memory_space<vmem>>, %arg3: memref<32x256xbf16, #tpu.memory_space<vmem>>, %arg4: memref<392x256xf32, #tpu.memory_space<vmem>>) attributes {dimension_semantics = [#tpu.dimension_semantics<parallel>, #tpu.dimension_semantics<parallel>], iteration_bounds = array<i64: 1, 1>, scalar_prefetch = 0 : i64, scratch_operands = 0 : i64, tpu.core_type = #tpu.core_type<tc>, window_params = [{transform_indices = @transform_0, window_bounds = array<i64: 392, 32>}, {transform_indices = @transform_1, window_bounds = array<i64: 32, 256>}, {transform_indices = @transform_2, window_bounds = array<i64: 392, 256>}]} {
    %c0 = arith.constant 0 : index
    %c0_0 = arith.constant 0 : index
    %0 = vector.load %arg2[%c0, %c0_0] : memref<392x32xbf16, #tpu.memory_space<vmem>>, vector<392x32xbf16>
    %c0_1 = arith.constant 0 : index
    %c0_2 = arith.constant 0 : index
    %1 = vector.load %arg3[%c0_1, %c0_2] : memref<32x256xbf16, #tpu.memory_space<vmem>>, vector<32x256xbf16>
    %cst = arith.constant dense<0.000000e+00> : vector<392x256xf32>
    %2 = tpu.matmul %0, %1, %cst {dimension_numbers = #tpu.dot_dimension_numbers<[1], [0], [0], [1], [0, 0, 1, 1], [], []>} : vector<392x32xbf16>, vector<32x256xbf16>, vector<392x256xf32> -> vector<392x256xf32>
    %c0_3 = arith.constant 0 : index
    %c0_4 = arith.constant 0 : index
    %3 = vector.load %arg4[%c0_3, %c0_4] : memref<392x256xf32, #tpu.memory_space<vmem>>, vector<392x256xf32>
    tpu.vector_store %arg4[%c0_3, %c0_4], %2 {strides = array<i32>} : memref<392x256xf32, #tpu.memory_space<vmem>>, vector<392x256xf32>,
    return
  }
  func.func @transform_0(%arg0: i32, %arg1: i32) -> (i32, i32) {
    %c0_i32 = arith.constant 0 : i32
    %c0_i32_0 = arith.constant 0 : i32
    return %arg0, %c0_i32 : i32, i32
  }
  func.func @transform_1(%arg0: i32, %arg1: i32) -> (i32, i32) {
    %c0_i32 = arith.constant 0 : i32
    %c0_i32_0 = arith.constant 0 : i32
    return %c0_i32, %arg1 : i32, i32
  }
  func.func @transform_2(%arg0: i32, %arg1: i32) -> (i32, i32) {
    %c0_i32 = arith.constant 0 : i32
    return %arg0, %arg1 : i32, i32
  }
}

module attributes {stable_mosaic.version = 11 : i64} {
  func.func @_bn_stats_kernel(%arg0: i32, %arg1: memref<200x128xf32, #tpu.memory_space<vmem>>, %arg2: memref<1x128xf32, #tpu.memory_space<vmem>>, %arg3: memref<1x128xf32, #tpu.memory_space<vmem>>) attributes {dimension_semantics = [#tpu.dimension_semantics<arbitrary>], iteration_bounds = array<i64: 1>, scalar_prefetch = 0 : i64, scratch_operands = 0 : i64, tpu.core_type = #tpu.core_type<tc>, window_params = [{transform_indices = @transform_0, window_bounds = array<i64: 200, 128>}, {pipeline_mode = #tpu.pipeline_mode<synchronous>, transform_indices = @transform_1, window_bounds = array<i64: 1, 128>}, {pipeline_mode = #tpu.pipeline_mode<synchronous>, transform_indices = @transform_2, window_bounds = array<i64: 1, 128>}]} {
    %c0_i32 = arith.constant 0 : i32
    %0 = arith.cmpi eq, %arg0, %c0_i32 : i32
    %1 = arith.extui %0 : i1 to i32
    %c0_i32_0 = arith.constant 0 : i32
    %2 = arith.cmpi ne, %1, %c0_i32_0 : i32
    scf.if %2 {
      %cst_11 = arith.constant 0.000000e+00 : f32
      %15 = vector.broadcast %cst_11 : f32 to vector<1x128xf32>
      %c0_12 = arith.constant 0 : index
      %c0_13 = arith.constant 0 : index
      %16 = vector.load %arg2[%c0_12, %c0_13] : memref<1x128xf32, #tpu.memory_space<vmem>>, vector<1x128xf32>
      tpu.vector_store %arg2[%c0_12, %c0_13], %15 {strides = array<i32>} : memref<1x128xf32, #tpu.memory_space<vmem>>, vector<1x128xf32>,
      %cst_14 = arith.constant 0.000000e+00 : f32
      %17 = vector.broadcast %cst_14 : f32 to vector<1x128xf32>
      %c0_15 = arith.constant 0 : index
      %c0_16 = arith.constant 0 : index
      %18 = vector.load %arg3[%c0_15, %c0_16] : memref<1x128xf32, #tpu.memory_space<vmem>>, vector<1x128xf32>
      tpu.vector_store %arg3[%c0_15, %c0_16], %17 {strides = array<i32>} : memref<1x128xf32, #tpu.memory_space<vmem>>, vector<1x128xf32>,
    } else {
    }
    %c0 = arith.constant 0 : index
    %c0_1 = arith.constant 0 : index
    %3 = vector.load %arg1[%c0, %c0_1] : memref<200x128xf32, #tpu.memory_space<vmem>>, vector<200x128xf32>
    %c0_2 = arith.constant 0 : index
    %c0_3 = arith.constant 0 : index
    %4 = vector.load %arg2[%c0_2, %c0_3] : memref<1x128xf32, #tpu.memory_space<vmem>>, vector<1x128xf32>
    %cst = arith.constant dense<0.000000e+00> : vector<128xf32>
    %5 = vector.multi_reduction <add>, %3, %cst [0] : vector<200x128xf32> to vector<128xf32>
    %6 = vector.shape_cast %5 : vector<128xf32> to vector<1x128xf32>
    %7 = arith.addf %4, %6 : vector<1x128xf32>
    %c0_4 = arith.constant 0 : index
    %c0_5 = arith.constant 0 : index
    %8 = vector.load %arg2[%c0_4, %c0_5] : memref<1x128xf32, #tpu.memory_space<vmem>>, vector<1x128xf32>
    tpu.vector_store %arg2[%c0_4, %c0_5], %7 {strides = array<i32>} : memref<1x128xf32, #tpu.memory_space<vmem>>, vector<1x128xf32>,
    %c0_6 = arith.constant 0 : index
    %c0_7 = arith.constant 0 : index
    %9 = vector.load %arg3[%c0_6, %c0_7] : memref<1x128xf32, #tpu.memory_space<vmem>>, vector<1x128xf32>
    %10 = arith.mulf %3, %3 : vector<200x128xf32>
    %cst_8 = arith.constant dense<0.000000e+00> : vector<128xf32>
    %11 = vector.multi_reduction <add>, %10, %cst_8 [0] : vector<200x128xf32> to vector<128xf32>
    %12 = vector.shape_cast %11 : vector<128xf32> to vector<1x128xf32>
    %13 = arith.addf %9, %12 : vector<1x128xf32>
    %c0_9 = arith.constant 0 : index
    %c0_10 = arith.constant 0 : index
    %14 = vector.load %arg3[%c0_9, %c0_10] : memref<1x128xf32, #tpu.memory_space<vmem>>, vector<1x128xf32>
    tpu.vector_store %arg3[%c0_9, %c0_10], %13 {strides = array<i32>} : memref<1x128xf32, #tpu.memory_space<vmem>>, vector<1x128xf32>,
    return
  }
  func.func @transform_0(%arg0: i32) -> (i32, i32) {
    %c0_i32 = arith.constant 0 : i32
    %c0_i32_0 = arith.constant 0 : i32
    return %arg0, %c0_i32 : i32, i32
  }
  func.func @transform_1(%arg0: i32) -> (i32, i32) {
    %c0_i32 = arith.constant 0 : i32
    %c0_i32_0 = arith.constant 0 : i32
    %c0_i32_1 = arith.constant 0 : i32
    return %c0_i32, %c0_i32_0 : i32, i32
  }
  func.func @transform_2(%arg0: i32) -> (i32, i32) {
    %c0_i32 = arith.constant 0 : i32
    %c0_i32_0 = arith.constant 0 : i32
    %c0_i32_1 = arith.constant 0 : i32
    return %c0_i32, %c0_i32_0 : i32, i32
  }
}

module attributes {stable_mosaic.version = 11 : i64} {
  func.func @_affine_act_kernel(%arg0: i32, %arg1: memref<200x128xf32, #tpu.memory_space<vmem>>, %arg2: memref<1x128xf32, #tpu.memory_space<vmem>>, %arg3: memref<1x128xf32, #tpu.memory_space<vmem>>, %arg4: memref<200x128xbf16, #tpu.memory_space<vmem>>) attributes {dimension_semantics = [#tpu.dimension_semantics<parallel>], iteration_bounds = array<i64: 1>, scalar_prefetch = 0 : i64, scratch_operands = 0 : i64, tpu.core_type = #tpu.core_type<tc>, window_params = [{transform_indices = @transform_0, window_bounds = array<i64: 200, 128>}, {pipeline_mode = #tpu.pipeline_mode<synchronous>, transform_indices = @transform_1, window_bounds = array<i64: 1, 128>}, {pipeline_mode = #tpu.pipeline_mode<synchronous>, transform_indices = @transform_2, window_bounds = array<i64: 1, 128>}, {transform_indices = @transform_3, window_bounds = array<i64: 200, 128>}]} {
    %c0 = arith.constant 0 : index
    %c0_0 = arith.constant 0 : index
    %0 = vector.load %arg1[%c0, %c0_0] : memref<200x128xf32, #tpu.memory_space<vmem>>, vector<200x128xf32>
    %c0_1 = arith.constant 0 : index
    %c0_2 = arith.constant 0 : index
    %1 = vector.load %arg2[%c0_1, %c0_2] : memref<1x128xf32, #tpu.memory_space<vmem>>, vector<1x128xf32>
    %2 = vector.broadcast %1 : vector<1x128xf32> to vector<200x128xf32>
    %3 = arith.mulf %0, %2 : vector<200x128xf32>
    %c0_3 = arith.constant 0 : index
    %c0_4 = arith.constant 0 : index
    %4 = vector.load %arg3[%c0_3, %c0_4] : memref<1x128xf32, #tpu.memory_space<vmem>>, vector<1x128xf32>
    %5 = vector.broadcast %4 : vector<1x128xf32> to vector<200x128xf32>
    %6 = arith.addf %3, %5 : vector<200x128xf32>
    %cst = arith.constant 0.000000e+00 : f32
    %7 = vector.broadcast %cst : f32 to vector<200x128xf32>
    %8 = arith.maximumf %6, %7 : vector<200x128xf32>
    %9 = arith.truncf %8 : vector<200x128xf32> to vector<200x128xbf16>
    %c0_5 = arith.constant 0 : index
    %c0_6 = arith.constant 0 : index
    %10 = vector.load %arg4[%c0_5, %c0_6] : memref<200x128xbf16, #tpu.memory_space<vmem>>, vector<200x128xbf16>
    tpu.vector_store %arg4[%c0_5, %c0_6], %9 {strides = array<i32>} : memref<200x128xbf16, #tpu.memory_space<vmem>>, vector<200x128xbf16>,
    return
  }
  func.func @transform_0(%arg0: i32) -> (i32, i32) {
    %c0_i32 = arith.constant 0 : i32
    %c0_i32_0 = arith.constant 0 : i32
    return %arg0, %c0_i32 : i32, i32
  }
  func.func @transform_1(%arg0: i32) -> (i32, i32) {
    %c0_i32 = arith.constant 0 : i32
    %c0_i32_0 = arith.constant 0 : i32
    %c0_i32_1 = arith.constant 0 : i32
    return %c0_i32, %c0_i32_0 : i32, i32
  }
  func.func @transform_2(%arg0: i32) -> (i32, i32) {
    %c0_i32 = arith.constant 0 : i32
    %c0_i32_0 = arith.constant 0 : i32
    %c0_i32_1 = arith.constant 0 : i32
    return %c0_i32, %c0_i32_0 : i32, i32
  }
  func.func @transform_3(%arg0: i32) -> (i32, i32) {
    %c0_i32 = arith.constant 0 : i32
    %c0_i32_0 = arith.constant 0 : i32
    return %arg0, %c0_i32 : i32, i32
  }
}

module attributes {stable_mosaic.version = 11 : i64} {
  func.func @_matmul_kernel(%arg0: i32, %arg1: i32, %arg2: memref<392x16xbf16, #tpu.memory_space<vmem>>, %arg3: memref<16x27xbf16, #tpu.memory_space<vmem>>, %arg4: memref<392x27xf32, #tpu.memory_space<vmem>>) attributes {dimension_semantics = [#tpu.dimension_semantics<parallel>, #tpu.dimension_semantics<parallel>], iteration_bounds = array<i64: 4, 1>, scalar_prefetch = 0 : i64, scratch_operands = 0 : i64, tpu.core_type = #tpu.core_type<tc>, window_params = [{transform_indices = @transform_0, window_bounds = array<i64: 392, 16>}, {transform_indices = @transform_1, window_bounds = array<i64: 16, 27>}, {transform_indices = @transform_2, window_bounds = array<i64: 392, 27>}]} {
    %c0 = arith.constant 0 : index
    %c0_0 = arith.constant 0 : index
    %0 = vector.load %arg2[%c0, %c0_0] : memref<392x16xbf16, #tpu.memory_space<vmem>>, vector<392x16xbf16>
    %c0_1 = arith.constant 0 : index
    %c0_2 = arith.constant 0 : index
    %1 = vector.load %arg3[%c0_1, %c0_2] : memref<16x27xbf16, #tpu.memory_space<vmem>>, vector<16x27xbf16>
    %cst = arith.constant dense<0.000000e+00> : vector<392x27xf32>
    %2 = tpu.matmul %0, %1, %cst {dimension_numbers = #tpu.dot_dimension_numbers<[1], [0], [0], [1], [0, 0, 1, 1], [], []>} : vector<392x16xbf16>, vector<16x27xbf16>, vector<392x27xf32> -> vector<392x27xf32>
    %c0_3 = arith.constant 0 : index
    %c0_4 = arith.constant 0 : index
    %3 = vector.load %arg4[%c0_3, %c0_4] : memref<392x27xf32, #tpu.memory_space<vmem>>, vector<392x27xf32>
    tpu.vector_store %arg4[%c0_3, %c0_4], %2 {strides = array<i32>} : memref<392x27xf32, #tpu.memory_space<vmem>>, vector<392x27xf32>,
    return
  }
  func.func @transform_0(%arg0: i32, %arg1: i32) -> (i32, i32) {
    %c0_i32 = arith.constant 0 : i32
    %c0_i32_0 = arith.constant 0 : i32
    return %arg0, %c0_i32 : i32, i32
  }
  func.func @transform_1(%arg0: i32, %arg1: i32) -> (i32, i32) {
    %c0_i32 = arith.constant 0 : i32
    %c0_i32_0 = arith.constant 0 : i32
    return %c0_i32, %arg1 : i32, i32
  }
  func.func @transform_2(%arg0: i32, %arg1: i32) -> (i32, i32) {
    %c0_i32 = arith.constant 0 : i32
    return %arg0, %arg1 : i32, i32
  }
}

module attributes {stable_mosaic.version = 11 : i64} {
  func.func @_affine_act_kernel(%arg0: i32, %arg1: memref<32x147xf32, #tpu.memory_space<vmem>>, %arg2: memref<1x147xf32, #tpu.memory_space<vmem>>, %arg3: memref<1x147xf32, #tpu.memory_space<vmem>>, %arg4: memref<32x147xf32, #tpu.memory_space<vmem>>) attributes {dimension_semantics = [#tpu.dimension_semantics<parallel>], iteration_bounds = array<i64: 1>, scalar_prefetch = 0 : i64, scratch_operands = 0 : i64, tpu.core_type = #tpu.core_type<tc>, window_params = [{transform_indices = @transform_0, window_bounds = array<i64: 32, 147>}, {pipeline_mode = #tpu.pipeline_mode<synchronous>, transform_indices = @transform_1, window_bounds = array<i64: 1, 147>}, {pipeline_mode = #tpu.pipeline_mode<synchronous>, transform_indices = @transform_2, window_bounds = array<i64: 1, 147>}, {transform_indices = @transform_3, window_bounds = array<i64: 32, 147>}]} {
    %c0 = arith.constant 0 : index
    %c0_0 = arith.constant 0 : index
    %0 = vector.load %arg1[%c0, %c0_0] : memref<32x147xf32, #tpu.memory_space<vmem>>, vector<32x147xf32>
    %c0_1 = arith.constant 0 : index
    %c0_2 = arith.constant 0 : index
    %1 = vector.load %arg2[%c0_1, %c0_2] : memref<1x147xf32, #tpu.memory_space<vmem>>, vector<1x147xf32>
    %2 = vector.broadcast %1 : vector<1x147xf32> to vector<32x147xf32>
    %3 = arith.mulf %0, %2 : vector<32x147xf32>
    %c0_3 = arith.constant 0 : index
    %c0_4 = arith.constant 0 : index
    %4 = vector.load %arg3[%c0_3, %c0_4] : memref<1x147xf32, #tpu.memory_space<vmem>>, vector<1x147xf32>
    %5 = vector.broadcast %4 : vector<1x147xf32> to vector<32x147xf32>
    %6 = arith.addf %3, %5 : vector<32x147xf32>
    %7 = math.tanh %6 : vector<32x147xf32>
    %c0_5 = arith.constant 0 : index
    %c0_6 = arith.constant 0 : index
    %8 = vector.load %arg4[%c0_5, %c0_6] : memref<32x147xf32, #tpu.memory_space<vmem>>, vector<32x147xf32>
    tpu.vector_store %arg4[%c0_5, %c0_6], %7 {strides = array<i32>} : memref<32x147xf32, #tpu.memory_space<vmem>>, vector<32x147xf32>,
    return
  }
  func.func @transform_0(%arg0: i32) -> (i32, i32) {
    %c0_i32 = arith.constant 0 : i32
    %c0_i32_0 = arith.constant 0 : i32
    return %arg0, %c0_i32 : i32, i32
  }
  func.func @transform_1(%arg0: i32) -> (i32, i32) {
    %c0_i32 = arith.constant 0 : i32
    %c0_i32_0 = arith.constant 0 : i32
    %c0_i32_1 = arith.constant 0 : i32
    return %c0_i32, %c0_i32_0 : i32, i32
  }
  func.func @transform_2(%arg0: i32) -> (i32, i32) {
    %c0_i32 = arith.constant 0 : i32
    %c0_i32_0 = arith.constant 0 : i32
    %c0_i32_1 = arith.constant 0 : i32
    return %c0_i32, %c0_i32_0 : i32, i32
  }
  func.func @transform_3(%arg0: i32) -> (i32, i32) {
    %c0_i32 = arith.constant 0 : i32
    %c0_i32_0 = arith.constant 0 : i32
    return %arg0, %c0_i32 : i32, i32
  }
}

</mosaic_0001>

<bundles_post_ra>
// kernel: dcgan28_generator.14
= control target key start
LH: loop header
LB: loop body
LE: loop exit
PB: predicated region body
PF: predicated region fallthrough
CT: control target
= control target key end

     0   :  { %7 = vsyncpa [#allocation3], 0  ;;  %s854_s0 = inlined_call_operand.vmem [shape: bf16[8,16], index: 0, kind: input, shape index: {}]   ;;  %s855_s1 = inlined_call_operand.hbm [shape: bf16[16,2048], index: 1, kind: input, shape index: {}]   ;;  %s856_s2 = inlined_call_operand.vmem [shape: f32[8,2048], index: 2, kind: output, shape index: {}]  }
   0x1   :  { %9 = vsyncpa [#allocation3 + $0x1], 0  ;;  %s726_s9 = smov 0   ;;  %s728_s10 = smov 0  }
   0x2   :  { %s730_s11 = smov 0   ;;  %s732_s12 = smov 0  }
   0x3   :  { %s734_s13 = smov 0   ;;  %s736_s14 = smov 0  }
   0x4 LB: > { %s538_s15 = sadd.s32 4294967295, %s704_s14   ;;  %s24_s16 = sadd.s32 1, %s700_s13  ;;  %s704_s14 = sphi %s736_s14, %s15_s14   ;;  %s700_s13 = sphi %s734_s13, %s865_s13   ;;  %s696_s12 = sphi %s732_s12, %s864_s12   ;;  %s692_s11 = sphi %s730_s11, %s863_s11   ;;  %s688_s10 = sphi %s728_s10, %s862_s10   ;;  %s684_s9 = sphi %s726_s9, %s861_s9  }
   0x5   : > { %p25_p0 = scmp.ge.s32.totalorder %s24_s16, 2  ;;  %s60_s17 = sadd.s32 1, %s692_s11 }
   0x6   : > { %p67_p1 = scmp.ne.s32.totalorder %s692_s11, %s688_s10  ;;  %p68_p2 = scmp.eq.s32.totalorder %s704_s14, 0 }
   0x7   : > { %s867_s16 = smov (%p25_p0, %s24_s16), 0  ;;  %p73_p4 = scmp.ne.s32.totalorder %s688_s10, %s684_s9 }
   0x8   : > { %p762_p3 = por %p68_p2, %p67_p1  ;;  %s57_s19 = ssub.s32 %s700_s13, %s867_s16 }
   0x9   : > { %p74_p5 = scmp.eq.s32.totalorder %s538_s15, 0  ;;  %p58_p6 = scmp.eq.s32.totalorder %s57_s19, 0 }
   0xa   : > { %p571_p8 = scmp.lt.s32.totalorder %s704_s14, 2  ;;  %s132_s22 = sand.u32 1, %s692_s11  }
   0xb   : > { %p769_p7 = por %p74_p5, %p73_p4  ;;  %s564_s23 = sshll.u32 %s700_s13, 9 }
   0xc   : > { %s775_s21 = scalar_select %p58_p6, %s692_s11, %s60_s17  }
   0xd   : > { %s543_s24 = sshll.u32 %s132_s22, 6  ;;  %s782_s27 = scalar_lea.hbm %s855_s1, %s564_s23 }
   0xe   : > { %s136_s28 = scalar_lea.vmem [#allocation2], %s543_s24  ;;  %p786_p9 = pnand %p571_p8, %p762_p3 }
   0xf   : > { %s143_s29 = sshll.u32 %s136_s28, 4  ;;  %s793_s3 = scalar_lea.sflag [#allocation3], %s132_s22  ;;  %s790_s29 = int_to_ptr.vmem [resolvable:$true] %s143_s29 }
  0x10   : > { %s624_s4 = scalar_lea.hbm %s782_s27, 1024  ;;  %p626_p12 = pneg %p786_p9 }
  0x11   : > { %p625_p11 = scmp.ne.s32.totalorder %s782_s27, %s624_s4  ;;  %s629_s7 = scalar_lea.hbm %s855_s1, 2048 }
  0x12   : > { %p630_p1 = scmp.lt.u32.totalorder %s782_s27, %s855_s1  ;;  %p631_p2 = scmp.lt.u32.totalorder %s629_s7, %s624_s4 }
  0x13   : > { %p627_p13 = pnand %p626_p12, %p625_p11  ;;  %p633_p4 = scmp.lt.u32.totalorder %s624_s4, %s782_s27 }
  0x14   : > { %p632_p3 = por %p631_p2, %p630_p1 }
  0x15   : > { %p628_p0 = pneg %p627_p13 }
  0x16   : > { %p634_p5 = por %p633_p4, %p632_p3 }
  0x18   : > { %p635_p6 = pnand %p634_p5, %p628_p0 }
  0x1a   : > { %638 = shalt.err (!%p635_p6)
}
  0x1b   : > { %s639_s15 = scalar_lea.vmem %s790_s29, 1024  ;;  %s706_s17 = smov [#allocation2]  }
  0x1c   : > { %p640_p8 = scmp.ne.s32.totalorder %s790_s29, %s639_s15  ;;  %s644_s18 = sshll.u32 %s706_s17, 4  ;;  %s645_s18 = int_to_ptr.vmem [resolvable:$false] %s644_s18 }
  0x1d   : > { %s646_s19 = scalar_lea.vmem %s645_s18, 2048  ;;  %p647_p10 = scmp.lt.s32.totalorder %s790_s29, %s645_s18 }
  0x1e   : > { %p642_p11 = pnand %p640_p8, %p626_p12  ;;  %p648_p1 = scmp.lt.s32.totalorder %s646_s19, %s639_s15 }
  0x20   : > { %p643_p13 = pneg %p642_p11  ;;  %p649_p2 = por %p648_p1, %p647_p10 }
  0x22   : > { %p650_p3 = pnand %p649_p2, %p643_p13 }
  0x24   : > { %653 = shalt.err (!%p650_p3)
}
  0x25   : > { %s707_s22 = smov 1024   ;;  %s708_s23 = smov 512  }
  0x26   : > { %s709_s24 = smov 32   ;;  %p151_p12 = scmp.lt.s32.totalorder %s704_s14, 3 }
  0x27   : > { %570 = dma.hbm_to_vmem [thread:$0]  (!%p786_p9), %s782_s27, 1024, %s790_s29, %s793_s3, %s707_s22, %s708_s23, %s709_s24  }
  0x28   : > { %p860_p0 = scmp.ge.s32.totalorder %s704_s14, 1 }
  0x2a   : > { %p152_p4 = pnand %p860_p0, %p151_p12 }
  0x2b   : > { %s157_s25 = sand.u32 (!%p152_p4), 1, %s688_s10  }
  0x2c   : > { %155 = sbr.rel (%p152_p4) target bundleno = 283 (0x11b), region = 28  ;;  %s547_s26 = sshll.u32 (!%p152_p4), %s157_s25, 6 }
  0x2d   : > { %s158_s28 = scalar_lea.sflag (!%p152_p4), [#allocation3], %s157_s25  ;;  %s161_s4 = scalar_lea.vmem (!%p152_p4), [#allocation2], %s547_s26 }
  0x33   : > { %679 = dma.done.wait (%p769_p7), %s158_s28, 1024  }
  0x34   : > { %681 = vsyncadd (%p769_p7), %s158_s28, 4294966272  ;;  %v710_v0 = vmov 0   ;;  %v207_v1 = vld [vmem:[%s161_s4] sm:$0xff]  ;;  %v208_v3 = vld [vmem:[%s161_s4 + $0x8] sm:$0xff]  ;;  %vm255_vm0 = vcmask 130048   ;;  %s548_s29 = sshll.u32 %s696_s12, 3 }
  0x35   : > { %291 = vmatprep.mubr.bf16.mxu0 %v710_v0  ;;  %332 = vmatprep.mubr.bf16.mxu1 %v710_v0  ;;  %v211_v2 = vld [vmem:[%s161_s4 + $0x20] sm:$0xff]  ;;  %v212_v5 = vld [vmem:[%s161_s4 + $0x28] sm:$0xff]  ;;  %v209_v7 = vld [vmem:[%s161_s4 + $0x10] sm:$0xff]  ;;  %p198_p7 = scmp.lt.s32.totalorder %s548_s29, 15 }
  0x36   : > { %v551_v4 = vcombine.high %v207_v1, %v211_v2  ;;  %v550_v6 = vcombine.low %v207_v1, %v211_v2  ;;  %v553_v8 = vcombine.high %v208_v3, %v212_v5  ;;  %v552_v9 = vcombine.low %v208_v3, %v212_v5  ;;  %v213_v10 = vld [vmem:[%s161_s4 + $0x30] sm:$0xff]  ;;  %v210_v11 = vld [vmem:[%s161_s4 + $0x18] sm:$0xff]  ;;  %v206_v15 = vld [vmem:[%s854_s0] sm:$0xf] }
  0x37   : > { %v214_v12 = vld [vmem:[%s161_s4 + $0x38] sm:$0xff]  ;;  %v555_v13 = vcombine.high %v209_v7, %v213_v10  ;;  %v554_v16 = vcombine.low %v209_v7, %v213_v10  ;;  %s869_s29 = smov (!%p198_p7, %s548_s29), 15 }
  0x38   : > { %259 = vmatprep.subr.bf16.mxu0 %v551_v4  ;;  %v557_v14 = vcombine.high %v210_v11, %v214_v12  ;;  %300 = vmatprep.subr.bf16.mxu1 %v553_v8  ;;  %v556_v17 = vcombine.low %v210_v11, %v214_v12  ;;  %s549_s30 = sshll.u32 %s869_s29, 3 }
  0x39   : > { %260 = vmatpush1.bf16.msra.mxu0 %v550_v6  ;;  %301 = vmatpush1.bf16.msra.mxu1 %v552_v9  ;;  %s203_s6 = scalar_lea.vmem %s856_s2, %s549_s30 }
  0x3a   : > { %341 = vmatprep.subr.bf16.mxu0 %v555_v13  ;;  %382 = vmatprep.subr.bf16.mxu1 %v557_v14 }
  0x3c   : > { %558 = vmatmul.mubr.msk.bf16.vlgmr.msra.gmra.mrb[0].mxu0 %vm255_vm0, %v206_v15  ;;  %559 = vmatmul.mubr.msk.bf16.vlgmr.msra.gmra.mrb[0].mxu1 %vm255_vm0, %v206_v15 }
  0x3d   : > { %342 = vmatpush1.bf16.msra.mxu0 %v554_v16  ;;  %383 = vmatpush1.bf16.msra.mxu1 %v556_v17 }
  0x3e   : > { %373 = vmatprep.mubr.bf16.mxu0 %v710_v0  ;;  %414 = vmatprep.mubr.bf16.mxu1 %v710_v0 }
  0x44   : > { %560 = vmatmul.mubr.msk.bf16.vlgmr.msra.gmra.mrb[4].mxu0 %vm255_vm0, %v206_v15  ;;  %561 = vmatmul.mubr.msk.bf16.vlgmr.msra.gmra.mrb[4].mxu1 %vm255_vm0, %v206_v15 }
 0x10f   : > { %v293_v18 = vpop.f32.mrb[0].mxu0  ;;  %v334_v19 = vpop.f32.mrb[0].mxu1 }
 0x110   : > { %423 = vst [vmem:[%s203_s6] sm:$0xff] %v293_v18  ;;  %v295_v20 = vpop.f32.mrb[1].mxu0  ;;  %425 = vst [vmem:[%s203_s6 + $0x10] sm:$0xff] %v334_v19  ;;  %v336_v21 = vpop.f32.mrb[1].mxu1 }
 0x111   : > { %424 = vst [vmem:[%s203_s6 + $0x8] sm:$0xff] %v295_v20  ;;  %v297_v22 = vpop.f32.mrb[2].mxu0  ;;  %426 = vst [vmem:[%s203_s6 + $0x18] sm:$0xff] %v336_v21  ;;  %v338_v23 = vpop.f32.mrb[2].mxu1 }
 0x112   : > { %v298_v24 = vpop.f32.mrb[3].mxu0  ;;  %v339_v25 = vpop.f32.mrb[3].mxu1 }
 0x117   : > { %v375_v26 = vpop.f32.mrb[4].mxu0  ;;  %v416_v27 = vpop.f32.mrb[4].mxu1 }
 0x118   : > { %427 = vst [vmem:[%s203_s6 + $0x20] sm:$0xff] %v375_v26  ;;  %v377_v28 = vpop.f32.mrb[5].mxu0  ;;  %429 = vst [vmem:[%s203_s6 + $0x30] sm:$0xff] %v416_v27  ;;  %v418_v29 = vpop.f32.mrb[5].mxu1 }
 0x119   : > { %428 = vst [vmem:[%s203_s6 + $0x28] sm:$0xff] %v377_v28  ;;  %v379_v30 = vpop.f32.mrb[6].mxu0  ;;  %430 = vst [vmem:[%s203_s6 + $0x38] sm:$0xff] %v418_v29  ;;  %v420_v31 = vpop.f32.mrb[6].mxu1 }
 0x11a   : > { %v380_v32 = vpop.f32.mrb[7].mxu0  ;;  %v421_v33 = vpop.f32.mrb[7].mxu1 }
 0x11b PF: > { %s15_s14 = sadd.s32 1, %s704_s14   ;;  %s861_s9 = smov %s688_s10 }
 0x11c   : > { %p12_p9 = scmp.ge.s32.totalorder %s15_s14, 4   ;;  %s862_s10 = smov %s692_s11 }
 0x11d   : > { %s863_s11 = smov %s775_s21  ;;  %s864_s12 = smov %s700_s13 }
 0x11e   : > { %s865_s13 = smov %s867_s16  ;;  %14 = sbr.rel (!%p12_p9) target bundleno = 4 (0x4), region = 71 }
 0x125   :  { %461 = vsyncpa [#allocation3], 1 }
 0x126   :  { %463 = vsyncpa [#allocation3 + $0x1], 1 }

// kernel: dcgan28_generator.17
= control target key start
LH: loop header
LB: loop body
LE: loop exit
PB: predicated region body
PF: predicated region fallthrough
CT: control target
= control target key end

     0   :  { %7 = vsyncpa [#allocation3], 0  ;;  %s771_s9 = smov [#allocation2]   ;;  %s924_s0 = inlined_call_operand.vmem [shape: bf16[32,128], index: 0, kind: input, shape index: {}]   ;;  %s925_s1 = inlined_call_operand.hbm [shape: bf16[128,1024], index: 1, kind: input, shape index: {}]   ;;  %s926_s2 = inlined_call_operand.vmem [shape: f32[32,1024], index: 2, kind: output, shape index: {}]  }
   0x1   :  { %s15_s10 = sshll.u32 %s771_s9, 4  ;;  %s747_s13 = scalar_lea.hbm %s925_s1, 8192  ;;  %s16_s10 = int_to_ptr.vmem [resolvable:$true] %s15_s10 }
   0x2   :  { %p748_p0 = scmp.ne.s32.totalorder %s925_s1, %s747_s13  ;;  %p751_p1 = scmp.lt.u32.totalorder %s747_s13, %s925_s1 }
   0x4   :  { %p753_p2 = pnand %p751_p1, %p748_p0 }
   0x6   :  { %756 = shalt.err (!%p753_p2)
}
   0x7   :  { %s757_s18 = scalar_lea.vmem %s16_s10, 8192  ;;  %p762_p4 = scmp.lt.s32.totalorder %s16_s10, %s16_s10 }
   0x8   :  { %p758_p3 = scmp.ne.s32.totalorder %s16_s10, %s757_s18  ;;  %p763_p5 = scmp.lt.s32.totalorder %s757_s18, %s757_s18 }
   0xa   :  { %p764_p6 = por %p763_p5, %p762_p4 }
   0xc   :  { %p765_p7 = pnand %p764_p6, %p758_p3 }
   0xe   :  { %768 = shalt.err (!%p765_p7)
}
   0xf   :  { %s772_s19 = smov 512   ;;  %s773_s20 = smov 32  }
  0x10   :  { %21 = dma.hbm_to_vmem [thread:$0]  %s925_s1, 8192, %s16_s10, [#allocation3], %s772_s19, %s772_s19, %s773_s20  }
  0x11   :  { %769 = dma.done.wait [#allocation3], 8192  }
  0x12   :  { %770 = vsyncadd [#allocation3], 4294959104  ;;  %v774_v0 = vmov 0   ;;  %v30_v1 = vld [vmem:[#allocation2] sm:$0xff]  ;;  %v31_v3 = vld [vmem:[#allocation2 + $0x8] sm:$0xff] }
  0x13   :  { %458 = vmatprep.mubr.bf16.mxu0 %v774_v0  ;;  %511 = vmatprep.mubr.bf16.mxu1 %v774_v0  ;;  %v34_v2 = vld [vmem:[#allocation2 + $0x20] sm:$0xff]  ;;  %v35_v5 = vld [vmem:[#allocation2 + $0x28] sm:$0xff]  ;;  %v32_v63 = vld [vmem:[#allocation2 + $0x10] sm:$0xff] }
  0x14   :  { %v678_v4 = vcombine.high %v30_v1, %v34_v2  ;;  %v677_v6 = vcombine.low %v30_v1, %v34_v2  ;;  %v38_v7 = vld [vmem:[#allocation2 + $0x40] sm:$0xff]  ;;  %v680_v9 = vcombine.high %v31_v3, %v35_v5  ;;  %v679_v10 = vcombine.low %v31_v3, %v35_v5  ;;  %v39_v12 = vld [vmem:[#allocation2 + $0x48] sm:$0xff]  ;;  %v36_v1 = vld [vmem:[#allocation2 + $0x30] sm:$0xff] }
  0x15   :  { %v42_v8 = vld [vmem:[#allocation2 + $0x60] sm:$0xff]  ;;  %v43_v13 = vld [vmem:[#allocation2 + $0x68] sm:$0xff]  ;;  %v33_v2 = vld [vmem:[#allocation2 + $0x18] sm:$0xff] }
  0x16   :  { %v686_v11 = vcombine.high %v38_v7, %v42_v8  ;;  %v46_v14 = vld [vmem:[#allocation2 + $0x80] sm:$0xff]  ;;  %426 = vmatprep.subr.bf16.mxu0 %v678_v4  ;;  %v688_v15 = vcombine.high %v39_v12, %v43_v13  ;;  %v47_v17 = vld [vmem:[#allocation2 + $0x88] sm:$0xff]  ;;  %479 = vmatprep.subr.bf16.mxu1 %v680_v9  ;;  %v685_v19 = vcombine.low %v38_v7, %v42_v8  ;;  %v37_v3 = vld [vmem:[#allocation2 + $0x38] sm:$0xff] }
  0x17   :  { %v50_v16 = vld [vmem:[#allocation2 + $0xa0] sm:$0xff]  ;;  %v51_v18 = vld [vmem:[#allocation2 + $0xa8] sm:$0xff]  ;;  %427 = vmatpush1.bf16.msra.mxu0 %v677_v6  ;;  %480 = vmatpush1.bf16.msra.mxu1 %v679_v10  ;;  %v687_v20 = vcombine.low %v39_v12, %v43_v13  ;;  %v682_v6 = vcombine.high %v32_v63, %v36_v1  ;;  %v684_v7 = vcombine.high %v33_v2, %v37_v3  ;;  %v40_v8 = vld [vmem:[#allocation2 + $0x50] sm:$0xff] }
  0x18   :  { %428 = vmatprep.subr.bf16.mxu0 %v686_v11  ;;  %v694_v21 = vcombine.high %v46_v14, %v50_v16  ;;  %481 = vmatprep.subr.bf16.mxu1 %v688_v15  ;;  %v696_v22 = vcombine.high %v47_v17, %v51_v18  ;;  %v54_v23 = vld [vmem:[#allocation2 + $0xc0] sm:$0xff]  ;;  %v55_v25 = vld [vmem:[#allocation2 + $0xc8] sm:$0xff]  ;;  %v693_v27 = vcombine.low %v46_v14, %v50_v16  ;;  %v44_v9 = vld [vmem:[#allocation2 + $0x70] sm:$0xff] }
  0x19   :  { %v58_v24 = vld [vmem:[#allocation2 + $0xe0] sm:$0xff]  ;;  %v59_v26 = vld [vmem:[#allocation2 + $0xe8] sm:$0xff]  ;;  %v695_v28 = vcombine.low %v47_v17, %v51_v18  ;;  %v41_v11 = vld [vmem:[#allocation2 + $0x58] sm:$0xff]  ;;  %v681_v13 = vcombine.low %v32_v63, %v36_v1  ;;  %v683_v14 = vcombine.low %v33_v2, %v37_v3  ;;  %v690_v15 = vcombine.high %v40_v8, %v44_v9 }
  0x1a   :  { %v702_v29 = vcombine.high %v54_v23, %v58_v24  ;;  %v704_v30 = vcombine.high %v55_v25, %v59_v26  ;;  %v62_v31 = vld [vmem:[#allocation2 + $0x100] sm:$0xff]  ;;  %v63_v33 = vld [vmem:[#allocation2 + $0x108] sm:$0xff]  ;;  %v701_v35 = vcombine.low %v54_v23, %v58_v24  ;;  %v703_v36 = vcombine.low %v55_v25, %v59_v26  ;;  %v45_v12 = vld [vmem:[#allocation2 + $0x78] sm:$0xff] }
  0x1b   :  { %429 = vmatpush1.bf16.msra.mxu0 %v685_v19  ;;  %482 = vmatpush1.bf16.msra.mxu1 %v687_v20  ;;  %v66_v32 = vld [vmem:[#allocation2 + $0x120] sm:$0xff]  ;;  %v67_v34 = vld [vmem:[#allocation2 + $0x128] sm:$0xff]  ;;  %v692_v16 = vcombine.high %v41_v11, %v45_v12  ;;  %v48_v17 = vld [vmem:[#allocation2 + $0x90] sm:$0xff] }
  0x1c   :  { %430 = vmatprep.subr.bf16.mxu0 %v694_v21  ;;  %483 = vmatprep.subr.bf16.mxu1 %v696_v22  ;;  %v710_v37 = vcombine.high %v62_v31, %v66_v32  ;;  %v712_v38 = vcombine.high %v63_v33, %v67_v34  ;;  %v70_v39 = vld [vmem:[#allocation2 + $0x140] sm:$0xff]  ;;  %v71_v41 = vld [vmem:[#allocation2 + $0x148] sm:$0xff]  ;;  %v709_v43 = vcombine.low %v62_v31, %v66_v32  ;;  %v52_v18 = vld [vmem:[#allocation2 + $0xb0] sm:$0xff] }
  0x1d   :  { %v74_v40 = vld [vmem:[#allocation2 + $0x160] sm:$0xff]  ;;  %v75_v42 = vld [vmem:[#allocation2 + $0x168] sm:$0xff]  ;;  %v711_v44 = vcombine.low %v63_v33, %v67_v34  ;;  %v49_v19 = vld [vmem:[#allocation2 + $0x98] sm:$0xff]  ;;  %v689_v21 = vcombine.low %v40_v8, %v44_v9  ;;  %v691_v22 = vcombine.low %v41_v11, %v45_v12  ;;  %v698_v23 = vcombine.high %v48_v17, %v52_v18 }
  0x1e   :  { %v718_v45 = vcombine.high %v70_v39, %v74_v40  ;;  %v720_v46 = vcombine.high %v71_v41, %v75_v42  ;;  %v78_v47 = vld [vmem:[#allocation2 + $0x180] sm:$0xff]  ;;  %v79_v49 = vld [vmem:[#allocation2 + $0x188] sm:$0xff]  ;;  %v717_v51 = vcombine.low %v70_v39, %v74_v40  ;;  %v719_v52 = vcombine.low %v71_v41, %v75_v42  ;;  %v53_v20 = vld [vmem:[#allocation2 + $0xb8] sm:$0xff] }
  0x1f   :  { %431 = vmatpush1.bf16.msra.mxu0 %v693_v27  ;;  %484 = vmatpush1.bf16.msra.mxu1 %v695_v28  ;;  %v82_v48 = vld [vmem:[#allocation2 + $0x1a0] sm:$0xff]  ;;  %v83_v50 = vld [vmem:[#allocation2 + $0x1a8] sm:$0xff]  ;;  %v700_v24 = vcombine.high %v49_v19, %v53_v20  ;;  %v56_v25 = vld [vmem:[#allocation2 + $0xd0] sm:$0xff]  ;;  %v699_v31 = vcombine.low %v49_v19, %v53_v20 }
  0x20   :  { %432 = vmatprep.subr.bf16.mxu0 %v702_v29  ;;  %485 = vmatprep.subr.bf16.mxu1 %v704_v30  ;;  %v726_v53 = vcombine.high %v78_v47, %v82_v48  ;;  %v728_v54 = vcombine.high %v79_v49, %v83_v50  ;;  %v86_v55 = vld [vmem:[#allocation2 + $0x1c0] sm:$0xff]  ;;  %v87_v57 = vld [vmem:[#allocation2 + $0x1c8] sm:$0xff]  ;;  %v725_v59 = vcombine.low %v78_v47, %v82_v48  ;;  %v60_v26 = vld [vmem:[#allocation2 + $0xf0] sm:$0xff] }
  0x21   :  { %v90_v56 = vld [vmem:[#allocation2 + $0x1e0] sm:$0xff]  ;;  %v91_v58 = vld [vmem:[#allocation2 + $0x1e8] sm:$0xff]  ;;  %v727_v60 = vcombine.low %v79_v49, %v83_v50  ;;  %v57_v27 = vld [vmem:[#allocation2 + $0xd8] sm:$0xff]  ;;  %v697_v30 = vcombine.low %v48_v17, %v52_v18  ;;  %v706_v32 = vcombine.high %v56_v25, %v60_v26 }
  0x22   :  { %v734_v61 = vcombine.high %v86_v55, %v90_v56  ;;  %v736_v62 = vcombine.high %v87_v57, %v91_v58  ;;  %v733_v4 = vcombine.low %v86_v55, %v90_v56  ;;  %v735_v5 = vcombine.low %v87_v57, %v91_v58  ;;  %v807_v10 = vld [vmem:[%s924_s0] sm:$0xff]   ;;  %v61_v28 = vld [vmem:[#allocation2 + $0xf8] sm:$0xff]  ;;  %v816_v29 = vld [vmem:[%s924_s0 + $0x8] sm:$0xff]  }
  0x23   :  { %433 = vmatpush1.bf16.msra.mxu0 %v701_v35  ;;  %486 = vmatpush1.bf16.msra.mxu1 %v703_v36  ;;  %v708_v33 = vcombine.high %v57_v27, %v61_v28  ;;  %v64_v34 = vld [vmem:[#allocation2 + $0x110] sm:$0xff]  ;;  %v65_v36 = vld [vmem:[#allocation2 + $0x118] sm:$0xff]  ;;  %v707_v39 = vcombine.low %v57_v27, %v61_v28 }
  0x24   :  { %434 = vmatprep.subr.bf16.mxu0 %v710_v37  ;;  %487 = vmatprep.subr.bf16.mxu1 %v712_v38  ;;  %v68_v35 = vld [vmem:[#allocation2 + $0x130] sm:$0xff]  ;;  %v69_v37 = vld [vmem:[#allocation2 + $0x138] sm:$0xff]  ;;  %v705_v38 = vcombine.low %v56_v25, %v60_v26 }
  0x25   :  { %v714_v40 = vcombine.high %v64_v34, %v68_v35  ;;  %v716_v41 = vcombine.high %v65_v36, %v69_v37  ;;  %v72_v42 = vld [vmem:[#allocation2 + $0x150] sm:$0xff]  ;;  %v715_v47 = vcombine.low %v65_v36, %v69_v37 }
  0x26   :  { %v80_v50 = vld [vmem:[#allocation2 + $0x190] sm:$0xff] }
  0x27   :  { %435 = vmatpush1.bf16.msra.mxu0 %v709_v43  ;;  %488 = vmatpush1.bf16.msra.mxu1 %v711_v44  ;;  %v76_v43 = vld [vmem:[#allocation2 + $0x170] sm:$0xff]  ;;  %v73_v44 = vld [vmem:[#allocation2 + $0x158] sm:$0xff] }
  0x28   :  { %436 = vmatprep.subr.bf16.mxu0 %v718_v45  ;;  %489 = vmatprep.subr.bf16.mxu1 %v720_v46  ;;  %v77_v45 = vld [vmem:[#allocation2 + $0x178] sm:$0xff]  ;;  %v713_v46 = vcombine.low %v64_v34, %v68_v35  ;;  %v722_v48 = vcombine.high %v72_v42, %v76_v43  ;;  %v88_v58 = vld [vmem:[#allocation2 + $0x1d0] sm:$0xff] }
  0x29   :  { %v724_v49 = vcombine.high %v73_v44, %v77_v45  ;;  %v723_v55 = vcombine.low %v73_v44, %v77_v45 }
  0x2b   :  { %437 = vmatpush1.bf16.msra.mxu0 %v717_v51  ;;  %490 = vmatpush1.bf16.msra.mxu1 %v719_v52  ;;  %v84_v51 = vld [vmem:[#allocation2 + $0x1b0] sm:$0xff]  ;;  %v81_v52 = vld [vmem:[#allocation2 + $0x198] sm:$0xff] }
  0x2c   :  { %438 = vmatprep.subr.bf16.mxu0 %v726_v53  ;;  %491 = vmatprep.subr.bf16.mxu1 %v728_v54  ;;  %v85_v53 = vld [vmem:[#allocation2 + $0x1b8] sm:$0xff]  ;;  %v721_v54 = vcombine.low %v72_v42, %v76_v43  ;;  %v730_v56 = vcombine.high %v80_v50, %v84_v51 }
  0x2d   :  { %v732_v57 = vcombine.high %v81_v52, %v85_v53  ;;  %v731_v63 = vcombine.low %v81_v52, %v85_v53 }
  0x2f   :  { %439 = vmatpush1.bf16.msra.mxu0 %v725_v59  ;;  %492 = vmatpush1.bf16.msra.mxu1 %v727_v60  ;;  %v92_v59 = vld [vmem:[#allocation2 + $0x1f0] sm:$0xff]  ;;  %v89_v60 = vld [vmem:[#allocation2 + $0x1d8] sm:$0xff] }
  0x30   :  { %440 = vmatprep.subr.bf16.mxu0 %v734_v61  ;;  %493 = vmatprep.subr.bf16.mxu1 %v736_v62  ;;  %v93_v61 = vld [vmem:[#allocation2 + $0x1f8] sm:$0xff]  ;;  %v729_v62 = vcombine.low %v80_v50, %v84_v51  ;;  %v738_v1 = vcombine.high %v88_v58, %v92_v59  ;;  %v737_v3 = vcombine.low %v88_v58, %v92_v59 }
  0x31   :  { %v740_v2 = vcombine.high %v89_v60, %v93_v61 }
  0x33   :  { %441 = vmatpush1.bf16.msra.mxu0 %v733_v4  ;;  %494 = vmatpush1.bf16.msra.mxu1 %v735_v5  ;;  %v739_v4 = vcombine.low %v89_v60, %v93_v61 }
  0x34   :  { %532 = vmatprep.subr.bf16.mxu0 %v682_v6  ;;  %585 = vmatprep.subr.bf16.mxu1 %v684_v7 }
  0x36   :  { %459 = vmatmul.mubr.bf16.vlgmr.msra.gmra.mrb[0].mxu0 %v807_v10  ;;  %512 = vmatmul.mubr.bf16.vlgmr.msra.gmra.mrb[0].mxu1 %v807_v10 }
  0x37   :  { %533 = vmatpush1.bf16.msra.mxu0 %v681_v13  ;;  %586 = vmatpush1.bf16.msra.mxu1 %v683_v14 }
  0x38   :  { %534 = vmatprep.subr.bf16.mxu0 %v690_v15  ;;  %587 = vmatprep.subr.bf16.mxu1 %v692_v16 }
  0x39   :  { %468 = vmatprep.mubr.bf16.mxu0 %v774_v0  ;;  %521 = vmatprep.mubr.bf16.mxu1 %v774_v0 }
  0x3b   :  { %535 = vmatpush1.bf16.msra.mxu0 %v689_v21  ;;  %588 = vmatpush1.bf16.msra.mxu1 %v691_v22 }
  0x3c   :  { %536 = vmatprep.subr.bf16.mxu0 %v698_v23  ;;  %589 = vmatprep.subr.bf16.mxu1 %v700_v24 }
  0x3e   :  { %469 = vmatmul.mubr.bf16.gmra.mrb[4].mxu0 %v816_v29  ;;  %522 = vmatmul.mubr.bf16.gmra.mrb[4].mxu1 %v816_v29 }
  0x3f   :  { %537 = vmatpush1.bf16.msra.mxu0 %v697_v30  ;;  %590 = vmatpush1.bf16.msra.mxu1 %v699_v31 }
  0x40   :  { %538 = vmatprep.subr.bf16.mxu0 %v706_v32  ;;  %591 = vmatprep.subr.bf16.mxu1 %v708_v33 }
  0x41   :  { %564 = vmatprep.mubr.bf16.mxu0 %v774_v0  ;;  %617 = vmatprep.mubr.bf16.mxu1 %v774_v0 }
  0x43   :  { %539 = vmatpush1.bf16.msra.mxu0 %v705_v38  ;;  %592 = vmatpush1.bf16.msra.mxu1 %v707_v39 }
  0x44   :  { %540 = vmatprep.subr.bf16.mxu0 %v714_v40  ;;  %593 = vmatprep.subr.bf16.mxu1 %v716_v41 }
  0x47   :  { %541 = vmatpush1.bf16.msra.mxu0 %v713_v46  ;;  %594 = vmatpush1.bf16.msra.mxu1 %v715_v47 }
  0x48   :  { %542 = vmatprep.subr.bf16.mxu0 %v722_v48  ;;  %595 = vmatprep.subr.bf16.mxu1 %v724_v49 }
  0x4b   :  { %543 = vmatpush1.bf16.msra.mxu0 %v721_v54  ;;  %596 = vmatpush1.bf16.msra.mxu1 %v723_v55 }
  0x4c   :  { %544 = vmatprep.subr.bf16.mxu0 %v730_v56  ;;  %597 = vmatprep.subr.bf16.mxu1 %v732_v57 }
  0x4f   :  { %545 = vmatpush1.bf16.msra.mxu0 %v729_v62  ;;  %598 = vmatpush1.bf16.msra.mxu1 %v731_v63 }
  0x50   :  { %546 = vmatprep.subr.bf16.mxu0 %v738_v1  ;;  %599 = vmatprep.subr.bf16.mxu1 %v740_v2 }
  0x53   :  { %547 = vmatpush1.bf16.msra.mxu0 %v737_v3  ;;  %600 = vmatpush1.bf16.msra.mxu1 %v739_v4 }
  0x56   :  { %565 = vmatmul.mubr.bf16.vlgmr.msra.gmra.mrb[8].mxu0 %v807_v10  ;;  %618 = vmatmul.mubr.bf16.vlgmr.msra.gmra.mrb[8].mxu1 %v807_v10 }
  0x57   :  { %574 = vmatprep.mubr.bf16.mxu0 %v774_v0  ;;  %627 = vmatprep.mubr.bf16.mxu1 %v774_v0 }
  0x5e   :  { %575 = vmatmul.mubr.bf16.gmra.mrb[12].mxu0 %v816_v29  ;;  %628 = vmatmul.mubr.bf16.gmra.mrb[12].mxu1 %v816_v29 }
 0x109   :  { %v460_v5 = vpop.f32.mrb[0].mxu0  ;;  %v513_v6 = vpop.f32.mrb[0].mxu1 }
 0x10a   :  { %638 = vst [vmem:[%s926_s2] sm:$0xff] %v460_v5  ;;  %v462_v7 = vpop.f32.mrb[1].mxu0  ;;  %640 = vst [vmem:[%s926_s2 + $0x10] sm:$0xff] %v513_v6  ;;  %v515_v0 = vpop.f32.mrb[1].mxu1 }
 0x10b   :  { %639 = vst [vmem:[%s926_s2 + $0x8] sm:$0xff] %v462_v7  ;;  %v464_v8 = vpop.f32.mrb[2].mxu0  ;;  %641 = vst [vmem:[%s926_s2 + $0x18] sm:$0xff] %v515_v0  ;;  %v517_v9 = vpop.f32.mrb[2].mxu1 }
 0x10c   :  { %646 = vst [vmem:[%s926_s2 + $0x40] sm:$0xff] %v464_v8  ;;  %v466_v10 = vpop.f32.mrb[3].mxu0  ;;  %648 = vst [vmem:[%s926_s2 + $0x50] sm:$0xff] %v517_v9  ;;  %v519_v11 = vpop.f32.mrb[3].mxu1 }
 0x10d   :  { %647 = vst [vmem:[%s926_s2 + $0x48] sm:$0xff] %v466_v10  ;;  %649 = vst [vmem:[%s926_s2 + $0x58] sm:$0xff] %v519_v11 }
 0x111   :  { %v470_v12 = vpop.f32.mrb[4].mxu0  ;;  %v523_v13 = vpop.f32.mrb[4].mxu1 }
 0x112   :  { %654 = vst [vmem:[%s926_s2 + $0x80] sm:$0xff] %v470_v12  ;;  %v472_v14 = vpop.f32.mrb[5].mxu0  ;;  %656 = vst [vmem:[%s926_s2 + $0x90] sm:$0xff] %v523_v13  ;;  %v525_v15 = vpop.f32.mrb[5].mxu1 }
 0x113   :  { %655 = vst [vmem:[%s926_s2 + $0x88] sm:$0xff] %v472_v14  ;;  %v474_v16 = vpop.f32.mrb[6].mxu0  ;;  %657 = vst [vmem:[%s926_s2 + $0x98] sm:$0xff] %v525_v15  ;;  %v527_v17 = vpop.f32.mrb[6].mxu1 }
 0x114   :  { %662 = vst [vmem:[%s926_s2 + $0xc0] sm:$0xff] %v474_v16  ;;  %v476_v18 = vpop.f32.mrb[7].mxu0  ;;  %664 = vst [vmem:[%s926_s2 + $0xd0] sm:$0xff] %v527_v17  ;;  %v529_v19 = vpop.f32.mrb[7].mxu1 }
 0x115   :  { %663 = vst [vmem:[%s926_s2 + $0xc8] sm:$0xff] %v476_v18  ;;  %665 = vst [vmem:[%s926_s2 + $0xd8] sm:$0xff] %v529_v19 }
 0x129   :  { %v566_v20 = vpop.f32.mrb[8].mxu0  ;;  %v619_v21 = vpop.f32.mrb[8].mxu1 }
 0x12a   :  { %642 = vst [vmem:[%s926_s2 + $0x20] sm:$0xff] %v566_v20  ;;  %v568_v22 = vpop.f32.mrb[9].mxu0  ;;  %644 = vst [vmem:[%s926_s2 + $0x30] sm:$0xff] %v619_v21  ;;  %v621_v23 = vpop.f32.mrb[9].mxu1 }
 0x12b   :  { %643 = vst [vmem:[%s926_s2 + $0x28] sm:$0xff] %v568_v22  ;;  %v570_v24 = vpop.f32.mrb[10].mxu0  ;;  %645 = vst [vmem:[%s926_s2 + $0x38] sm:$0xff] %v621_v23  ;;  %v623_v25 = vpop.f32.mrb[10].mxu1 }
 0x12c   :  { %650 = vst [vmem:[%s926_s2 + $0x60] sm:$0xff] %v570_v24  ;;  %v572_v26 = vpop.f32.mrb[11].mxu0  ;;  %652 = vst [vmem:[%s926_s2 + $0x70] sm:$0xff] %v623_v25  ;;  %v625_v27 = vpop.f32.mrb[11].mxu1 }
 0x12d   :  { %651 = vst [vmem:[%s926_s2 + $0x68] sm:$0xff] %v572_v26  ;;  %653 = vst [vmem:[%s926_s2 + $0x78] sm:$0xff] %v625_v27 }
 0x131   :  { %v576_v28 = vpop.f32.mrb[12].mxu0  ;;  %v629_v29 = vpop.f32.mrb[12].mxu1 }
 0x132   :  { %658 = vst [vmem:[%s926_s2 + $0xa0] sm:$0xff] %v576_v28  ;;  %v578_v30 = vpop.f32.mrb[13].mxu0  ;;  %660 = vst [vmem:[%s926_s2 + $0xb0] sm:$0xff] %v629_v29  ;;  %v631_v31 = vpop.f32.mrb[13].mxu1 }
 0x133   :  { %659 = vst [vmem:[%s926_s2 + $0xa8] sm:$0xff] %v578_v30  ;;  %v580_v32 = vpop.f32.mrb[14].mxu0  ;;  %661 = vst [vmem:[%s926_s2 + $0xb8] sm:$0xff] %v631_v31  ;;  %v633_v33 = vpop.f32.mrb[14].mxu1 }
 0x134   :  { %666 = vst [vmem:[%s926_s2 + $0xe0] sm:$0xff] %v580_v32  ;;  %v582_v34 = vpop.f32.mrb[15].mxu0  ;;  %668 = vst [vmem:[%s926_s2 + $0xf0] sm:$0xff] %v633_v33  ;;  %v635_v35 = vpop.f32.mrb[15].mxu1 }
 0x135   :  { %667 = vst [vmem:[%s926_s2 + $0xe8] sm:$0xff] %v582_v34  ;;  %669 = vst [vmem:[%s926_s2 + $0xf8] sm:$0xff] %v635_v35 }
 0x136   :  { %674 = vsyncpa [#allocation3], 1 }

// kernel: dcgan28_generator.15
= control target key start
LH: loop header
LB: loop body
LE: loop exit
PB: predicated region body
PF: predicated region fallthrough
CT: control target
= control target key end

     0   :  { %v57_v0 = vmov 0.0   ;;  %s103_s1 = inlined_call_operand.vmem [shape: f32[1,128], index: 1, kind: output, shape index: {0}]   ;;  %s104_s2 = inlined_call_operand.vmem [shape: f32[1,128], index: 2, kind: output, shape index: {1}]   ;;  %s105_s0 = inlined_call_operand.vmem [shape: f32[32,128], index: 0, kind: input, shape index: {}]  }
   0x1   :  { %14 = vst [vmem:[%s103_s1] sm:$0x1] %v57_v0  ;;  %15 = vst [vmem:[%s104_s2] sm:$0x1] %v57_v0  ;;  %v16_v1 = vld [vmem:[%s105_s0] sm:$0xff]  ;;  %v17_v2 = vld [vmem:[%s105_s0 + $0x8] sm:$0xff] }
   0x2   :  { %v18_v3 = vld [vmem:[%s105_s0 + $0x10] sm:$0xff]  ;;  %v19_v4 = vld [vmem:[%s105_s0 + $0x18] sm:$0xff]  ;;  %v21_v5 = vadd.f32 %v17_v2, %v16_v1  ;;  %v33_v6 = vmul.f32 %v16_v1, %v16_v1  ;;  %v34_v7 = vmul.f32 %v17_v2, %v17_v2 }
   0x3   :  { %v35_v8 = vmul.f32 %v18_v3, %v18_v3  ;;  %v36_v10 = vmul.f32 %v19_v4, %v19_v4 }
   0x4   :  { %v22_v9 = vadd.f32 %v21_v5, %v18_v3  ;;  %v37_v11 = vadd.f32 %v34_v7, %v33_v6 }
   0x6   :  { %v23_v12 = vadd.f32 %v22_v9, %v19_v4  ;;  %v38_v13 = vadd.f32 %v37_v11, %v35_v8 }
   0x8   :  { %v24_v14 = vrot.slane %v23_v12, 4  ;;  %v39_v15 = vadd.f32 %v38_v13, %v36_v10  ;;  %v20_v24 = vld [vmem:[%s103_s1] sm:$0x1] }
   0x9   :  { %v32_v27 = vld [vmem:[%s104_s2] sm:$0x1] }
   0xa   :  { %v25_v16 = vadd.f32 %v24_v14, %v23_v12  ;;  %v40_v17 = vrot.slane %v39_v15, 4 }
   0xc   :  { %v26_v18 = vrot.slane %v25_v16, 2  ;;  %v41_v19 = vadd.f32 %v40_v17, %v39_v15 }
   0xe   :  { %v27_v20 = vadd.f32 %v26_v18, %v25_v16  ;;  %v42_v21 = vrot.slane %v41_v19, 2 }
  0x10   :  { %v28_v22 = vrot.slane %v27_v20, 1  ;;  %v43_v23 = vadd.f32 %v42_v21, %v41_v19 }
  0x12   :  { %v29_v25 = vadd.f32 %v28_v22, %v27_v20  ;;  %v44_v26 = vrot.slane %v43_v23, 1 }
  0x14   :  { %v30_v28 = vadd.f32 %v29_v25, %v20_v24  ;;  %v45_v29 = vadd.f32 %v44_v26, %v43_v23 }
  0x16   :  { %31 = vst [vmem:[%s103_s1] sm:$0x1] %v30_v28  ;;  %v46_v30 = vadd.f32 %v45_v29, %v32_v27 }
  0x18   :  { %47 = vst [vmem:[%s104_s2] sm:$0x1] %v46_v30 }

// kernel: dcgan28_generator.16
= control target key start
LH: loop header
LB: loop body
LE: loop exit
PB: predicated region body
PF: predicated region fallthrough
CT: control target
= control target key end

     0   :  { %s133_s0 = inlined_call_operand.vmem [shape: f32[32,128], index: 0, kind: input, shape index: {}]   ;;  %s134_s1 = inlined_call_operand.vmem [shape: f32[1,128], index: 1, kind: input, shape index: {}]   ;;  %s135_s2 = inlined_call_operand.vmem [shape: f32[1,128], index: 2, kind: input, shape index: {}]   ;;  %s136_s3 = inlined_call_operand.vmem [shape: bf16[32,128], index: 3, kind: output, shape index: {}]  }
   0x1   :  { %v14_v0 = vld [vmem:[%s133_s0] sm:$0xff]  ;;  %v15_v1 = vld [vmem:[%s133_s0 + $0x8] sm:$0xff]  ;;  %v16_v6 = vld [vmem:[%s133_s0 + $0x10] sm:$0xff] }
   0x2   :  { %v68_v2 = vld [vmem:[%s134_s1] ss:$0 sm:$0xff]  ;;  %v17_v7 = vld [vmem:[%s133_s0 + $0x18] sm:$0xff] }
   0x3   :  { %v25_v3 = vmul.f32 %v68_v2, %v14_v0  ;;  %v26_v4 = vmul.f32 %v68_v2, %v15_v1  ;;  %v69_v5 = vld [vmem:[%s135_s2] ss:$0 sm:$0xff]  ;;  %v27_v8 = vmul.f32 %v68_v2, %v16_v6  ;;  %v28_v9 = vmul.f32 %v68_v2, %v17_v7 }
   0x5   :  { %v36_v10 = vadd.f32 %v69_v5, %v25_v3  ;;  %v37_v11 = vadd.f32 %v69_v5, %v26_v4  ;;  %v38_v12 = vadd.f32 %v69_v5, %v27_v8  ;;  %v39_v13 = vadd.f32 %v69_v5, %v28_v9 }
   0x7   :  { %v40_v14 = vmax.f32 %v36_v10, 0.0  ;;  %v41_v15 = vmax.f32 %v37_v11, 0.0  ;;  %v42_v16 = vmax.f32 %v38_v12, 0.0  ;;  %v43_v17 = vmax.f32 %v39_v13, 0.0 }
   0x9   :  { %v81_v18 = vpack.c.bf16 %v41_v15, %v40_v14  ;;  %v86_v19 = vpack.c.bf16 %v43_v17, %v42_v16 }
   0xb   :  { %82 = vst [vmem:[%s136_s3] sm:$0xff] %v81_v18   ;;  %88 = vst [vmem:[%s136_s3 + $0x8] sm:$0xff] %v86_v19  }

// kernel: tile.44
= control target key start
LH: loop header
LB: loop body
LE: loop exit
PB: predicated region body
PF: predicated region fallthrough
CT: control target
= control target key end

     0   :  { %s22_s0 = inlined_call_operand.vmem [shape: f32[64], index: 0, kind: input, shape index: {}]   ;;  %s23_s1 = inlined_call_operand.vmem [shape: f32[2,64], index: 1, kind: output, shape index: {}]  }
   0x1   :  { %v4_v0 = vld [vmem:[%s22_s0] ss:$0 sm:$0xff] }
   0x2   :  { %5 = vst [vmem:[%s23_s1] sm:$0x3] %v4_v0 }

// kernel: tile.45
= control target key start
LH: loop header
LB: loop body
LE: loop exit
PB: predicated region body
PF: predicated region fallthrough
CT: control target
= control target key end

     0   :  { %vm7_vm0 = vcmask 523264   ;;  %vm13_vm1 = vcmask 1048064   ;;  %s39_s0 = inlined_call_operand.vmem [shape: f32[2,64], index: 0, kind: input, shape index: {}]   ;;  %s40_s1 = inlined_call_operand.vmem [shape: f32[1,128], index: 1, kind: output, shape index: {}]  }
   0x1   :  { %v4_v0 = vld [vmem:[%s39_s0] sm:$0x3]  ;;  %s22_s0 = smov 64  }
   0x2   :  { %5 = vst [vmem:[#allocation1] sm:$0x3] %v4_v0 }
   0x9   :  { %v10_v1 = vld [vmem:[#allocation1 + $0x1] sm:$0x1]   ;;  %v6_v2 = vld [vmem:[#allocation1] sm:$0x1]  }
   0xa   :  { %11 = vrot.lane.b32.xlu0 %v10_v1, %s22_s0  ;;  %8 = vst.msk [vmem:[#allocation0] sm:$0x1] %vm7_vm0, %v6_v2  }
  0x7c   :  { %v12_v3 = vpop.permute.xlu0 %11  }
  0x7d   :  { %14 = vst.msk [vmem:[#allocation0] sm:$0x1] %vm13_vm1, %v12_v3  }
  0x84   :  { %v18_v4 = vld [vmem:[#allocation0] sm:$0x1] }
  0x85   :  { %20 = vst [vmem:[%s40_s1] sm:$0x1] %v18_v4 }

// kernel: dcgan28_generator.18
= control target key start
LH: loop header
LB: loop body
LE: loop exit
PB: predicated region body
PF: predicated region fallthrough
CT: control target
= control target key end

     0   :  { %v73_v0 = vmov 0.0   ;;  %s131_s1 = inlined_call_operand.vmem [shape: f32[1,128], index: 1, kind: output, shape index: {0}]   ;;  %s132_s2 = inlined_call_operand.vmem [shape: f32[1,128], index: 2, kind: output, shape index: {1}]   ;;  %s133_s0 = inlined_call_operand.vmem [shape: f32[64,128], index: 0, kind: input, shape index: {}]  }
   0x1   :  { %14 = vst [vmem:[%s131_s1] sm:$0x1] %v73_v0  ;;  %15 = vst [vmem:[%s132_s2] sm:$0x1] %v73_v0  ;;  %v16_v1 = vld [vmem:[%s133_s0] sm:$0xff]  ;;  %v17_v2 = vld [vmem:[%s133_s0 + $0x8] sm:$0xff] }
   0x2   :  { %v18_v3 = vld [vmem:[%s133_s0 + $0x10] sm:$0xff]  ;;  %v19_v4 = vld [vmem:[%s133_s0 + $0x18] sm:$0xff]  ;;  %v25_v5 = vadd.f32 %v17_v2, %v16_v1  ;;  %v41_v6 = vmul.f32 %v16_v1, %v16_v1  ;;  %v42_v7 = vmul.f32 %v17_v2, %v17_v2  ;;  %v20_v9 = vld [vmem:[%s133_s0 + $0x20] sm:$0xff] }
   0x3   :  { %v43_v8 = vmul.f32 %v18_v3, %v18_v3  ;;  %v44_v11 = vmul.f32 %v19_v4, %v19_v4  ;;  %v21_v13 = vld [vmem:[%s133_s0 + $0x28] sm:$0xff]  ;;  %v45_v15 = vmul.f32 %v20_v9, %v20_v9  ;;  %v22_v17 = vld [vmem:[%s133_s0 + $0x30] sm:$0xff]  ;;  %v23_v21 = vld [vmem:[%s133_s0 + $0x38] sm:$0xff] }
   0x4   :  { %v26_v10 = vadd.f32 %v25_v5, %v18_v3  ;;  %v49_v12 = vadd.f32 %v42_v7, %v41_v6  ;;  %v46_v19 = vmul.f32 %v21_v13, %v21_v13  ;;  %v47_v23 = vmul.f32 %v22_v17, %v22_v17 }
   0x5   :  { %v48_v26 = vmul.f32 %v23_v21, %v23_v21 }
   0x6   :  { %v27_v14 = vadd.f32 %v26_v10, %v19_v4  ;;  %v50_v16 = vadd.f32 %v49_v12, %v43_v8 }
   0x8   :  { %v28_v18 = vadd.f32 %v27_v14, %v20_v9  ;;  %v51_v20 = vadd.f32 %v50_v16, %v44_v11  ;;  %v24_v40 = vld [vmem:[%s131_s1] sm:$0x1] }
   0x9   :  { %v40_v43 = vld [vmem:[%s132_s2] sm:$0x1] }
   0xa   :  { %v29_v22 = vadd.f32 %v28_v18, %v21_v13  ;;  %v52_v24 = vadd.f32 %v51_v20, %v45_v15 }
   0xc   :  { %v30_v25 = vadd.f32 %v29_v22, %v22_v17  ;;  %v53_v27 = vadd.f32 %v52_v24, %v46_v19 }
   0xe   :  { %v31_v28 = vadd.f32 %v30_v25, %v23_v21  ;;  %v54_v29 = vadd.f32 %v53_v27, %v47_v23 }
  0x10   :  { %v32_v30 = vrot.slane %v31_v28, 4  ;;  %v55_v31 = vadd.f32 %v54_v29, %v48_v26 }
  0x12   :  { %v33_v32 = vadd.f32 %v32_v30, %v31_v28  ;;  %v56_v33 = vrot.slane %v55_v31, 4 }
  0x14   :  { %v34_v34 = vrot.slane %v33_v32, 2  ;;  %v57_v35 = vadd.f32 %v56_v33, %v55_v31 }
  0x16   :  { %v35_v36 = vadd.f32 %v34_v34, %v33_v32  ;;  %v58_v37 = vrot.slane %v57_v35, 2 }
  0x18   :  { %v36_v38 = vrot.slane %v35_v36, 1  ;;  %v59_v39 = vadd.f32 %v58_v37, %v57_v35 }
  0x1a   :  { %v37_v41 = vadd.f32 %v36_v38, %v35_v36  ;;  %v60_v42 = vrot.slane %v59_v39, 1 }
  0x1c   :  { %v38_v44 = vadd.f32 %v37_v41, %v24_v40  ;;  %v61_v45 = vadd.f32 %v60_v42, %v59_v39 }
  0x1e   :  { %39 = vst [vmem:[%s131_s1] sm:$0x1] %v38_v44  ;;  %v62_v46 = vadd.f32 %v61_v45, %v40_v43 }
  0x20   :  { %63 = vst [vmem:[%s132_s2] sm:$0x1] %v62_v46 }

// kernel: dcgan28_generator.20
= control target key start
LH: loop header
LB: loop body
LE: loop exit
PB: predicated region body
PF: predicated region fallthrough
CT: control target
= control target key end

     0   :  { %v556_v1 = vmov 0   ;;  %vm164_vm0 = vcmask 523264   ;;  %s868_s1 = inlined_call_operand.vmem [shape: bf16[64,512], index: 1, kind: input, shape index: {}]   ;;  %s869_s0 = inlined_call_operand.vmem [shape: bf16[128,64], index: 0, kind: input, shape index: {}]   ;;  %s870_s2 = inlined_call_operand.vmem [shape: f32[128,512], index: 2, kind: output, shape index: {}]  }
   0x1   :  { %v524_v0 = vld [vmem:[%s868_s1 + $0x4] ss:$16 sps:$4 sm:$0xff]   ;;  %221 = vmatprep.mubr.bf16.mxu0 %v556_v1  ;;  %334 = vmatprep.mubr.bf16.mxu1 %v556_v1  ;;  %v526_v2 = vld [vmem:[%s868_s1 + $0xc] ss:$16 sps:$4 sm:$0xff]   ;;  %v528_v3 = vld [vmem:[%s868_s1] ss:$16 sps:$4 sm:$0xff]  }
   0x2   :  { %189 = vmatprep.subr.bf16.mxu0 %v524_v0  ;;  %v529_v4 = vld [vmem:[%s868_s1 + $0x8] ss:$16 sps:$4 sm:$0xff]   ;;  %302 = vmatprep.subr.bf16.mxu1 %v526_v2  ;;  %v530_v5 = vld [vmem:[%s868_s1 + $0x24] ss:$16 sps:$4 sm:$0xff]   ;;  %v532_v6 = vld [vmem:[%s868_s1 + $0x2c] ss:$16 sps:$4 sm:$0xff]  }
   0x3   :  { %190 = vmatpush1.bf16.msra.mxu0 %v528_v3  ;;  %303 = vmatpush1.bf16.msra.mxu1 %v529_v4  ;;  %v534_v7 = vld [vmem:[%s868_s1 + $0x20] ss:$16 sps:$4 sm:$0xff]   ;;  %v535_v8 = vld [vmem:[%s868_s1 + $0x28] ss:$16 sps:$4 sm:$0xff]   ;;  %v536_v9 = vld [vmem:[%s868_s1 + $0x44] ss:$16 sps:$4 sm:$0xff]  }
   0x4   :  { %191 = vmatprep.subr.bf16.mxu0 %v530_v5  ;;  %304 = vmatprep.subr.bf16.mxu1 %v532_v6  ;;  %v538_v10 = vld [vmem:[%s868_s1 + $0x4c] ss:$16 sps:$4 sm:$0xff]   ;;  %v540_v11 = vld [vmem:[%s868_s1 + $0x40] ss:$16 sps:$4 sm:$0xff]   ;;  %v541_v12 = vld [vmem:[%s868_s1 + $0x48] ss:$16 sps:$4 sm:$0xff]  }
   0x5   :  { %v542_v13 = vld [vmem:[%s868_s1 + $0x64] ss:$16 sps:$4 sm:$0xff]   ;;  %v544_v14 = vld [vmem:[%s868_s1 + $0x6c] ss:$16 sps:$4 sm:$0xff]   ;;  %v546_v15 = vld [vmem:[%s868_s1 + $0x60] ss:$16 sps:$4 sm:$0xff]  }
   0x6   :  { %v547_v16 = vld [vmem:[%s868_s1 + $0x68] ss:$16 sps:$4 sm:$0xff]   ;;  %v548_v17 = vld [vmem:[%s869_s0] sm:$0xff]   ;;  %v550_v19 = vld [vmem:[%s869_s0 + $0x10] sm:$0xff]  }
   0x7   :  { %192 = vmatpush1.bf16.msra.mxu0 %v534_v7  ;;  %305 = vmatpush1.bf16.msra.mxu1 %v535_v8  ;;  %v549_v18 = vld [vmem:[%s869_s0 + $0x8] sm:$0xff]   ;;  %v551_v20 = vld [vmem:[%s869_s0 + $0x18] sm:$0xff]   ;;  %v552_v21 = vld [vmem:[%s869_s0 + $0x20] sm:$0xff]  }
   0x8   :  { %193 = vmatprep.subr.bf16.mxu0 %v536_v9  ;;  %306 = vmatprep.subr.bf16.mxu1 %v538_v10  ;;  %v553_v22 = vld [vmem:[%s869_s0 + $0x28] sm:$0xff]   ;;  %v554_v23 = vld [vmem:[%s869_s0 + $0x30] sm:$0xff]   ;;  %v555_v24 = vld [vmem:[%s869_s0 + $0x38] sm:$0xff]  }
   0xb   :  { %194 = vmatpush1.bf16.msra.mxu0 %v540_v11  ;;  %307 = vmatpush1.bf16.msra.mxu1 %v541_v12 }
   0xc   :  { %195 = vmatprep.subr.bf16.mxu0 %v542_v13  ;;  %308 = vmatprep.subr.bf16.mxu1 %v544_v14 }
   0xf   :  { %196 = vmatpush1.bf16.msra.mxu0 %v546_v15  ;;  %309 = vmatpush1.bf16.msra.mxu1 %v547_v16 }
  0x12   :  { %507 = vmatmul.mubr.msk.bf16.vlgmr.msra.gmra.mrb[0].mxu0 %vm164_vm0, %v548_v17  ;;  %515 = vmatmul.mubr.msk.bf16.vlgmr.msra.gmra.mrb[0].mxu1 %vm164_vm0, %v548_v17 }
  0x13   :  { %231 = vmatprep.mubr.bf16.mxu0 %v556_v1  ;;  %344 = vmatprep.mubr.bf16.mxu1 %v556_v1 }
  0x1a   :  { %508 = vmatmul.mubr.msk.bf16.gmra.mrb[4].mxu0 %vm164_vm0, %v549_v18  ;;  %516 = vmatmul.mubr.msk.bf16.gmra.mrb[4].mxu1 %vm164_vm0, %v549_v18 }
  0x1b   :  { %241 = vmatprep.mubr.bf16.mxu0 %v556_v1  ;;  %354 = vmatprep.mubr.bf16.mxu1 %v556_v1 }
  0x22   :  { %509 = vmatmul.mubr.msk.bf16.gmra.mrb[8].mxu0 %vm164_vm0, %v550_v19  ;;  %517 = vmatmul.mubr.msk.bf16.gmra.mrb[8].mxu1 %vm164_vm0, %v550_v19 }
  0x23   :  { %251 = vmatprep.mubr.bf16.mxu0 %v556_v1  ;;  %364 = vmatprep.mubr.bf16.mxu1 %v556_v1 }
  0x2a   :  { %510 = vmatmul.mubr.msk.bf16.gmra.mrb[12].mxu0 %vm164_vm0, %v551_v20  ;;  %518 = vmatmul.mubr.msk.bf16.gmra.mrb[12].mxu1 %vm164_vm0, %v551_v20 }
  0x2b   :  { %261 = vmatprep.mubr.bf16.mxu0 %v556_v1  ;;  %374 = vmatprep.mubr.bf16.mxu1 %v556_v1 }
  0x32   :  { %511 = vmatmul.mubr.msk.bf16.gmra.mrb[16].mxu0 %vm164_vm0, %v552_v21  ;;  %519 = vmatmul.mubr.msk.bf16.gmra.mrb[16].mxu1 %vm164_vm0, %v552_v21 }
  0x33   :  { %271 = vmatprep.mubr.bf16.mxu0 %v556_v1  ;;  %384 = vmatprep.mubr.bf16.mxu1 %v556_v1 }
  0x3a   :  { %512 = vmatmul.mubr.msk.bf16.gmra.mrb[20].mxu0 %vm164_vm0, %v553_v22  ;;  %520 = vmatmul.mubr.msk.bf16.gmra.mrb[20].mxu1 %vm164_vm0, %v553_v22 }
  0x3b   :  { %281 = vmatprep.mubr.bf16.mxu0 %v556_v1  ;;  %394 = vmatprep.mubr.bf16.mxu1 %v556_v1 }
  0x42   :  { %513 = vmatmul.mubr.msk.bf16.gmra.mrb[24].mxu0 %vm164_vm0, %v554_v23  ;;  %521 = vmatmul.mubr.msk.bf16.gmra.mrb[24].mxu1 %vm164_vm0, %v554_v23 }
  0x43   :  { %291 = vmatprep.mubr.bf16.mxu0 %v556_v1  ;;  %404 = vmatprep.mubr.bf16.mxu1 %v556_v1 }
  0x4a   :  { %514 = vmatmul.mubr.msk.bf16.gmra.mrb[28].mxu0 %vm164_vm0, %v555_v24  ;;  %522 = vmatmul.mubr.msk.bf16.gmra.mrb[28].mxu1 %vm164_vm0, %v555_v24 }
  0xe5   :  { %v223_v25 = vpop.f32.mrb[0].mxu0  ;;  %v336_v26 = vpop.f32.mrb[0].mxu1 }
  0xe6   :  { %415 = vst [vmem:[%s870_s2] sm:$0xff] %v223_v25  ;;  %417 = vst [vmem:[%s870_s2 + $0x10] sm:$0xff] %v336_v26  ;;  %v225_v27 = vpop.f32.mrb[1].mxu0  ;;  %v338_v28 = vpop.f32.mrb[1].mxu1 }
  0xe7   :  { %416 = vst [vmem:[%s870_s2 + $0x8] sm:$0xff] %v225_v27  ;;  %418 = vst [vmem:[%s870_s2 + $0x18] sm:$0xff] %v338_v28  ;;  %v227_v29 = vpop.f32.mrb[2].mxu0  ;;  %v340_v30 = vpop.f32.mrb[2].mxu1 }
  0xe8   :  { %419 = vst [vmem:[%s870_s2 + $0x20] sm:$0xff] %v227_v29  ;;  %421 = vst [vmem:[%s870_s2 + $0x30] sm:$0xff] %v340_v30  ;;  %v229_v31 = vpop.f32.mrb[3].mxu0  ;;  %v342_v32 = vpop.f32.mrb[3].mxu1 }
  0xe9   :  { %420 = vst [vmem:[%s870_s2 + $0x28] sm:$0xff] %v229_v31  ;;  %422 = vst [vmem:[%s870_s2 + $0x38] sm:$0xff] %v342_v32 }
  0xed   :  { %v233_v33 = vpop.f32.mrb[4].mxu0  ;;  %v346_v34 = vpop.f32.mrb[4].mxu1 }
  0xee   :  { %423 = vst [vmem:[%s870_s2 + $0x40] sm:$0xff] %v233_v33  ;;  %425 = vst [vmem:[%s870_s2 + $0x50] sm:$0xff] %v346_v34  ;;  %v235_v35 = vpop.f32.mrb[5].mxu0  ;;  %v348_v36 = vpop.f32.mrb[5].mxu1 }
  0xef   :  { %424 = vst [vmem:[%s870_s2 + $0x48] sm:$0xff] %v235_v35  ;;  %426 = vst [vmem:[%s870_s2 + $0x58] sm:$0xff] %v348_v36  ;;  %v237_v37 = vpop.f32.mrb[6].mxu0  ;;  %v350_v38 = vpop.f32.mrb[6].mxu1 }
  0xf0   :  { %427 = vst [vmem:[%s870_s2 + $0x60] sm:$0xff] %v237_v37  ;;  %429 = vst [vmem:[%s870_s2 + $0x70] sm:$0xff] %v350_v38  ;;  %v239_v39 = vpop.f32.mrb[7].mxu0  ;;  %v352_v40 = vpop.f32.mrb[7].mxu1 }
  0xf1   :  { %428 = vst [vmem:[%s870_s2 + $0x68] sm:$0xff] %v239_v39  ;;  %430 = vst [vmem:[%s870_s2 + $0x78] sm:$0xff] %v352_v40 }
  0xf5   :  { %v243_v41 = vpop.f32.mrb[8].mxu0  ;;  %v356_v42 = vpop.f32.mrb[8].mxu1 }
  0xf6   :  { %431 = vst [vmem:[%s870_s2 + $0x80] sm:$0xff] %v243_v41  ;;  %433 = vst [vmem:[%s870_s2 + $0x90] sm:$0xff] %v356_v42  ;;  %v245_v43 = vpop.f32.mrb[9].mxu0  ;;  %v358_v44 = vpop.f32.mrb[9].mxu1 }
  0xf7   :  { %432 = vst [vmem:[%s870_s2 + $0x88] sm:$0xff] %v245_v43  ;;  %434 = vst [vmem:[%s870_s2 + $0x98] sm:$0xff] %v358_v44  ;;  %v247_v45 = vpop.f32.mrb[10].mxu0  ;;  %v360_v46 = vpop.f32.mrb[10].mxu1 }
  0xf8   :  { %435 = vst [vmem:[%s870_s2 + $0xa0] sm:$0xff] %v247_v45  ;;  %437 = vst [vmem:[%s870_s2 + $0xb0] sm:$0xff] %v360_v46  ;;  %v249_v47 = vpop.f32.mrb[11].mxu0  ;;  %v362_v48 = vpop.f32.mrb[11].mxu1 }
  0xf9   :  { %436 = vst [vmem:[%s870_s2 + $0xa8] sm:$0xff] %v249_v47  ;;  %438 = vst [vmem:[%s870_s2 + $0xb8] sm:$0xff] %v362_v48 }
  0xfd   :  { %v253_v49 = vpop.f32.mrb[12].mxu0  ;;  %v366_v50 = vpop.f32.mrb[12].mxu1 }
  0xfe   :  { %439 = vst [vmem:[%s870_s2 + $0xc0] sm:$0xff] %v253_v49  ;;  %441 = vst [vmem:[%s870_s2 + $0xd0] sm:$0xff] %v366_v50  ;;  %v255_v51 = vpop.f32.mrb[13].mxu0  ;;  %v368_v52 = vpop.f32.mrb[13].mxu1 }
  0xff   :  { %440 = vst [vmem:[%s870_s2 + $0xc8] sm:$0xff] %v255_v51  ;;  %442 = vst [vmem:[%s870_s2 + $0xd8] sm:$0xff] %v368_v52  ;;  %v257_v53 = vpop.f32.mrb[14].mxu0  ;;  %v370_v54 = vpop.f32.mrb[14].mxu1 }
 0x100   :  { %443 = vst [vmem:[%s870_s2 + $0xe0] sm:$0xff] %v257_v53  ;;  %445 = vst [vmem:[%s870_s2 + $0xf0] sm:$0xff] %v370_v54  ;;  %v259_v55 = vpop.f32.mrb[15].mxu0  ;;  %v372_v56 = vpop.f32.mrb[15].mxu1 }
 0x101   :  { %444 = vst [vmem:[%s870_s2 + $0xe8] sm:$0xff] %v259_v55  ;;  %446 = vst [vmem:[%s870_s2 + $0xf8] sm:$0xff] %v372_v56 }
 0x105   :  { %v263_v57 = vpop.f32.mrb[16].mxu0  ;;  %v376_v58 = vpop.f32.mrb[16].mxu1 }
 0x106   :  { %447 = vst [vmem:[%s870_s2 + $0x100] sm:$0xff] %v263_v57  ;;  %449 = vst [vmem:[%s870_s2 + $0x110] sm:$0xff] %v376_v58  ;;  %v265_v59 = vpop.f32.mrb[17].mxu0  ;;  %v378_v60 = vpop.f32.mrb[17].mxu1 }
 0x107   :  { %448 = vst [vmem:[%s870_s2 + $0x108] sm:$0xff] %v265_v59  ;;  %450 = vst [vmem:[%s870_s2 + $0x118] sm:$0xff] %v378_v60  ;;  %v267_v61 = vpop.f32.mrb[18].mxu0  ;;  %v380_v62 = vpop.f32.mrb[18].mxu1 }
 0x108   :  { %451 = vst [vmem:[%s870_s2 + $0x120] sm:$0xff] %v267_v61  ;;  %453 = vst [vmem:[%s870_s2 + $0x130] sm:$0xff] %v380_v62  ;;  %v269_v63 = vpop.f32.mrb[19].mxu0  ;;  %v382_v0 = vpop.f32.mrb[19].mxu1 }
 0x109   :  { %452 = vst [vmem:[%s870_s2 + $0x128] sm:$0xff] %v269_v63  ;;  %454 = vst [vmem:[%s870_s2 + $0x138] sm:$0xff] %v382_v0 }
 0x10d   :  { %v273_v1 = vpop.f32.mrb[20].mxu0  ;;  %v386_v2 = vpop.f32.mrb[20].mxu1 }
 0x10e   :  { %455 = vst [vmem:[%s870_s2 + $0x140] sm:$0xff] %v273_v1  ;;  %457 = vst [vmem:[%s870_s2 + $0x150] sm:$0xff] %v386_v2  ;;  %v275_v3 = vpop.f32.mrb[21].mxu0  ;;  %v388_v4 = vpop.f32.mrb[21].mxu1 }
 0x10f   :  { %456 = vst [vmem:[%s870_s2 + $0x148] sm:$0xff] %v275_v3  ;;  %458 = vst [vmem:[%s870_s2 + $0x158] sm:$0xff] %v388_v4  ;;  %v277_v5 = vpop.f32.mrb[22].mxu0  ;;  %v390_v6 = vpop.f32.mrb[22].mxu1 }
 0x110   :  { %459 = vst [vmem:[%s870_s2 + $0x160] sm:$0xff] %v277_v5  ;;  %461 = vst [vmem:[%s870_s2 + $0x170] sm:$0xff] %v390_v6  ;;  %v279_v7 = vpop.f32.mrb[23].mxu0  ;;  %v392_v8 = vpop.f32.mrb[23].mxu1 }
 0x111   :  { %460 = vst [vmem:[%s870_s2 + $0x168] sm:$0xff] %v279_v7  ;;  %462 = vst [vmem:[%s870_s2 + $0x178] sm:$0xff] %v392_v8 }
 0x115   :  { %v283_v9 = vpop.f32.mrb[24].mxu0  ;;  %v396_v10 = vpop.f32.mrb[24].mxu1 }
 0x116   :  { %463 = vst [vmem:[%s870_s2 + $0x180] sm:$0xff] %v283_v9  ;;  %465 = vst [vmem:[%s870_s2 + $0x190] sm:$0xff] %v396_v10  ;;  %v285_v11 = vpop.f32.mrb[25].mxu0  ;;  %v398_v12 = vpop.f32.mrb[25].mxu1 }
 0x117   :  { %464 = vst [vmem:[%s870_s2 + $0x188] sm:$0xff] %v285_v11  ;;  %466 = vst [vmem:[%s870_s2 + $0x198] sm:$0xff] %v398_v12  ;;  %v287_v13 = vpop.f32.mrb[26].mxu0  ;;  %v400_v14 = vpop.f32.mrb[26].mxu1 }
 0x118   :  { %467 = vst [vmem:[%s870_s2 + $0x1a0] sm:$0xff] %v287_v13  ;;  %469 = vst [vmem:[%s870_s2 + $0x1b0] sm:$0xff] %v400_v14  ;;  %v289_v15 = vpop.f32.mrb[27].mxu0  ;;  %v402_v16 = vpop.f32.mrb[27].mxu1 }
 0x119   :  { %468 = vst [vmem:[%s870_s2 + $0x1a8] sm:$0xff] %v289_v15  ;;  %470 = vst [vmem:[%s870_s2 + $0x1b8] sm:$0xff] %v402_v16 }
 0x11d   :  { %v293_v17 = vpop.f32.mrb[28].mxu0  ;;  %v406_v18 = vpop.f32.mrb[28].mxu1 }
 0x11e   :  { %471 = vst [vmem:[%s870_s2 + $0x1c0] sm:$0xff] %v293_v17  ;;  %473 = vst [vmem:[%s870_s2 + $0x1d0] sm:$0xff] %v406_v18  ;;  %v295_v19 = vpop.f32.mrb[29].mxu0  ;;  %v408_v20 = vpop.f32.mrb[29].mxu1 }
 0x11f   :  { %472 = vst [vmem:[%s870_s2 + $0x1c8] sm:$0xff] %v295_v19  ;;  %474 = vst [vmem:[%s870_s2 + $0x1d8] sm:$0xff] %v408_v20  ;;  %v297_v21 = vpop.f32.mrb[30].mxu0  ;;  %v410_v22 = vpop.f32.mrb[30].mxu1 }
 0x120   :  { %475 = vst [vmem:[%s870_s2 + $0x1e0] sm:$0xff] %v297_v21  ;;  %477 = vst [vmem:[%s870_s2 + $0x1f0] sm:$0xff] %v410_v22  ;;  %v299_v23 = vpop.f32.mrb[31].mxu0  ;;  %v412_v24 = vpop.f32.mrb[31].mxu1 }
 0x121   :  { %476 = vst [vmem:[%s870_s2 + $0x1e8] sm:$0xff] %v299_v23  ;;  %478 = vst [vmem:[%s870_s2 + $0x1f8] sm:$0xff] %v412_v24 }

// kernel: dcgan28_generator.19
= control target key start
LH: loop header
LB: loop body
LE: loop exit
PB: predicated region body
PF: predicated region fallthrough
CT: control target
= control target key end

     0   :  { %s207_s0 = inlined_call_operand.vmem [shape: f32[64,128], index: 0, kind: input, shape index: {}]   ;;  %s208_s1 = inlined_call_operand.vmem [shape: f32[1,128], index: 1, kind: input, shape index: {}]   ;;  %s209_s2 = inlined_call_operand.vmem [shape: f32[1,128], index: 2, kind: input, shape index: {}]   ;;  %s210_s3 = inlined_call_operand.vmem [shape: bf16[64,128], index: 3, kind: output, shape index: {}]  }
   0x1   :  { %v14_v0 = vld [vmem:[%s207_s0] sm:$0xff]  ;;  %v15_v1 = vld [vmem:[%s207_s0 + $0x8] sm:$0xff]  ;;  %v16_v6 = vld [vmem:[%s207_s0 + $0x10] sm:$0xff] }
   0x2   :  { %v104_v2 = vld [vmem:[%s208_s1] ss:$0 sm:$0xff]  ;;  %v17_v7 = vld [vmem:[%s207_s0 + $0x18] sm:$0xff]  ;;  %v19_v11 = vld [vmem:[%s207_s0 + $0x28] sm:$0xff] }
   0x3   :  { %v29_v3 = vmul.f32 %v104_v2, %v14_v0  ;;  %v30_v4 = vmul.f32 %v104_v2, %v15_v1  ;;  %v105_v5 = vld [vmem:[%s209_s2] ss:$0 sm:$0xff]  ;;  %v31_v8 = vmul.f32 %v104_v2, %v16_v6  ;;  %v32_v9 = vmul.f32 %v104_v2, %v17_v7  ;;  %v20_v12 = vld [vmem:[%s207_s0 + $0x30] sm:$0xff]  ;;  %v21_v17 = vld [vmem:[%s207_s0 + $0x38] sm:$0xff] }
   0x4   :  { %v18_v10 = vld [vmem:[%s207_s0 + $0x20] sm:$0xff]  ;;  %v34_v16 = vmul.f32 %v104_v2, %v19_v11  ;;  %v35_v20 = vmul.f32 %v104_v2, %v20_v12  ;;  %v36_v21 = vmul.f32 %v104_v2, %v21_v17 }
   0x5   :  { %v44_v13 = vadd.f32 %v105_v5, %v29_v3  ;;  %v45_v14 = vadd.f32 %v105_v5, %v30_v4  ;;  %v33_v15 = vmul.f32 %v104_v2, %v18_v10  ;;  %v46_v18 = vadd.f32 %v105_v5, %v31_v8 }
   0x6   :  { %v47_v19 = vadd.f32 %v105_v5, %v32_v9  ;;  %v49_v25 = vadd.f32 %v105_v5, %v34_v16  ;;  %v50_v28 = vadd.f32 %v105_v5, %v35_v20  ;;  %v51_v29 = vadd.f32 %v105_v5, %v36_v21 }
   0x7   :  { %v52_v22 = vmax.f32 %v44_v13, 0.0  ;;  %v53_v23 = vmax.f32 %v45_v14, 0.0  ;;  %v48_v24 = vadd.f32 %v105_v5, %v33_v15  ;;  %v54_v26 = vmax.f32 %v46_v18, 0.0 }
   0x8   :  { %v55_v27 = vmax.f32 %v47_v19, 0.0  ;;  %v57_v32 = vmax.f32 %v49_v25, 0.0  ;;  %v58_v34 = vmax.f32 %v50_v28, 0.0  ;;  %v59_v35 = vmax.f32 %v51_v29, 0.0 }
   0x9   :  { %v125_v30 = vpack.c.bf16 %v53_v23, %v52_v22  ;;  %v56_v31 = vmax.f32 %v48_v24, 0.0 }
   0xa   :  { %v130_v33 = vpack.c.bf16 %v55_v27, %v54_v26  ;;  %v140_v37 = vpack.c.bf16 %v59_v35, %v58_v34 }
   0xb   :  { %126 = vst [vmem:[%s210_s3] sm:$0xff] %v125_v30   ;;  %v135_v36 = vpack.c.bf16 %v57_v32, %v56_v31 }
   0xc   :  { %142 = vst [vmem:[%s210_s3 + $0x8] sm:$0xff] %v130_v33   ;;  %144 = vst [vmem:[%s210_s3 + $0x18] sm:$0xff] %v140_v37  }
   0xd   :  { %143 = vst [vmem:[%s210_s3 + $0x10] sm:$0xff] %v135_v36  }

// kernel: dcgan28_generator.21
= control target key start
LH: loop header
LB: loop body
LE: loop exit
PB: predicated region body
PF: predicated region fallthrough
CT: control target
= control target key end

     0   :  { %v93_v0 = vmov 0.0   ;;  %s166_s1 = inlined_call_operand.vmem [shape: f32[1,128], index: 1, kind: output, shape index: {0}]   ;;  %s167_s2 = inlined_call_operand.vmem [shape: f32[1,128], index: 2, kind: output, shape index: {1}]   ;;  %s168_s0 = inlined_call_operand.vmem [shape: f32[104,128], index: 0, kind: input, shape index: {}]  }
   0x1   :  { %14 = vst [vmem:[%s166_s1] sm:$0x1] %v93_v0  ;;  %15 = vst [vmem:[%s167_s2] sm:$0x1] %v93_v0  ;;  %v16_v1 = vld [vmem:[%s168_s0] sm:$0xff]  ;;  %v17_v2 = vld [vmem:[%s168_s0 + $0x8] sm:$0xff] }
   0x2   :  { %v18_v3 = vld [vmem:[%s168_s0 + $0x10] sm:$0xff]  ;;  %v19_v4 = vld [vmem:[%s168_s0 + $0x18] sm:$0xff]  ;;  %v30_v5 = vadd.f32 %v17_v2, %v16_v1  ;;  %v51_v6 = vmul.f32 %v16_v1, %v16_v1  ;;  %v52_v7 = vmul.f32 %v17_v2, %v17_v2  ;;  %v20_v9 = vld [vmem:[%s168_s0 + $0x20] sm:$0xff] }
   0x3   :  { %v53_v8 = vmul.f32 %v18_v3, %v18_v3  ;;  %v54_v11 = vmul.f32 %v19_v4, %v19_v4  ;;  %v21_v13 = vld [vmem:[%s168_s0 + $0x28] sm:$0xff]  ;;  %v55_v15 = vmul.f32 %v20_v9, %v20_v9  ;;  %v22_v17 = vld [vmem:[%s168_s0 + $0x30] sm:$0xff]  ;;  %v23_v21 = vld [vmem:[%s168_s0 + $0x38] sm:$0xff] }
   0x4   :  { %v31_v10 = vadd.f32 %v30_v5, %v18_v3  ;;  %v64_v12 = vadd.f32 %v52_v7, %v51_v6  ;;  %v56_v19 = vmul.f32 %v21_v13, %v21_v13  ;;  %v57_v23 = vmul.f32 %v22_v17, %v22_v17  ;;  %v24_v25 = vld [vmem:[%s168_s0 + $0x40] sm:$0xff]  ;;  %v25_v29 = vld [vmem:[%s168_s0 + $0x48] sm:$0xff]  ;;  %v26_v33 = vld [vmem:[%s168_s0 + $0x50] sm:$0xff] }
   0x5   :  { %v58_v27 = vmul.f32 %v23_v21, %v23_v21  ;;  %v59_v31 = vmul.f32 %v24_v25, %v24_v25  ;;  %v60_v35 = vmul.f32 %v25_v29, %v25_v29  ;;  %v27_v37 = vld [vmem:[%s168_s0 + $0x58] sm:$0xff]  ;;  %v61_v39 = vmul.f32 %v26_v33, %v26_v33  ;;  %v28_v41 = vld [vmem:[%s168_s0 + $0x60] sm:$0xff] }
   0x6   :  { %v32_v14 = vadd.f32 %v31_v10, %v19_v4  ;;  %v65_v16 = vadd.f32 %v64_v12, %v53_v8  ;;  %v62_v43 = vmul.f32 %v27_v37, %v27_v37  ;;  %v63_v46 = vmul.f32 %v28_v41, %v28_v41 }
   0x8   :  { %v33_v18 = vadd.f32 %v32_v14, %v20_v9  ;;  %v66_v20 = vadd.f32 %v65_v16, %v54_v11  ;;  %v29_v59 = vld [vmem:[%s166_s1] sm:$0x1] }
   0x9   :  { %v50_v0 = vld [vmem:[%s167_s2] sm:$0x1] }
   0xa   :  { %v34_v22 = vadd.f32 %v33_v18, %v21_v13  ;;  %v67_v24 = vadd.f32 %v66_v20, %v55_v15 }
   0xc   :  { %v35_v26 = vadd.f32 %v34_v22, %v22_v17  ;;  %v68_v28 = vadd.f32 %v67_v24, %v56_v19 }
   0xe   :  { %v36_v30 = vadd.f32 %v35_v26, %v23_v21  ;;  %v69_v32 = vadd.f32 %v68_v28, %v57_v23 }
  0x10   :  { %v37_v34 = vadd.f32 %v36_v30, %v24_v25  ;;  %v70_v36 = vadd.f32 %v69_v32, %v58_v27 }
  0x12   :  { %v38_v38 = vadd.f32 %v37_v34, %v25_v29  ;;  %v71_v40 = vadd.f32 %v70_v36, %v59_v31 }
  0x14   :  { %v39_v42 = vadd.f32 %v38_v38, %v26_v33  ;;  %v72_v44 = vadd.f32 %v71_v40, %v60_v35 }
  0x16   :  { %v40_v45 = vadd.f32 %v39_v42, %v27_v37  ;;  %v73_v47 = vadd.f32 %v72_v44, %v61_v39 }
  0x18   :  { %v41_v48 = vadd.f32 %v40_v45, %v28_v41  ;;  %v74_v49 = vadd.f32 %v73_v47, %v62_v43 }
  0x1a   :  { %v42_v50 = vrot.slane %v41_v48, 4  ;;  %v75_v51 = vadd.f32 %v74_v49, %v63_v46 }
  0x1c   :  { %v43_v52 = vadd.f32 %v42_v50, %v41_v48  ;;  %v76_v53 = vrot.slane %v75_v51, 4 }
  0x1e   :  { %v44_v54 = vrot.slane %v43_v52, 2  ;;  %v77_v55 = vadd.f32 %v76_v53, %v75_v51 }
  0x20   :  { %v45_v56 = vadd.f32 %v44_v54, %v43_v52  ;;  %v78_v57 = vrot.slane %v77_v55, 2 }
  0x22   :  { %v46_v58 = vrot.slane %v45_v56, 1  ;;  %v79_v60 = vadd.f32 %v78_v57, %v77_v55 }
  0x24   :  { %v47_v61 = vadd.f32 %v46_v58, %v45_v56  ;;  %v80_v62 = vrot.slane %v79_v60, 1 }
  0x26   :  { %v48_v63 = vadd.f32 %v47_v61, %v29_v59  ;;  %v81_v1 = vadd.f32 %v80_v62, %v79_v60 }
  0x28   :  { %49 = vst [vmem:[%s166_s1] sm:$0x1] %v48_v63  ;;  %v82_v2 = vadd.f32 %v81_v1, %v50_v0 }
  0x2a   :  { %83 = vst [vmem:[%s167_s2] sm:$0x1] %v82_v2 }

// kernel: tile.54
= control target key start
LH: loop header
LB: loop body
LE: loop exit
PB: predicated region body
PF: predicated region fallthrough
CT: control target
= control target key end

     0   :  { %s22_s0 = inlined_call_operand.vmem [shape: f32[32], index: 0, kind: input, shape index: {}]   ;;  %s23_s1 = inlined_call_operand.vmem [shape: f32[4,32], index: 1, kind: output, shape index: {}]  }
   0x1   :  { %v4_v0 = vld [vmem:[%s22_s0] ss:$0 sm:$0xff] }
   0x2   :  { %5 = vst [vmem:[%s23_s1] sm:$0xf] %v4_v0 }

// kernel: tile.55
= control target key start
LH: loop header
LB: loop body
LE: loop exit
PB: predicated region body
PF: predicated region fallthrough
CT: control target
= control target key end

     0   :  { %vm7_vm0 = vcmask 261120   ;;  %s37_s8 = smov 32   ;;  %s38_s9 = smov 64   ;;  %vm13_vm1 = vcmask 1048320   ;;  %vm19_vm2 = vcmask 785920   ;;  %vm25_vm3 = vcmask 523520   ;;  %s55_s0 = inlined_call_operand.vmem [shape: f32[4,32], index: 0, kind: input, shape index: {}]   ;;  %s56_s1 = inlined_call_operand.vmem [shape: f32[1,128], index: 1, kind: output, shape index: {}]  }
   0x1   :  { %v4_v0 = vld [vmem:[%s55_s0] sm:$0xf]  ;;  %s36_s0 = smov 96  }
   0x2   :  { %5 = vst [vmem:[#allocation1] sm:$0xf] %v4_v0 }
   0x9   :  { %v10_v1 = vld [vmem:[#allocation1 + $0x3] sm:$0x1]   ;;  %v22_v2 = vld [vmem:[#allocation1 + $0x1] sm:$0x1]   ;;  %v6_v3 = vld [vmem:[#allocation1] sm:$0x1]  }
   0xa   :  { %11 = vrot.lane.b32.xlu0 %v10_v1, %s36_s0  ;;  %23 = vrot.lane.b32.xlu1 %v22_v2, %s37_s8  ;;  %v16_v4 = vld [vmem:[#allocation1 + $0x2] sm:$0x1]   ;;  %8 = vst.msk [vmem:[#allocation0] sm:$0x1] %vm7_vm0, %v6_v3  }
   0xe   :  { %17 = vrot.lane.b32.xlu0 %v16_v4, %s38_s9 }
  0x7c   :  { %v12_v5 = vpop.permute.xlu0 %11   ;;  %v24_v6 = vpop.permute.xlu1 %23  }
  0x7d   :  { %14 = vst.msk [vmem:[#allocation0] sm:$0x1] %vm13_vm1, %v12_v5  }
  0x80   :  { %v18_v7 = vpop.permute.xlu0 %17  }
  0x81   :  { %20 = vst.msk [vmem:[#allocation0] sm:$0x1] %vm19_vm2, %v18_v7  }
  0x82   :  { %26 = vst.msk [vmem:[#allocation0] sm:$0x1] %vm25_vm3, %v24_v6  }
  0x89   :  { %v30_v8 = vld [vmem:[#allocation0] sm:$0x1] }
  0x8a   :  { %32 = vst [vmem:[%s56_s1] sm:$0x1] %v30_v8 }

// kernel: dcgan28_generator.22
= control target key start
LH: loop header
LB: loop body
LE: loop exit
PB: predicated region body
PF: predicated region fallthrough
CT: control target
= control target key end

     0   :  { %s299_s0 = inlined_call_operand.vmem [shape: f32[104,128], index: 0, kind: input, shape index: {}]   ;;  %s300_s1 = inlined_call_operand.vmem [shape: f32[1,128], index: 1, kind: input, shape index: {}]   ;;  %s301_s2 = inlined_call_operand.vmem [shape: f32[1,128], index: 2, kind: input, shape index: {}]   ;;  %s302_s3 = inlined_call_operand.vmem [shape: bf16[104,128], index: 3, kind: output, shape index: {}]  }
   0x1   :  { %v14_v0 = vld [vmem:[%s299_s0] sm:$0xff]  ;;  %v15_v1 = vld [vmem:[%s299_s0 + $0x8] sm:$0xff]  ;;  %v16_v6 = vld [vmem:[%s299_s0 + $0x10] sm:$0xff] }
   0x2   :  { %v150_v2 = vld [vmem:[%s300_s1] ss:$0 sm:$0xff]  ;;  %v17_v7 = vld [vmem:[%s299_s0 + $0x18] sm:$0xff]  ;;  %v19_v11 = vld [vmem:[%s299_s0 + $0x28] sm:$0xff] }
   0x3   :  { %v34_v3 = vmul.f32 %v150_v2, %v14_v0  ;;  %v35_v4 = vmul.f32 %v150_v2, %v15_v1  ;;  %v151_v5 = vld [vmem:[%s301_s2] ss:$0 sm:$0xff]  ;;  %v36_v8 = vmul.f32 %v150_v2, %v16_v6  ;;  %v37_v9 = vmul.f32 %v150_v2, %v17_v7  ;;  %v20_v12 = vld [vmem:[%s299_s0 + $0x30] sm:$0xff]  ;;  %v21_v17 = vld [vmem:[%s299_s0 + $0x38] sm:$0xff] }
   0x4   :  { %v18_v10 = vld [vmem:[%s299_s0 + $0x20] sm:$0xff]  ;;  %v39_v16 = vmul.f32 %v150_v2, %v19_v11  ;;  %v40_v20 = vmul.f32 %v150_v2, %v20_v12  ;;  %v41_v21 = vmul.f32 %v150_v2, %v21_v17  ;;  %v23_v27 = vld [vmem:[%s299_s0 + $0x48] sm:$0xff]  ;;  %v24_v32 = vld [vmem:[%s299_s0 + $0x50] sm:$0xff] }
   0x5   :  { %v54_v13 = vadd.f32 %v151_v5, %v34_v3  ;;  %v55_v14 = vadd.f32 %v151_v5, %v35_v4  ;;  %v38_v15 = vmul.f32 %v150_v2, %v18_v10  ;;  %v56_v18 = vadd.f32 %v151_v5, %v36_v8  ;;  %v22_v22 = vld [vmem:[%s299_s0 + $0x40] sm:$0xff]  ;;  %v25_v33 = vld [vmem:[%s299_s0 + $0x58] sm:$0xff] }
   0x6   :  { %v57_v19 = vadd.f32 %v151_v5, %v37_v9  ;;  %v59_v26 = vadd.f32 %v151_v5, %v39_v16  ;;  %v60_v30 = vadd.f32 %v151_v5, %v40_v20  ;;  %v61_v31 = vadd.f32 %v151_v5, %v41_v21  ;;  %v26_v38 = vld [vmem:[%s299_s0 + $0x60] sm:$0xff] }
   0x7   :  { %v67_v23 = vmax.f32 %v54_v13, 0.0  ;;  %v68_v24 = vmax.f32 %v55_v14, 0.0  ;;  %v58_v25 = vadd.f32 %v151_v5, %v38_v15  ;;  %v69_v28 = vmax.f32 %v56_v18, 0.0 }
   0x8   :  { %v70_v29 = vmax.f32 %v57_v19, 0.0  ;;  %v72_v36 = vmax.f32 %v59_v26, 0.0  ;;  %v42_v37 = vmul.f32 %v150_v2, %v22_v22  ;;  %v73_v40 = vmax.f32 %v60_v30, 0.0 }
   0x9   :  { %v181_v34 = vpack.c.bf16 %v68_v24, %v67_v23  ;;  %v71_v35 = vmax.f32 %v58_v25, 0.0  ;;  %v74_v41 = vmax.f32 %v61_v31, 0.0  ;;  %v43_v42 = vmul.f32 %v150_v2, %v23_v27 }
   0xa   :  { %v186_v39 = vpack.c.bf16 %v70_v29, %v69_v28  ;;  %v62_v44 = vadd.f32 %v151_v5, %v42_v37  ;;  %v44_v45 = vmul.f32 %v150_v2, %v24_v32  ;;  %v45_v46 = vmul.f32 %v150_v2, %v25_v33 }
   0xb   :  { %182 = vst [vmem:[%s302_s3] sm:$0xff] %v181_v34   ;;  %v191_v43 = vpack.c.bf16 %v72_v36, %v71_v35  ;;  %v196_v47 = vpack.c.bf16 %v74_v41, %v73_v40  ;;  %v63_v48 = vadd.f32 %v151_v5, %v43_v42  ;;  %v46_v49 = vmul.f32 %v150_v2, %v26_v38 }
   0xc   :  { %208 = vst [vmem:[%s302_s3 + $0x8] sm:$0xff] %v186_v39   ;;  %v75_v50 = vmax.f32 %v62_v44, 0.0  ;;  %v64_v51 = vadd.f32 %v151_v5, %v44_v45  ;;  %v65_v52 = vadd.f32 %v151_v5, %v45_v46 }
   0xd   :  { %209 = vst [vmem:[%s302_s3 + $0x10] sm:$0xff] %v191_v43   ;;  %210 = vst [vmem:[%s302_s3 + $0x18] sm:$0xff] %v196_v47   ;;  %v76_v53 = vmax.f32 %v63_v48, 0.0  ;;  %v66_v54 = vadd.f32 %v151_v5, %v46_v49 }
   0xe   :  { %v77_v55 = vmax.f32 %v64_v51, 0.0  ;;  %v78_v56 = vmax.f32 %v65_v52, 0.0 }
   0xf   :  { %v201_v57 = vpack.c.bf16 %v76_v53, %v75_v50  ;;  %v79_v58 = vmax.f32 %v66_v54, 0.0 }
  0x10   :  { %v206_v59 = vpack.c.bf16 %v78_v56, %v77_v55 }
  0x11   :  { %211 = vst [vmem:[%s302_s3 + $0x20] sm:$0xff] %v201_v57   ;;  %v177_v60 = vpack.c.bf16 %v79_v58, %v79_v58 }
  0x12   :  { %212 = vst [vmem:[%s302_s3 + $0x28] sm:$0xff] %v206_v59  }
  0x13   :  { %145 = vst [vmem:[%s302_s3 + $0x30] sm:$0xf] %v177_v60 }

// kernel: dcgan28_generator.23
= control target key start
LH: loop header
LB: loop body
LE: loop exit
PB: predicated region body
PF: predicated region fallthrough
CT: control target
= control target key end

     0   :  { %v757_v1 = vmov 0   ;;  %vm208_vm0 = vcmask 261120   ;;  %s1204_s1 = inlined_call_operand.vmem [shape: bf16[32,256], index: 1, kind: input, shape index: {}]   ;;  %s1205_s0 = inlined_call_operand.vmem [shape: bf16[392,32], index: 0, kind: input, shape index: {}]   ;;  %s1206_s2 = inlined_call_operand.vmem [shape: f32[392,256], index: 2, kind: output, shape index: {}]  }
   0x1   :  { %v726_v0 = vld [vmem:[%s1204_s1 + $0x4] ss:$8 sps:$4 sm:$0xff]   ;;  %316 = vmatprep.mubr.bf16.mxu0 %v757_v1  ;;  %446 = vmatprep.mubr.bf16.mxu1 %v757_v1  ;;  %v728_v2 = vld [vmem:[%s1204_s1] ss:$8 sps:$4 sm:$0xff]   ;;  %v729_v3 = vld [vmem:[%s1204_s1 + $0x14] ss:$8 sps:$4 sm:$0xff]  }
   0x2   :  { %284 = vmatprep.subr.bf16.mxu0 %v726_v0  ;;  %721 = vmatprep.subr.bf16.mxu1 %v726_v0  ;;  %v731_v4 = vld [vmem:[%s1204_s1 + $0x10] ss:$8 sps:$4 sm:$0xff]   ;;  %v732_v5 = vld [vmem:[%s1205_s0] sm:$0xff]   ;;  %v733_v6 = vld [vmem:[%s1205_s0 + $0x68] sm:$0xff]  }
   0x3   :  { %285 = vmatpush1.bf16.msra.mxu0 %v728_v2  ;;  %723 = vmatpush1.bf16.msra.mxu1 %v728_v2  ;;  %v734_v7 = vld [vmem:[%s1205_s0 + $0x8] sm:$0xff]   ;;  %v735_v8 = vld [vmem:[%s1205_s0 + $0x70] sm:$0xff]   ;;  %v737_v10 = vld [vmem:[%s1205_s0 + $0x78] sm:$0xff]  }
   0x4   :  { %286 = vmatprep.subr.bf16.mxu0 %v729_v3  ;;  %722 = vmatprep.subr.bf16.mxu1 %v729_v3  ;;  %v736_v9 = vld [vmem:[%s1205_s0 + $0x10] sm:$0xff]   ;;  %v738_v11 = vld [vmem:[%s1205_s0 + $0x18] sm:$0xff]   ;;  %v739_v12 = vld [vmem:[%s1205_s0 + $0x80] sm:$0xff]  }
   0x5   :  { %v740_v13 = vld [vmem:[%s1205_s0 + $0x20] sm:$0xff]   ;;  %v741_v14 = vld [vmem:[%s1205_s0 + $0x88] sm:$0xff]   ;;  %v743_v16 = vld [vmem:[%s1205_s0 + $0x90] sm:$0xff]  }
   0x6   :  { %v742_v15 = vld [vmem:[%s1205_s0 + $0x28] sm:$0xff]   ;;  %v744_v17 = vld [vmem:[%s1205_s0 + $0x30] sm:$0xff]   ;;  %v745_v18 = vld [vmem:[%s1205_s0 + $0x98] sm:$0xff]  }
   0x7   :  { %287 = vmatpush1.bf16.msra.mxu0 %v731_v4  ;;  %724 = vmatpush1.bf16.msra.mxu1 %v731_v4  ;;  %v746_v19 = vld [vmem:[%s1205_s0 + $0x38] sm:$0xff]   ;;  %v747_v20 = vld [vmem:[%s1205_s0 + $0xa0] sm:$0xff]   ;;  %v749_v22 = vld [vmem:[%s1205_s0 + $0xa8] sm:$0xff]  }
   0x8   :  { %v748_v21 = vld [vmem:[%s1205_s0 + $0x40] sm:$0xff]   ;;  %v750_v23 = vld [vmem:[%s1205_s0 + $0x48] sm:$0xff]   ;;  %v751_v24 = vld [vmem:[%s1205_s0 + $0xb0] sm:$0xff]  }
   0x9   :  { %v752_v25 = vld [vmem:[%s1205_s0 + $0x50] sm:$0xff]   ;;  %v753_v26 = vld [vmem:[%s1205_s0 + $0xb8] sm:$0xff]   ;;  %v755_v28 = vld [vmem:[%s1205_s0 + $0xc0] ss:$0 sps:$4 sm:$0xff]  }
   0xa   :  { %696 = vmatmul.mubr.msk.bf16.vlgmr.msra.gmra.mrb[0].mxu0 %vm208_vm0, %v732_v5  ;;  %709 = vmatmul.mubr.msk.bf16.vlgmr.msra.gmra.mrb[0].mxu1 %vm208_vm0, %v733_v6  ;;  %v754_v27 = vld [vmem:[%s1205_s0 + $0x58] sm:$0xff]   ;;  %v756_v29 = vld [vmem:[%s1205_s0 + $0x60] sm:$0xff]  }
   0xb   :  { %326 = vmatprep.mubr.bf16.mxu0 %v757_v1  ;;  %456 = vmatprep.mubr.bf16.mxu1 %v757_v1 }
  0x12   :  { %697 = vmatmul.mubr.msk.bf16.gmra.mrb[4].mxu0 %vm208_vm0, %v734_v7  ;;  %710 = vmatmul.mubr.msk.bf16.gmra.mrb[4].mxu1 %vm208_vm0, %v735_v8 }
  0x13   :  { %336 = vmatprep.mubr.bf16.mxu0 %v757_v1  ;;  %466 = vmatprep.mubr.bf16.mxu1 %v757_v1 }
  0x1a   :  { %698 = vmatmul.mubr.msk.bf16.gmra.mrb[8].mxu0 %vm208_vm0, %v736_v9  ;;  %711 = vmatmul.mubr.msk.bf16.gmra.mrb[8].mxu1 %vm208_vm0, %v737_v10 }
  0x1b   :  { %346 = vmatprep.mubr.bf16.mxu0 %v757_v1  ;;  %476 = vmatprep.mubr.bf16.mxu1 %v757_v1 }
  0x22   :  { %699 = vmatmul.mubr.msk.bf16.gmra.mrb[12].mxu0 %vm208_vm0, %v738_v11  ;;  %712 = vmatmul.mubr.msk.bf16.gmra.mrb[12].mxu1 %vm208_vm0, %v739_v12 }
  0x23   :  { %356 = vmatprep.mubr.bf16.mxu0 %v757_v1  ;;  %486 = vmatprep.mubr.bf16.mxu1 %v757_v1 }
  0x2a   :  { %700 = vmatmul.mubr.msk.bf16.gmra.mrb[16].mxu0 %vm208_vm0, %v740_v13  ;;  %713 = vmatmul.mubr.msk.bf16.gmra.mrb[16].mxu1 %vm208_vm0, %v741_v14 }
  0x2b   :  { %366 = vmatprep.mubr.bf16.mxu0 %v757_v1  ;;  %496 = vmatprep.mubr.bf16.mxu1 %v757_v1 }
  0x32   :  { %701 = vmatmul.mubr.msk.bf16.gmra.mrb[20].mxu0 %vm208_vm0, %v742_v15  ;;  %714 = vmatmul.mubr.msk.bf16.gmra.mrb[20].mxu1 %vm208_vm0, %v743_v16 }
  0x33   :  { %376 = vmatprep.mubr.bf16.mxu0 %v757_v1  ;;  %506 = vmatprep.mubr.bf16.mxu1 %v757_v1 }
  0x3a   :  { %702 = vmatmul.mubr.msk.bf16.gmra.mrb[24].mxu0 %vm208_vm0, %v744_v17  ;;  %715 = vmatmul.mubr.msk.bf16.gmra.mrb[24].mxu1 %vm208_vm0, %v745_v18 }
  0x3b   :  { %386 = vmatprep.mubr.bf16.mxu0 %v757_v1  ;;  %516 = vmatprep.mubr.bf16.mxu1 %v757_v1 }
  0x42   :  { %703 = vmatmul.mubr.msk.bf16.gmra.mrb[28].mxu0 %vm208_vm0, %v746_v19  ;;  %716 = vmatmul.mubr.msk.bf16.gmra.mrb[28].mxu1 %vm208_vm0, %v747_v20 }
  0x43   :  { %396 = vmatprep.mubr.bf16.mxu0 %v757_v1  ;;  %526 = vmatprep.mubr.bf16.mxu1 %v757_v1 }
  0x4a   :  { %704 = vmatmul.mubr.msk.bf16.gmra.mrb[32].mxu0 %vm208_vm0, %v748_v21  ;;  %717 = vmatmul.mubr.msk.bf16.gmra.mrb[32].mxu1 %vm208_vm0, %v749_v22 }
  0x4b   :  { %406 = vmatprep.mubr.bf16.mxu0 %v757_v1  ;;  %536 = vmatprep.mubr.bf16.mxu1 %v757_v1 }
  0x52   :  { %705 = vmatmul.mubr.msk.bf16.gmra.mrb[36].mxu0 %vm208_vm0, %v750_v23  ;;  %718 = vmatmul.mubr.msk.bf16.gmra.mrb[36].mxu1 %vm208_vm0, %v751_v24 }
  0x53   :  { %416 = vmatprep.mubr.bf16.mxu0 %v757_v1  ;;  %546 = vmatprep.mubr.bf16.mxu1 %v757_v1 }
  0x5a   :  { %706 = vmatmul.mubr.msk.bf16.gmra.mrb[40].mxu0 %vm208_vm0, %v752_v25  ;;  %719 = vmatmul.mubr.msk.bf16.gmra.mrb[40].mxu1 %vm208_vm0, %v753_v26 }
  0x5b   :  { %426 = vmatprep.mubr.bf16.mxu0 %v757_v1  ;;  %556 = vmatprep.mubr.bf16.mxu1 %v757_v1 }
  0x62   :  { %707 = vmatmul.mubr.msk.bf16.gmra.mrb[44].mxu0 %vm208_vm0, %v754_v27  ;;  %720 = vmatmul.mubr.msk.bf16.gmra.mrb[44].mxu1 %vm208_vm0, %v755_v28 }
  0x63   :  { %436 = vmatprep.mubr.bf16.mxu0 %v757_v1 }
  0x6a   :  { %708 = vmatmul.mubr.msk.bf16.gmra.mrb[48].mxu0 %vm208_vm0, %v756_v29 }
  0xdd   :  { %v318_v30 = vpop.f32.mrb[0].mxu0  ;;  %v448_v31 = vpop.f32.mrb[0].mxu1 }
  0xde   :  { %565 = vst [vmem:[%s1206_s2] sm:$0xff] %v318_v30  ;;  %v320_v32 = vpop.f32.mrb[1].mxu0  ;;  %617 = vst [vmem:[%s1206_s2 + $0x1a0] sm:$0xff] %v448_v31  ;;  %v450_v33 = vpop.f32.mrb[1].mxu1 }
  0xdf   :  { %566 = vst [vmem:[%s1206_s2 + $0x8] sm:$0xff] %v320_v32  ;;  %v322_v34 = vpop.f32.mrb[2].mxu0  ;;  %618 = vst [vmem:[%s1206_s2 + $0x1a8] sm:$0xff] %v450_v33  ;;  %v452_v35 = vpop.f32.mrb[2].mxu1 }
  0xe0   :  { %567 = vst [vmem:[%s1206_s2 + $0x10] sm:$0xff] %v322_v34  ;;  %v324_v36 = vpop.f32.mrb[3].mxu0  ;;  %619 = vst [vmem:[%s1206_s2 + $0x1b0] sm:$0xff] %v452_v35  ;;  %v454_v37 = vpop.f32.mrb[3].mxu1 }
  0xe1   :  { %568 = vst [vmem:[%s1206_s2 + $0x18] sm:$0xff] %v324_v36  ;;  %620 = vst [vmem:[%s1206_s2 + $0x1b8] sm:$0xff] %v454_v37 }
  0xe5   :  { %v328_v38 = vpop.f32.mrb[4].mxu0  ;;  %v458_v39 = vpop.f32.mrb[4].mxu1 }
  0xe6   :  { %569 = vst [vmem:[%s1206_s2 + $0x20] sm:$0xff] %v328_v38  ;;  %v330_v40 = vpop.f32.mrb[5].mxu0  ;;  %621 = vst [vmem:[%s1206_s2 + $0x1c0] sm:$0xff] %v458_v39  ;;  %v460_v41 = vpop.f32.mrb[5].mxu1 }
  0xe7   :  { %570 = vst [vmem:[%s1206_s2 + $0x28] sm:$0xff] %v330_v40  ;;  %v332_v42 = vpop.f32.mrb[6].mxu0  ;;  %622 = vst [vmem:[%s1206_s2 + $0x1c8] sm:$0xff] %v460_v41  ;;  %v462_v43 = vpop.f32.mrb[6].mxu1 }
  0xe8   :  { %571 = vst [vmem:[%s1206_s2 + $0x30] sm:$0xff] %v332_v42  ;;  %v334_v44 = vpop.f32.mrb[7].mxu0  ;;  %623 = vst [vmem:[%s1206_s2 + $0x1d0] sm:$0xff] %v462_v43  ;;  %v464_v45 = vpop.f32.mrb[7].mxu1 }
  0xe9   :  { %572 = vst [vmem:[%s1206_s2 + $0x38] sm:$0xff] %v334_v44  ;;  %624 = vst [vmem:[%s1206_s2 + $0x1d8] sm:$0xff] %v464_v45 }
  0xed   :  { %v338_v46 = vpop.f32.mrb[8].mxu0  ;;  %v468_v47 = vpop.f32.mrb[8].mxu1 }
  0xee   :  { %573 = vst [vmem:[%s1206_s2 + $0x40] sm:$0xff] %v338_v46  ;;  %v340_v48 = vpop.f32.mrb[9].mxu0  ;;  %625 = vst [vmem:[%s1206_s2 + $0x1e0] sm:$0xff] %v468_v47  ;;  %v470_v49 = vpop.f32.mrb[9].mxu1 }
  0xef   :  { %574 = vst [vmem:[%s1206_s2 + $0x48] sm:$0xff] %v340_v48  ;;  %v342_v50 = vpop.f32.mrb[10].mxu0  ;;  %626 = vst [vmem:[%s1206_s2 + $0x1e8] sm:$0xff] %v470_v49  ;;  %v472_v51 = vpop.f32.mrb[10].mxu1 }
  0xf0   :  { %575 = vst [vmem:[%s1206_s2 + $0x50] sm:$0xff] %v342_v50  ;;  %v344_v52 = vpop.f32.mrb[11].mxu0  ;;  %627 = vst [vmem:[%s1206_s2 + $0x1f0] sm:$0xff] %v472_v51  ;;  %v474_v53 = vpop.f32.mrb[11].mxu1 }
  0xf1   :  { %576 = vst [vmem:[%s1206_s2 + $0x58] sm:$0xff] %v344_v52  ;;  %628 = vst [vmem:[%s1206_s2 + $0x1f8] sm:$0xff] %v474_v53 }
  0xf5   :  { %v348_v54 = vpop.f32.mrb[12].mxu0  ;;  %v478_v55 = vpop.f32.mrb[12].mxu1 }
  0xf6   :  { %577 = vst [vmem:[%s1206_s2 + $0x60] sm:$0xff] %v348_v54  ;;  %v350_v56 = vpop.f32.mrb[13].mxu0  ;;  %629 = vst [vmem:[%s1206_s2 + $0x200] sm:$0xff] %v478_v55  ;;  %v480_v57 = vpop.f32.mrb[13].mxu1 }
  0xf7   :  { %578 = vst [vmem:[%s1206_s2 + $0x68] sm:$0xff] %v350_v56  ;;  %v352_v58 = vpop.f32.mrb[14].mxu0  ;;  %630 = vst [vmem:[%s1206_s2 + $0x208] sm:$0xff] %v480_v57  ;;  %v482_v59 = vpop.f32.mrb[14].mxu1 }
  0xf8   :  { %579 = vst [vmem:[%s1206_s2 + $0x70] sm:$0xff] %v352_v58  ;;  %v354_v60 = vpop.f32.mrb[15].mxu0  ;;  %631 = vst [vmem:[%s1206_s2 + $0x210] sm:$0xff] %v482_v59  ;;  %v484_v61 = vpop.f32.mrb[15].mxu1 }
  0xf9   :  { %580 = vst [vmem:[%s1206_s2 + $0x78] sm:$0xff] %v354_v60  ;;  %632 = vst [vmem:[%s1206_s2 + $0x218] sm:$0xff] %v484_v61 }
  0xfd   :  { %v358_v62 = vpop.f32.mrb[16].mxu0  ;;  %v488_v63 = vpop.f32.mrb[16].mxu1 }
  0xfe   :  { %581 = vst [vmem:[%s1206_s2 + $0x80] sm:$0xff] %v358_v62  ;;  %v360_v0 = vpop.f32.mrb[17].mxu0  ;;  %633 = vst [vmem:[%s1206_s2 + $0x220] sm:$0xff] %v488_v63  ;;  %v490_v1 = vpop.f32.mrb[17].mxu1 }
  0xff   :  { %582 = vst [vmem:[%s1206_s2 + $0x88] sm:$0xff] %v360_v0  ;;  %v362_v2 = vpop.f32.mrb[18].mxu0  ;;  %634 = vst [vmem:[%s1206_s2 + $0x228] sm:$0xff] %v490_v1  ;;  %v492_v3 = vpop.f32.mrb[18].mxu1 }
 0x100   :  { %583 = vst [vmem:[%s1206_s2 + $0x90] sm:$0xff] %v362_v2  ;;  %v364_v4 = vpop.f32.mrb[19].mxu0  ;;  %635 = vst [vmem:[%s1206_s2 + $0x230] sm:$0xff] %v492_v3  ;;  %v494_v5 = vpop.f32.mrb[19].mxu1 }
 0x101   :  { %584 = vst [vmem:[%s1206_s2 + $0x98] sm:$0xff] %v364_v4  ;;  %636 = vst [vmem:[%s1206_s2 + $0x238] sm:$0xff] %v494_v5 }
 0x105   :  { %v368_v6 = vpop.f32.mrb[20].mxu0  ;;  %v498_v7 = vpop.f32.mrb[20].mxu1 }
 0x106   :  { %585 = vst [vmem:[%s1206_s2 + $0xa0] sm:$0xff] %v368_v6  ;;  %v370_v8 = vpop.f32.mrb[21].mxu0  ;;  %637 = vst [vmem:[%s1206_s2 + $0x240] sm:$0xff] %v498_v7  ;;  %v500_v9 = vpop.f32.mrb[21].mxu1 }
 0x107   :  { %586 = vst [vmem:[%s1206_s2 + $0xa8] sm:$0xff] %v370_v8  ;;  %v372_v10 = vpop.f32.mrb[22].mxu0  ;;  %638 = vst [vmem:[%s1206_s2 + $0x248] sm:$0xff] %v500_v9  ;;  %v502_v11 = vpop.f32.mrb[22].mxu1 }
 0x108   :  { %587 = vst [vmem:[%s1206_s2 + $0xb0] sm:$0xff] %v372_v10  ;;  %v374_v12 = vpop.f32.mrb[23].mxu0  ;;  %639 = vst [vmem:[%s1206_s2 + $0x250] sm:$0xff] %v502_v11  ;;  %v504_v13 = vpop.f32.mrb[23].mxu1 }
 0x109   :  { %588 = vst [vmem:[%s1206_s2 + $0xb8] sm:$0xff] %v374_v12  ;;  %640 = vst [vmem:[%s1206_s2 + $0x258] sm:$0xff] %v504_v13 }
 0x10d   :  { %v378_v14 = vpop.f32.mrb[24].mxu0  ;;  %v508_v15 = vpop.f32.mrb[24].mxu1 }
 0x10e   :  { %589 = vst [vmem:[%s1206_s2 + $0xc0] sm:$0xff] %v378_v14  ;;  %v380_v16 = vpop.f32.mrb[25].mxu0  ;;  %641 = vst [vmem:[%s1206_s2 + $0x260] sm:$0xff] %v508_v15  ;;  %v510_v17 = vpop.f32.mrb[25].mxu1 }
 0x10f   :  { %590 = vst [vmem:[%s1206_s2 + $0xc8] sm:$0xff] %v380_v16  ;;  %v382_v18 = vpop.f32.mrb[26].mxu0  ;;  %642 = vst [vmem:[%s1206_s2 + $0x268] sm:$0xff] %v510_v17  ;;  %v512_v19 = vpop.f32.mrb[26].mxu1 }
 0x110   :  { %591 = vst [vmem:[%s1206_s2 + $0xd0] sm:$0xff] %v382_v18  ;;  %v384_v20 = vpop.f32.mrb[27].mxu0  ;;  %643 = vst [vmem:[%s1206_s2 + $0x270] sm:$0xff] %v512_v19  ;;  %v514_v21 = vpop.f32.mrb[27].mxu1 }
 0x111   :  { %592 = vst [vmem:[%s1206_s2 + $0xd8] sm:$0xff] %v384_v20  ;;  %644 = vst [vmem:[%s1206_s2 + $0x278] sm:$0xff] %v514_v21 }
 0x115   :  { %v388_v22 = vpop.f32.mrb[28].mxu0  ;;  %v518_v23 = vpop.f32.mrb[28].mxu1 }
 0x116   :  { %593 = vst [vmem:[%s1206_s2 + $0xe0] sm:$0xff] %v388_v22  ;;  %v390_v24 = vpop.f32.mrb[29].mxu0  ;;  %645 = vst [vmem:[%s1206_s2 + $0x280] sm:$0xff] %v518_v23  ;;  %v520_v25 = vpop.f32.mrb[29].mxu1 }
 0x117   :  { %594 = vst [vmem:[%s1206_s2 + $0xe8] sm:$0xff] %v390_v24  ;;  %v392_v26 = vpop.f32.mrb[30].mxu0  ;;  %646 = vst [vmem:[%s1206_s2 + $0x288] sm:$0xff] %v520_v25  ;;  %v522_v27 = vpop.f32.mrb[30].mxu1 }
 0x118   :  { %595 = vst [vmem:[%s1206_s2 + $0xf0] sm:$0xff] %v392_v26  ;;  %v394_v28 = vpop.f32.mrb[31].mxu0  ;;  %647 = vst [vmem:[%s1206_s2 + $0x290] sm:$0xff] %v522_v27  ;;  %v524_v29 = vpop.f32.mrb[31].mxu1 }
 0x119   :  { %596 = vst [vmem:[%s1206_s2 + $0xf8] sm:$0xff] %v394_v28  ;;  %648 = vst [vmem:[%s1206_s2 + $0x298] sm:$0xff] %v524_v29 }
 0x11d   :  { %v398_v30 = vpop.f32.mrb[32].mxu0  ;;  %v528_v31 = vpop.f32.mrb[32].mxu1 }
 0x11e   :  { %597 = vst [vmem:[%s1206_s2 + $0x100] sm:$0xff] %v398_v30  ;;  %v400_v32 = vpop.f32.mrb[33].mxu0  ;;  %649 = vst [vmem:[%s1206_s2 + $0x2a0] sm:$0xff] %v528_v31  ;;  %v530_v33 = vpop.f32.mrb[33].mxu1 }
 0x11f   :  { %598 = vst [vmem:[%s1206_s2 + $0x108] sm:$0xff] %v400_v32  ;;  %v402_v34 = vpop.f32.mrb[34].mxu0  ;;  %650 = vst [vmem:[%s1206_s2 + $0x2a8] sm:$0xff] %v530_v33  ;;  %v532_v35 = vpop.f32.mrb[34].mxu1 }
 0x120   :  { %599 = vst [vmem:[%s1206_s2 + $0x110] sm:$0xff] %v402_v34  ;;  %v404_v36 = vpop.f32.mrb[35].mxu0  ;;  %651 = vst [vmem:[%s1206_s2 + $0x2b0] sm:$0xff] %v532_v35  ;;  %v534_v37 = vpop.f32.mrb[35].mxu1 }
 0x121   :  { %600 = vst [vmem:[%s1206_s2 + $0x118] sm:$0xff] %v404_v36  ;;  %652 = vst [vmem:[%s1206_s2 + $0x2b8] sm:$0xff] %v534_v37 }
 0x125   :  { %v408_v38 = vpop.f32.mrb[36].mxu0  ;;  %v538_v39 = vpop.f32.mrb[36].mxu1 }
 0x126   :  { %601 = vst [vmem:[%s1206_s2 + $0x120] sm:$0xff] %v408_v38  ;;  %v410_v40 = vpop.f32.mrb[37].mxu0  ;;  %653 = vst [vmem:[%s1206_s2 + $0x2c0] sm:$0xff] %v538_v39  ;;  %v540_v41 = vpop.f32.mrb[37].mxu1 }
 0x127   :  { %602 = vst [vmem:[%s1206_s2 + $0x128] sm:$0xff] %v410_v40  ;;  %v412_v42 = vpop.f32.mrb[38].mxu0  ;;  %654 = vst [vmem:[%s1206_s2 + $0x2c8] sm:$0xff] %v540_v41  ;;  %v542_v43 = vpop.f32.mrb[38].mxu1 }
 0x128   :  { %603 = vst [vmem:[%s1206_s2 + $0x130] sm:$0xff] %v412_v42  ;;  %v414_v44 = vpop.f32.mrb[39].mxu0  ;;  %655 = vst [vmem:[%s1206_s2 + $0x2d0] sm:$0xff] %v542_v43  ;;  %v544_v45 = vpop.f32.mrb[39].mxu1 }
 0x129   :  { %604 = vst [vmem:[%s1206_s2 + $0x138] sm:$0xff] %v414_v44  ;;  %656 = vst [vmem:[%s1206_s2 + $0x2d8] sm:$0xff] %v544_v45 }
 0x12d   :  { %v418_v46 = vpop.f32.mrb[40].mxu0  ;;  %v548_v47 = vpop.f32.mrb[40].mxu1 }
 0x12e   :  { %605 = vst [vmem:[%s1206_s2 + $0x140] sm:$0xff] %v418_v46  ;;  %v420_v48 = vpop.f32.mrb[41].mxu0  ;;  %657 = vst [vmem:[%s1206_s2 + $0x2e0] sm:$0xff] %v548_v47  ;;  %v550_v49 = vpop.f32.mrb[41].mxu1 }
 0x12f   :  { %606 = vst [vmem:[%s1206_s2 + $0x148] sm:$0xff] %v420_v48  ;;  %v422_v50 = vpop.f32.mrb[42].mxu0  ;;  %658 = vst [vmem:[%s1206_s2 + $0x2e8] sm:$0xff] %v550_v49  ;;  %v552_v51 = vpop.f32.mrb[42].mxu1 }
 0x130   :  { %607 = vst [vmem:[%s1206_s2 + $0x150] sm:$0xff] %v422_v50  ;;  %v424_v52 = vpop.f32.mrb[43].mxu0  ;;  %659 = vst [vmem:[%s1206_s2 + $0x2f0] sm:$0xff] %v552_v51  ;;  %v554_v53 = vpop.f32.mrb[43].mxu1 }
 0x131   :  { %608 = vst [vmem:[%s1206_s2 + $0x158] sm:$0xff] %v424_v52  ;;  %660 = vst [vmem:[%s1206_s2 + $0x2f8] sm:$0xff] %v554_v53 }
 0x135   :  { %v428_v54 = vpop.f32.mrb[44].mxu0  ;;  %v558_v55 = vpop.f32.mrb[44].mxu1 }
 0x136   :  { %609 = vst [vmem:[%s1206_s2 + $0x160] sm:$0xff] %v428_v54  ;;  %v430_v56 = vpop.f32.mrb[45].mxu0  ;;  %661 = vst [vmem:[%s1206_s2 + $0x300] sm:$0xff] %v558_v55  ;;  %v560_v57 = vpop.f32.mrb[45].mxu1 }
 0x137   :  { %610 = vst [vmem:[%s1206_s2 + $0x168] sm:$0xff] %v430_v56  ;;  %v432_v58 = vpop.f32.mrb[46].mxu0  ;;  %662 = vst [vmem:[%s1206_s2 + $0x308] sm:$0xff] %v560_v57  ;;  %v562_v59 = vpop.f32.mrb[46].mxu1 }
 0x138   :  { %611 = vst [vmem:[%s1206_s2 + $0x170] sm:$0xff] %v432_v58  ;;  %v434_v60 = vpop.f32.mrb[47].mxu0  ;;  %v563_v61 = vpop.f32.mrb[47].mxu1 }
 0x139   :  { %612 = vst [vmem:[%s1206_s2 + $0x178] sm:$0xff] %v434_v60 }
 0x13d   :  { %v438_v62 = vpop.f32.mrb[48].mxu0 }
 0x13e   :  { %613 = vst [vmem:[%s1206_s2 + $0x180] sm:$0xff] %v438_v62  ;;  %v440_v63 = vpop.f32.mrb[49].mxu0 }
 0x13f   :  { %614 = vst [vmem:[%s1206_s2 + $0x188] sm:$0xff] %v440_v63  ;;  %v442_v0 = vpop.f32.mrb[50].mxu0 }
 0x140   :  { %615 = vst [vmem:[%s1206_s2 + $0x190] sm:$0xff] %v442_v0  ;;  %v444_v1 = vpop.f32.mrb[51].mxu0 }
 0x141   :  { %616 = vst [vmem:[%s1206_s2 + $0x198] sm:$0xff] %v444_v1 }

// kernel: tile.64
= control target key start
LH: loop header
LB: loop body
LE: loop exit
PB: predicated region body
PF: predicated region fallthrough
CT: control target
= control target key end

     0   :  { %s22_s0 = inlined_call_operand.vmem [shape: f32[16], index: 0, kind: input, shape index: {}]   ;;  %s23_s1 = inlined_call_operand.vmem [shape: f32[8,16], index: 1, kind: output, shape index: {}]  }
   0x1   :  { %v4_v0 = vld [vmem:[%s22_s0] ss:$0 sm:$0xff] }
   0x2   :  { %5 = vst [vmem:[%s23_s1] sm:$0xff] %v4_v0 }

// kernel: tile.65
= control target key start
LH: loop header
LB: loop body
LE: loop exit
PB: predicated region body
PF: predicated region fallthrough
CT: control target
= control target key end

     0   :  { %s67_s10 = smov 112   ;;  %s68_s11 = smov 80   ;;  %vm3_vm0 = vcmask 130048   ;;  %vm9_vm1 = vcmask 1048448   ;;  %vm15_vm2 = vcmask 917248   ;;  %vm21_vm3 = vcmask 786048   ;;  %s111_s0 = inlined_call_operand.vmem [shape: f32[8,16], index: 0, kind: input, shape index: {}]   ;;  %s112_s1 = inlined_call_operand.vmem [shape: f32[1,128], index: 1, kind: output, shape index: {}]  }
   0x1   :  { %v53_v0 = vld [vmem:[%s111_s0 + $0x7] sm:$0x1]   ;;  %v55_v1 = vld [vmem:[%s111_s0 + $0x5] sm:$0x1]   ;;  %v54_v2 = vld [vmem:[%s111_s0 + $0x6] sm:$0x1]  }
   0x2   :  { %7 = vrot.lane.b32.xlu0 %v53_v0, %s67_s10  ;;  %19 = vrot.lane.b32.xlu1 %v55_v1, %s68_s11  ;;  %v56_v3 = vld [vmem:[%s111_s0 + $0x4] sm:$0x1]   ;;  %v2_v4 = vld [vmem:[%s111_s0] sm:$0x1]   ;;  %s69_s18 = smov 96   ;;  %s70_s19 = smov 64  }
   0x3   :  { %4 = vst.msk [vmem:[#allocation0] sm:$0x1] %vm3_vm0, %v2_v4   ;;  %v57_v5 = vld [vmem:[%s111_s0 + $0x3] sm:$0x1]   ;;  %v58_v6 = vld [vmem:[%s111_s0 + $0x2] sm:$0x1]  }
   0x4   :  { %s71_s24 = smov 48   ;;  %s72_s25 = smov 32   ;;  %v59_v7 = vld [vmem:[%s111_s0 + $0x1] sm:$0x1]   ;;  %vm27_vm4 = vcmask 654848   ;;  %vm33_vm5 = vcmask 523648  }
   0x5   :  { %s73_s0 = smov 16   ;;  %vm39_vm6 = vcmask 392448   ;;  %vm45_vm7 = vcmask 261248  }
   0x6   :  { %13 = vrot.lane.b32.xlu0 %v54_v2, %s69_s18  ;;  %25 = vrot.lane.b32.xlu1 %v56_v3, %s70_s19 }
   0xa   :  { %31 = vrot.lane.b32.xlu0 %v57_v5, %s71_s24  ;;  %37 = vrot.lane.b32.xlu1 %v58_v6, %s72_s25 }
   0xe   :  { %43 = vrot.lane.b32.xlu0 %v59_v7, %s73_s0 }
  0x74   :  { %v8_v8 = vpop.permute.xlu0 %7   ;;  %v20_v9 = vpop.permute.xlu1 %19  }
  0x75   :  { %10 = vst.msk [vmem:[#allocation0] sm:$0x1] %vm9_vm1, %v8_v8  }
  0x78   :  { %v14_v10 = vpop.permute.xlu0 %13   ;;  %v26_v11 = vpop.permute.xlu1 %25  }
  0x79   :  { %16 = vst.msk [vmem:[#allocation0] sm:$0x1] %vm15_vm2, %v14_v10  }
  0x7a   :  { %22 = vst.msk [vmem:[#allocation0] sm:$0x1] %vm21_vm3, %v20_v9  }
  0x7b   :  { %28 = vst.msk [vmem:[#allocation0] sm:$0x1] %vm27_vm4, %v26_v11  }
  0x7c   :  { %v32_v12 = vpop.permute.xlu0 %31   ;;  %v38_v13 = vpop.permute.xlu1 %37  }
  0x7d   :  { %34 = vst.msk [vmem:[#allocation0] sm:$0x1] %vm33_vm5, %v32_v12  }
  0x7e   :  { %40 = vst.msk [vmem:[#allocation0] sm:$0x1] %vm39_vm6, %v38_v13  }
  0x80   :  { %v44_v14 = vpop.permute.xlu0 %43  }
  0x81   :  { %46 = vst.msk [vmem:[#allocation0] sm:$0x1] %vm45_vm7, %v44_v14  }
  0x88   :  { %v50_v15 = vld [vmem:[#allocation0] sm:$0x1] }
  0x89   :  { %52 = vst [vmem:[%s112_s1] sm:$0x1] %v50_v15 }

// kernel: dcgan28_generator.24
= control target key start
LH: loop header
LB: loop body
LE: loop exit
PB: predicated region body
PF: predicated region fallthrough
CT: control target
= control target key end

     0   :  { %v141_v0 = vmov 0.0   ;;  %s250_s1 = inlined_call_operand.vmem [shape: f32[1,128], index: 1, kind: output, shape index: {0}]   ;;  %s251_s2 = inlined_call_operand.vmem [shape: f32[1,128], index: 2, kind: output, shape index: {1}]   ;;  %s252_s0 = inlined_call_operand.vmem [shape: f32[200,128], index: 0, kind: input, shape index: {}]  }
   0x1   :  { %14 = vst [vmem:[%s250_s1] sm:$0x1] %v141_v0  ;;  %15 = vst [vmem:[%s251_s2] sm:$0x1] %v141_v0  ;;  %v16_v1 = vld [vmem:[%s252_s0] sm:$0xff]  ;;  %v17_v2 = vld [vmem:[%s252_s0 + $0x8] sm:$0xff] }
   0x2   :  { %v18_v3 = vld [vmem:[%s252_s0 + $0x10] sm:$0xff]  ;;  %v19_v4 = vld [vmem:[%s252_s0 + $0x18] sm:$0xff]  ;;  %v42_v5 = vadd.f32 %v17_v2, %v16_v1  ;;  %v75_v6 = vmul.f32 %v16_v1, %v16_v1  ;;  %v76_v7 = vmul.f32 %v17_v2, %v17_v2  ;;  %v20_v9 = vld [vmem:[%s252_s0 + $0x20] sm:$0xff] }
   0x3   :  { %v77_v8 = vmul.f32 %v18_v3, %v18_v3  ;;  %v78_v11 = vmul.f32 %v19_v4, %v19_v4  ;;  %v21_v13 = vld [vmem:[%s252_s0 + $0x28] sm:$0xff]  ;;  %v79_v15 = vmul.f32 %v20_v9, %v20_v9  ;;  %v22_v17 = vld [vmem:[%s252_s0 + $0x30] sm:$0xff]  ;;  %v23_v21 = vld [vmem:[%s252_s0 + $0x38] sm:$0xff] }
   0x4   :  { %v43_v10 = vadd.f32 %v42_v5, %v18_v3  ;;  %v100_v12 = vadd.f32 %v76_v7, %v75_v6  ;;  %v80_v19 = vmul.f32 %v21_v13, %v21_v13  ;;  %v81_v23 = vmul.f32 %v22_v17, %v22_v17  ;;  %v24_v25 = vld [vmem:[%s252_s0 + $0x40] sm:$0xff]  ;;  %v25_v29 = vld [vmem:[%s252_s0 + $0x48] sm:$0xff]  ;;  %v26_v33 = vld [vmem:[%s252_s0 + $0x50] sm:$0xff] }
   0x5   :  { %v82_v27 = vmul.f32 %v23_v21, %v23_v21  ;;  %v83_v31 = vmul.f32 %v24_v25, %v24_v25  ;;  %v84_v35 = vmul.f32 %v25_v29, %v25_v29  ;;  %v27_v37 = vld [vmem:[%s252_s0 + $0x58] sm:$0xff]  ;;  %v85_v39 = vmul.f32 %v26_v33, %v26_v33  ;;  %v28_v41 = vld [vmem:[%s252_s0 + $0x60] sm:$0xff]  ;;  %v29_v45 = vld [vmem:[%s252_s0 + $0x68] sm:$0xff] }
   0x6   :  { %v44_v14 = vadd.f32 %v43_v10, %v19_v4  ;;  %v101_v16 = vadd.f32 %v100_v12, %v77_v8  ;;  %v86_v43 = vmul.f32 %v27_v37, %v27_v37  ;;  %v87_v47 = vmul.f32 %v28_v41, %v28_v41  ;;  %v30_v49 = vld [vmem:[%s252_s0 + $0x70] sm:$0xff]  ;;  %v31_v53 = vld [vmem:[%s252_s0 + $0x78] sm:$0xff]  ;;  %v32_v57 = vld [vmem:[%s252_s0 + $0x80] sm:$0xff] }
   0x7   :  { %v88_v51 = vmul.f32 %v29_v45, %v29_v45  ;;  %v89_v55 = vmul.f32 %v30_v49, %v30_v49  ;;  %v90_v59 = vmul.f32 %v31_v53, %v31_v53  ;;  %v33_v61 = vld [vmem:[%s252_s0 + $0x88] sm:$0xff]  ;;  %v91_v63 = vmul.f32 %v32_v57, %v32_v57  ;;  %v34_v1 = vld [vmem:[%s252_s0 + $0x90] sm:$0xff]  ;;  %v35_v5 = vld [vmem:[%s252_s0 + $0x98] sm:$0xff] }
   0x8   :  { %v45_v18 = vadd.f32 %v44_v14, %v20_v9  ;;  %v102_v20 = vadd.f32 %v101_v16, %v78_v11  ;;  %v92_v3 = vmul.f32 %v33_v61, %v33_v61  ;;  %v93_v7 = vmul.f32 %v34_v1, %v34_v1  ;;  %v36_v9 = vld [vmem:[%s252_s0 + $0xa0] sm:$0xff] }
   0x9   :  { %v94_v11 = vmul.f32 %v35_v5, %v35_v5 }
   0xa   :  { %v46_v22 = vadd.f32 %v45_v18, %v21_v13  ;;  %v103_v24 = vadd.f32 %v102_v20, %v79_v15  ;;  %v37_v13 = vld [vmem:[%s252_s0 + $0xa8] sm:$0xff]  ;;  %v95_v15 = vmul.f32 %v36_v9, %v36_v9 }
   0xc   :  { %v47_v26 = vadd.f32 %v46_v22, %v22_v17  ;;  %v104_v28 = vadd.f32 %v103_v24, %v80_v19  ;;  %v38_v17 = vld [vmem:[%s252_s0 + $0xb0] sm:$0xff]  ;;  %v96_v19 = vmul.f32 %v37_v13, %v37_v13 }
   0xe   :  { %v48_v30 = vadd.f32 %v47_v26, %v23_v21  ;;  %v105_v32 = vadd.f32 %v104_v28, %v81_v23  ;;  %v39_v21 = vld [vmem:[%s252_s0 + $0xb8] sm:$0xff]  ;;  %v97_v23 = vmul.f32 %v38_v17, %v38_v17 }
  0x10   :  { %v49_v34 = vadd.f32 %v48_v30, %v24_v25  ;;  %v106_v36 = vadd.f32 %v105_v32, %v82_v27  ;;  %v40_v25 = vld [vmem:[%s252_s0 + $0xc0] sm:$0xff]  ;;  %v98_v27 = vmul.f32 %v39_v21, %v39_v21 }
  0x11   :  { %v99_v30 = vmul.f32 %v40_v25, %v40_v25 }
  0x12   :  { %v50_v38 = vadd.f32 %v49_v34, %v25_v29  ;;  %v107_v40 = vadd.f32 %v106_v36, %v83_v31 }
  0x14   :  { %v51_v42 = vadd.f32 %v50_v38, %v26_v33  ;;  %v108_v44 = vadd.f32 %v107_v40, %v84_v35 }
  0x16   :  { %v52_v46 = vadd.f32 %v51_v42, %v27_v37  ;;  %v109_v48 = vadd.f32 %v108_v44, %v85_v39 }
  0x18   :  { %v53_v50 = vadd.f32 %v52_v46, %v28_v41  ;;  %v110_v52 = vadd.f32 %v109_v48, %v86_v43  ;;  %v41_v43 = vld [vmem:[%s250_s1] sm:$0x1] }
  0x19   :  { %v74_v48 = vld [vmem:[%s251_s2] sm:$0x1] }
  0x1a   :  { %v54_v54 = vadd.f32 %v53_v50, %v29_v45  ;;  %v111_v56 = vadd.f32 %v110_v52, %v87_v47 }
  0x1c   :  { %v55_v58 = vadd.f32 %v54_v54, %v30_v49  ;;  %v112_v60 = vadd.f32 %v111_v56, %v88_v51 }
  0x1e   :  { %v56_v62 = vadd.f32 %v55_v58, %v31_v53  ;;  %v113_v0 = vadd.f32 %v112_v60, %v89_v55 }
  0x20   :  { %v57_v2 = vadd.f32 %v56_v62, %v32_v57  ;;  %v114_v4 = vadd.f32 %v113_v0, %v90_v59 }
  0x22   :  { %v58_v6 = vadd.f32 %v57_v2, %v33_v61  ;;  %v115_v8 = vadd.f32 %v114_v4, %v91_v63 }
  0x24   :  { %v59_v10 = vadd.f32 %v58_v6, %v34_v1  ;;  %v116_v12 = vadd.f32 %v115_v8, %v92_v3 }
  0x26   :  { %v60_v14 = vadd.f32 %v59_v10, %v35_v5  ;;  %v117_v16 = vadd.f32 %v116_v12, %v93_v7 }
  0x28   :  { %v61_v18 = vadd.f32 %v60_v14, %v36_v9  ;;  %v118_v20 = vadd.f32 %v117_v16, %v94_v11 }
  0x2a   :  { %v62_v22 = vadd.f32 %v61_v18, %v37_v13  ;;  %v119_v24 = vadd.f32 %v118_v20, %v95_v15 }
  0x2c   :  { %v63_v26 = vadd.f32 %v62_v22, %v38_v17  ;;  %v120_v28 = vadd.f32 %v119_v24, %v96_v19 }
  0x2e   :  { %v64_v29 = vadd.f32 %v63_v26, %v39_v21  ;;  %v121_v31 = vadd.f32 %v120_v28, %v97_v23 }
  0x30   :  { %v65_v32 = vadd.f32 %v64_v29, %v40_v25  ;;  %v122_v33 = vadd.f32 %v121_v31, %v98_v27 }
  0x32   :  { %v66_v34 = vrot.slane %v65_v32, 4  ;;  %v123_v35 = vadd.f32 %v122_v33, %v99_v30 }
  0x34   :  { %v67_v36 = vadd.f32 %v66_v34, %v65_v32  ;;  %v124_v37 = vrot.slane %v123_v35, 4 }
  0x36   :  { %v68_v38 = vrot.slane %v67_v36, 2  ;;  %v125_v39 = vadd.f32 %v124_v37, %v123_v35 }
  0x38   :  { %v69_v40 = vadd.f32 %v68_v38, %v67_v36  ;;  %v126_v41 = vrot.slane %v125_v39, 2 }
  0x3a   :  { %v70_v42 = vrot.slane %v69_v40, 1  ;;  %v127_v44 = vadd.f32 %v126_v41, %v125_v39 }
  0x3c   :  { %v71_v45 = vadd.f32 %v70_v42, %v69_v40  ;;  %v128_v46 = vrot.slane %v127_v44, 1 }
  0x3e   :  { %v72_v47 = vadd.f32 %v71_v45, %v41_v43  ;;  %v129_v49 = vadd.f32 %v128_v46, %v127_v44 }
  0x40   :  { %73 = vst [vmem:[%s250_s1] sm:$0x1] %v72_v47  ;;  %v130_v50 = vadd.f32 %v129_v49, %v74_v48 }
  0x42   :  { %131 = vst [vmem:[%s251_s2] sm:$0x1] %v130_v50 }

// kernel: dcgan28_generator.25
= control target key start
LH: loop header
LB: loop body
LE: loop exit
PB: predicated region body
PF: predicated region fallthrough
CT: control target
= control target key end

     0   :  { %s575_s0 = inlined_call_operand.vmem [shape: f32[200,128], index: 0, kind: input, shape index: {}]   ;;  %s576_s1 = inlined_call_operand.vmem [shape: f32[1,128], index: 1, kind: input, shape index: {}]   ;;  %s577_s2 = inlined_call_operand.vmem [shape: f32[1,128], index: 2, kind: input, shape index: {}]   ;;  %s578_s3 = inlined_call_operand.vmem [shape: bf16[200,128], index: 3, kind: output, shape index: {}]  }
   0x1   :  { %v14_v0 = vld [vmem:[%s575_s0] sm:$0xff]  ;;  %v15_v1 = vld [vmem:[%s575_s0 + $0x8] sm:$0xff]  ;;  %v16_v6 = vld [vmem:[%s575_s0 + $0x10] sm:$0xff] }
   0x2   :  { %v410_v2 = vld [vmem:[%s576_s1] ss:$0 sm:$0xff]  ;;  %v17_v7 = vld [vmem:[%s575_s0 + $0x18] sm:$0xff]  ;;  %v19_v11 = vld [vmem:[%s575_s0 + $0x28] sm:$0xff] }
   0x3   :  { %v46_v3 = vmul.f32 %v410_v2, %v14_v0  ;;  %v47_v4 = vmul.f32 %v410_v2, %v15_v1  ;;  %v417_v5 = vld [vmem:[%s577_s2] ss:$0 sm:$0xff]  ;;  %v48_v8 = vmul.f32 %v410_v2, %v16_v6  ;;  %v49_v9 = vmul.f32 %v410_v2, %v17_v7  ;;  %v20_v12 = vld [vmem:[%s575_s0 + $0x30] sm:$0xff]  ;;  %v21_v17 = vld [vmem:[%s575_s0 + $0x38] sm:$0xff] }
   0x4   :  { %v18_v10 = vld [vmem:[%s575_s0 + $0x20] sm:$0xff]  ;;  %v51_v16 = vmul.f32 %v410_v2, %v19_v11  ;;  %v52_v20 = vmul.f32 %v410_v2, %v20_v12  ;;  %v53_v21 = vmul.f32 %v410_v2, %v21_v17  ;;  %v23_v27 = vld [vmem:[%s575_s0 + $0x48] sm:$0xff]  ;;  %v24_v32 = vld [vmem:[%s575_s0 + $0x50] sm:$0xff] }
   0x5   :  { %v78_v13 = vadd.f32 %v417_v5, %v46_v3  ;;  %v79_v14 = vadd.f32 %v417_v5, %v47_v4  ;;  %v50_v15 = vmul.f32 %v410_v2, %v18_v10  ;;  %v80_v18 = vadd.f32 %v417_v5, %v48_v8  ;;  %v22_v22 = vld [vmem:[%s575_s0 + $0x40] sm:$0xff]  ;;  %v25_v33 = vld [vmem:[%s575_s0 + $0x58] sm:$0xff]  ;;  %v27_v39 = vld [vmem:[%s575_s0 + $0x68] sm:$0xff] }
   0x6   :  { %v81_v19 = vadd.f32 %v417_v5, %v49_v9  ;;  %v83_v26 = vadd.f32 %v417_v5, %v51_v16  ;;  %v84_v30 = vadd.f32 %v417_v5, %v52_v20  ;;  %v85_v31 = vadd.f32 %v417_v5, %v53_v21  ;;  %v26_v38 = vld [vmem:[%s575_s0 + $0x60] sm:$0xff]  ;;  %v28_v44 = vld [vmem:[%s575_s0 + $0x70] sm:$0xff]  ;;  %v29_v49 = vld [vmem:[%s575_s0 + $0x78] sm:$0xff] }
   0x7   :  { %v103_v23 = vmax.f32 %v78_v13, 0.0  ;;  %v104_v24 = vmax.f32 %v79_v14, 0.0  ;;  %v82_v25 = vadd.f32 %v417_v5, %v50_v15  ;;  %v105_v28 = vmax.f32 %v80_v18, 0.0  ;;  %v30_v54 = vld [vmem:[%s575_s0 + $0x80] sm:$0xff]  ;;  %v31_v63 = vld [vmem:[%s575_s0 + $0x88] sm:$0xff]  ;;  %v32_v6 = vld [vmem:[%s575_s0 + $0x90] sm:$0xff] }
   0x8   :  { %v106_v29 = vmax.f32 %v81_v19, 0.0  ;;  %v108_v36 = vmax.f32 %v83_v26, 0.0  ;;  %v54_v37 = vmul.f32 %v410_v2, %v22_v22  ;;  %v109_v41 = vmax.f32 %v84_v30, 0.0  ;;  %v33_v7 = vld [vmem:[%s575_s0 + $0x98] sm:$0xff]  ;;  %v34_v12 = vld [vmem:[%s575_s0 + $0xa0] sm:$0xff]  ;;  %v35_v13 = vld [vmem:[%s575_s0 + $0xa8] sm:$0xff] }
   0x9   :  { %v313_v34 = vpack.c.bf16 %v104_v24, %v103_v23  ;;  %v107_v35 = vmax.f32 %v82_v25, 0.0  ;;  %v110_v42 = vmax.f32 %v85_v31, 0.0  ;;  %v55_v43 = vmul.f32 %v410_v2, %v23_v27  ;;  %v36_v18 = vld [vmem:[%s575_s0 + $0xb0] sm:$0xff]  ;;  %v37_v23 = vld [vmem:[%s575_s0 + $0xb8] sm:$0xff] }
   0xa   :  { %v318_v40 = vpack.c.bf16 %v106_v29, %v105_v28  ;;  %v86_v46 = vadd.f32 %v417_v5, %v54_v37  ;;  %v56_v47 = vmul.f32 %v410_v2, %v24_v32  ;;  %v57_v48 = vmul.f32 %v410_v2, %v25_v33  ;;  %v38_v28 = vld [vmem:[%s575_s0 + $0xc0] sm:$0xff] }
   0xb   :  { %314 = vst [vmem:[%s578_s3] sm:$0xff] %v313_v34   ;;  %v323_v45 = vpack.c.bf16 %v108_v36, %v107_v35  ;;  %v328_v50 = vpack.c.bf16 %v110_v42, %v109_v41  ;;  %v87_v51 = vadd.f32 %v417_v5, %v55_v43  ;;  %v58_v52 = vmul.f32 %v410_v2, %v26_v38 }
   0xc   :  { %370 = vst [vmem:[%s578_s3 + $0x8] sm:$0xff] %v318_v40   ;;  %v59_v53 = vmul.f32 %v410_v2, %v27_v39  ;;  %v111_v55 = vmax.f32 %v86_v46, 0.0  ;;  %v88_v56 = vadd.f32 %v417_v5, %v56_v47  ;;  %v89_v57 = vadd.f32 %v417_v5, %v57_v48 }
   0xd   :  { %371 = vst [vmem:[%s578_s3 + $0x10] sm:$0xff] %v323_v45   ;;  %v60_v58 = vmul.f32 %v410_v2, %v28_v44  ;;  %372 = vst [vmem:[%s578_s3 + $0x18] sm:$0xff] %v328_v50   ;;  %v112_v59 = vmax.f32 %v87_v51, 0.0  ;;  %v90_v60 = vadd.f32 %v417_v5, %v58_v52  ;;  %v61_v62 = vmul.f32 %v410_v2, %v29_v49 }
   0xe   :  { %v91_v61 = vadd.f32 %v417_v5, %v59_v53  ;;  %v113_v0 = vmax.f32 %v88_v56, 0.0  ;;  %v114_v1 = vmax.f32 %v89_v57, 0.0  ;;  %v62_v4 = vmul.f32 %v410_v2, %v30_v54 }
   0xf   :  { %v92_v3 = vadd.f32 %v417_v5, %v60_v58  ;;  %v333_v8 = vpack.c.bf16 %v112_v59, %v111_v55  ;;  %v115_v9 = vmax.f32 %v90_v60, 0.0  ;;  %v93_v11 = vadd.f32 %v417_v5, %v61_v62 }
  0x10   :  { %v116_v10 = vmax.f32 %v91_v61, 0.0  ;;  %v338_v14 = vpack.c.bf16 %v114_v1, %v113_v0  ;;  %v63_v16 = vmul.f32 %v410_v2, %v31_v63  ;;  %v94_v17 = vadd.f32 %v417_v5, %v62_v4 }
  0x11   :  { %v117_v15 = vmax.f32 %v92_v3, 0.0  ;;  %373 = vst [vmem:[%s578_s3 + $0x20] sm:$0xff] %v333_v8   ;;  %v118_v20 = vmax.f32 %v93_v11, 0.0  ;;  %v64_v21 = vmul.f32 %v410_v2, %v32_v6  ;;  %v65_v22 = vmul.f32 %v410_v2, %v33_v7 }
  0x12   :  { %v343_v19 = vpack.c.bf16 %v116_v10, %v115_v9  ;;  %374 = vst [vmem:[%s578_s3 + $0x28] sm:$0xff] %v338_v14   ;;  %v95_v24 = vadd.f32 %v417_v5, %v63_v16  ;;  %v119_v25 = vmax.f32 %v94_v17, 0.0  ;;  %v66_v26 = vmul.f32 %v410_v2, %v34_v12 }
  0x13   :  { %v67_v27 = vmul.f32 %v410_v2, %v35_v13  ;;  %v348_v29 = vpack.c.bf16 %v118_v20, %v117_v15  ;;  %v96_v30 = vadd.f32 %v417_v5, %v64_v21  ;;  %v97_v31 = vadd.f32 %v417_v5, %v65_v22 }
  0x14   :  { %375 = vst [vmem:[%s578_s3 + $0x30] sm:$0xff] %v343_v19   ;;  %v68_v32 = vmul.f32 %v410_v2, %v36_v18  ;;  %v120_v33 = vmax.f32 %v95_v24, 0.0  ;;  %v98_v34 = vadd.f32 %v417_v5, %v66_v26  ;;  %v69_v36 = vmul.f32 %v410_v2, %v37_v23 }
  0x15   :  { %v99_v35 = vadd.f32 %v417_v5, %v67_v27  ;;  %376 = vst [vmem:[%s578_s3 + $0x38] sm:$0xff] %v348_v29   ;;  %v121_v37 = vmax.f32 %v96_v30, 0.0  ;;  %v122_v38 = vmax.f32 %v97_v31, 0.0  ;;  %v70_v40 = vmul.f32 %v410_v2, %v38_v28 }
  0x16   :  { %v100_v39 = vadd.f32 %v417_v5, %v68_v32  ;;  %v353_v41 = vpack.c.bf16 %v120_v33, %v119_v25  ;;  %v123_v42 = vmax.f32 %v98_v34, 0.0  ;;  %v101_v44 = vadd.f32 %v417_v5, %v69_v36 }
  0x17   :  { %v124_v43 = vmax.f32 %v99_v35, 0.0  ;;  %v358_v45 = vpack.c.bf16 %v122_v38, %v121_v37  ;;  %v102_v47 = vadd.f32 %v417_v5, %v70_v40 }
  0x18   :  { %v125_v46 = vmax.f32 %v100_v39, 0.0  ;;  %377 = vst [vmem:[%s578_s3 + $0x40] sm:$0xff] %v353_v41   ;;  %v126_v49 = vmax.f32 %v101_v44, 0.0 }
  0x19   :  { %v363_v48 = vpack.c.bf16 %v124_v43, %v123_v42  ;;  %378 = vst [vmem:[%s578_s3 + $0x48] sm:$0xff] %v358_v45   ;;  %v127_v2 = vmax.f32 %v102_v47, 0.0 }
  0x1a   :  { %v368_v50 = vpack.c.bf16 %v126_v49, %v125_v46 }
  0x1b   :  { %379 = vst [vmem:[%s578_s3 + $0x50] sm:$0xff] %v363_v48   ;;  %v309_v51 = vpack.c.bf16 %v127_v2, %v127_v2 }
  0x1c   :  { %380 = vst [vmem:[%s578_s3 + $0x58] sm:$0xff] %v368_v50  }
  0x1d   :  { %253 = vst [vmem:[%s578_s3 + $0x60] sm:$0xf] %v309_v51 }

// kernel: dcgan28_generator.26
= control target key start
LH: loop header
LB: loop body
LE: loop exit
PB: predicated region body
PF: predicated region fallthrough
CT: control target
= control target key end

     0   :  { %s1097_s9 = smov 0   ;;  %s1099_s10 = smov 0   ;;  %s1341_s0 = inlined_call_operand.vmem [shape: bf16[1568,16], index: 0, kind: input, shape index: {}]   ;;  %s1342_s1 = inlined_call_operand.vmem [shape: bf16[16,27], index: 1, kind: input, shape index: {}]   ;;  %s1343_s2 = inlined_call_operand.vmem [shape: f32[1568,27], index: 2, kind: output, shape index: {}]  }
   0x1   :  { %s1101_s11 = smov 0  }
   0x2 LB: > { %s24_s12 = sadd.s32 1, %s1074_s10  ;;  %p818_p0 = scmp.ge.s32.totalorder %s1078_s11, 1  ;;  %s1078_s11 = sphi %s1101_s11, %s12_s11   ;;  %s1074_s10 = sphi %s1099_s10, %s1345_s10   ;;  %s1070_s9 = sphi %s1097_s9, %s1344_s9  }
   0x3   : > { %p26_p1 = scmp.ge.s32.totalorder %s24_s12, 4  ;;  %p136_p2 = scmp.lt.s32.totalorder %s1078_s11, 5 }
   0x5   : > { %s1347_s12 = smov (%p26_p1, %s24_s12), 0  ;;  %p137_p3 = pnand %p818_p0, %p136_p2 }
   0x6   : > { %v1030_v0 = vld [vmem:[%s1342_s1] sm:$0xff] (!%p137_p3)   ;;  %v1080_v1 = vmov (!%p137_p3), 0.0   ;;  %s165_s15 = smul.u32 (!%p137_p3), 49, %s1070_s9  ;;  %vm1081_vm0 = vmmov (!%p137_p3), 0   ;;  %vm365_vm1 = vcmask (!%p137_p3), 130048   ;;  %vm673_vm2 = vcmask (!%p137_p3), 220160  }
   0x7   : > { %140 = sbr.rel (%p137_p3) target bundleno = 329 (0x149), region = 28  ;;  %900 = vmatprep.subr.bf16.mxu0 (!%p137_p3), %v1080_v1  ;;  %1002 = vmatprep.subr.bf16.mxu1 (!%p137_p3), %v1080_v1 }
   0x8   : > { %901 = vmatpush3.bf16.msra.mxu0 (!%p137_p3), %v1030_v0  ;;  %902 = vmatprep.mubr.msk.bf16.mxu0 (!%p137_p3), %vm1081_vm0, %v1080_v1  ;;  %p166_p4 = scmp.lt.s32.totalorder (!%p137_p3), %s165_s15, 195 }
   0x9   : > { %1003 = vmatpush3.bf16.msra.mxu1 (!%p137_p3), %v1030_v0  ;;  %954 = vmatprep.mubr.msk.bf16.mxu1 (!%p137_p3), %vm1081_vm0, %v1080_v1 }
   0xe   : > { %s1349_s15 = smov (!%p166_p4, %s165_s15), 195 }
   0xf   : > { %s819_s16 = sshll.u32 %s1349_s15, 2  ;;  %s820_s20 = sshll.u32 %s1349_s15, 3 }
  0x10   : > { %s1130_s19 = scalar_lea.vmem %s1341_s0, %s819_s16  ;;  %s1232_s23 = scalar_lea.vmem %s1343_s2, %s820_s20 }
  0x11   : > { %v1031_v2 = vld [vmem:[%s1130_s19] sm:$0xff]   ;;  %v1032_v3 = vld [vmem:[%s1130_s19 + $0x68] sm:$0xff]   ;;  %v1034_v5 = vld [vmem:[%s1130_s19 + $0x70] sm:$0xff]  }
  0x12   : > { %903 = vmatmul.mubr.msk.bf16.vlgmr.msra.gmra.mrb[0].mxu0 %vm365_vm1, %v1031_v2  ;;  %955 = vmatmul.mubr.msk.bf16.vlgmr.msra.gmra.mrb[0].mxu1 %vm365_vm1, %v1032_v3  ;;  %v1033_v4 = vld [vmem:[%s1130_s19 + $0x8] sm:$0xff]   ;;  %v1035_v6 = vld [vmem:[%s1130_s19 + $0x10] sm:$0xff]   ;;  %v1036_v7 = vld [vmem:[%s1130_s19 + $0x78] sm:$0xff]  }
  0x13   : > { %906 = vmatprep.mubr.msk.bf16.mxu0 %vm1081_vm0, %v1080_v1  ;;  %958 = vmatprep.mubr.msk.bf16.mxu1 %vm1081_vm0, %v1080_v1  ;;  %v1037_v8 = vld [vmem:[%s1130_s19 + $0x18] sm:$0xff]   ;;  %v1038_v9 = vld [vmem:[%s1130_s19 + $0x80] sm:$0xff]   ;;  %v1040_v11 = vld [vmem:[%s1130_s19 + $0x88] sm:$0xff]  }
  0x14   : > { %v1039_v10 = vld [vmem:[%s1130_s19 + $0x20] sm:$0xff]   ;;  %v1041_v12 = vld [vmem:[%s1130_s19 + $0x28] sm:$0xff]   ;;  %v1042_v13 = vld [vmem:[%s1130_s19 + $0x90] sm:$0xff]  }
  0x15   : > { %v1043_v14 = vld [vmem:[%s1130_s19 + $0x30] sm:$0xff]   ;;  %v1044_v15 = vld [vmem:[%s1130_s19 + $0x98] sm:$0xff]   ;;  %v1046_v17 = vld [vmem:[%s1130_s19 + $0xa0] sm:$0xff]  }
  0x16   : > { %v1045_v16 = vld [vmem:[%s1130_s19 + $0x38] sm:$0xff]   ;;  %v1047_v18 = vld [vmem:[%s1130_s19 + $0x40] sm:$0xff]   ;;  %v1048_v19 = vld [vmem:[%s1130_s19 + $0xa8] sm:$0xff]  }
  0x17   : > { %v1049_v20 = vld [vmem:[%s1130_s19 + $0x48] sm:$0xff]   ;;  %v1050_v21 = vld [vmem:[%s1130_s19 + $0xb0] sm:$0xff]   ;;  %v1052_v23 = vld [vmem:[%s1130_s19 + $0xb8] sm:$0xff]  }
  0x18   : > { %v1051_v22 = vld [vmem:[%s1130_s19 + $0x50] sm:$0xff]   ;;  %v1053_v24 = vld [vmem:[%s1130_s19 + $0x58] sm:$0xff]   ;;  %v1054_v25 = vld [vmem:[%s1130_s19 + $0xc0] ss:$0 sps:$4 sm:$0xff]  }
  0x19   : > { %v1055_v26 = vld [vmem:[%s1130_s19 + $0x60] sm:$0xff]  }
  0x1a   : > { %907 = vmatmul.mubr.msk.bf16.gmra.mrb[4].mxu0 %vm365_vm1, %v1033_v4  ;;  %959 = vmatmul.mubr.msk.bf16.gmra.mrb[4].mxu1 %vm365_vm1, %v1034_v5 }
  0x1b   : > { %910 = vmatprep.mubr.msk.bf16.mxu0 %vm1081_vm0, %v1080_v1  ;;  %962 = vmatprep.mubr.msk.bf16.mxu1 %vm1081_vm0, %v1080_v1 }
  0x22   : > { %911 = vmatmul.mubr.msk.bf16.gmra.mrb[8].mxu0 %vm365_vm1, %v1035_v6  ;;  %963 = vmatmul.mubr.msk.bf16.gmra.mrb[8].mxu1 %vm365_vm1, %v1036_v7 }
  0x23   : > { %914 = vmatprep.mubr.msk.bf16.mxu0 %vm1081_vm0, %v1080_v1  ;;  %966 = vmatprep.mubr.msk.bf16.mxu1 %vm1081_vm0, %v1080_v1 }
  0x2a   : > { %915 = vmatmul.mubr.msk.bf16.gmra.mrb[12].mxu0 %vm365_vm1, %v1037_v8  ;;  %967 = vmatmul.mubr.msk.bf16.gmra.mrb[12].mxu1 %vm365_vm1, %v1038_v9 }
  0x2b   : > { %918 = vmatprep.mubr.msk.bf16.mxu0 %vm1081_vm0, %v1080_v1  ;;  %970 = vmatprep.mubr.msk.bf16.mxu1 %vm1081_vm0, %v1080_v1 }
  0x32   : > { %919 = vmatmul.mubr.msk.bf16.gmra.mrb[16].mxu0 %vm365_vm1, %v1039_v10  ;;  %971 = vmatmul.mubr.msk.bf16.gmra.mrb[16].mxu1 %vm365_vm1, %v1040_v11 }
  0x33   : > { %922 = vmatprep.mubr.msk.bf16.mxu0 %vm1081_vm0, %v1080_v1  ;;  %974 = vmatprep.mubr.msk.bf16.mxu1 %vm1081_vm0, %v1080_v1 }
  0x3a   : > { %923 = vmatmul.mubr.msk.bf16.gmra.mrb[20].mxu0 %vm365_vm1, %v1041_v12  ;;  %975 = vmatmul.mubr.msk.bf16.gmra.mrb[20].mxu1 %vm365_vm1, %v1042_v13 }
  0x3b   : > { %926 = vmatprep.mubr.msk.bf16.mxu0 %vm1081_vm0, %v1080_v1  ;;  %978 = vmatprep.mubr.msk.bf16.mxu1 %vm1081_vm0, %v1080_v1 }
  0x42   : > { %927 = vmatmul.mubr.msk.bf16.gmra.mrb[24].mxu0 %vm365_vm1, %v1043_v14  ;;  %979 = vmatmul.mubr.msk.bf16.gmra.mrb[24].mxu1 %vm365_vm1, %v1044_v15 }
  0x43   : > { %930 = vmatprep.mubr.msk.bf16.mxu0 %vm1081_vm0, %v1080_v1  ;;  %982 = vmatprep.mubr.msk.bf16.mxu1 %vm1081_vm0, %v1080_v1 }
  0x4a   : > { %931 = vmatmul.mubr.msk.bf16.gmra.mrb[28].mxu0 %vm365_vm1, %v1045_v16  ;;  %983 = vmatmul.mubr.msk.bf16.gmra.mrb[28].mxu1 %vm365_vm1, %v1046_v17 }
  0x4b   : > { %934 = vmatprep.mubr.msk.bf16.mxu0 %vm1081_vm0, %v1080_v1  ;;  %986 = vmatprep.mubr.msk.bf16.mxu1 %vm1081_vm0, %v1080_v1 }
  0x52   : > { %935 = vmatmul.mubr.msk.bf16.gmra.mrb[32].mxu0 %vm365_vm1, %v1047_v18  ;;  %987 = vmatmul.mubr.msk.bf16.gmra.mrb[32].mxu1 %vm365_vm1, %v1048_v19 }
  0x53   : > { %938 = vmatprep.mubr.msk.bf16.mxu0 %vm1081_vm0, %v1080_v1  ;;  %990 = vmatprep.mubr.msk.bf16.mxu1 %vm1081_vm0, %v1080_v1 }
  0x5a   : > { %939 = vmatmul.mubr.msk.bf16.gmra.mrb[36].mxu0 %vm365_vm1, %v1049_v20  ;;  %991 = vmatmul.mubr.msk.bf16.gmra.mrb[36].mxu1 %vm365_vm1, %v1050_v21 }
  0x5b   : > { %942 = vmatprep.mubr.msk.bf16.mxu0 %vm1081_vm0, %v1080_v1  ;;  %994 = vmatprep.mubr.msk.bf16.mxu1 %vm1081_vm0, %v1080_v1 }
  0x62   : > { %943 = vmatmul.mubr.msk.bf16.gmra.mrb[40].mxu0 %vm365_vm1, %v1051_v22  ;;  %995 = vmatmul.mubr.msk.bf16.gmra.mrb[40].mxu1 %vm365_vm1, %v1052_v23 }
  0x63   : > { %946 = vmatprep.mubr.msk.bf16.mxu0 %vm1081_vm0, %v1080_v1  ;;  %998 = vmatprep.mubr.msk.bf16.mxu1 %vm1081_vm0, %v1080_v1 }
  0x6a   : > { %947 = vmatmul.mubr.msk.bf16.gmra.mrb[44].mxu0 %vm365_vm1, %v1053_v24  ;;  %999 = vmatmul.mubr.msk.bf16.gmra.mrb[44].mxu1 %vm365_vm1, %v1054_v25 }
  0x6b   : > { %950 = vmatprep.mubr.msk.bf16.mxu0 %vm1081_vm0, %v1080_v1 }
  0x72   : > { %951 = vmatmul.mubr.msk.bf16.gmra.mrb[48].mxu0 %vm365_vm1, %v1055_v26 }
  0xe5   : > { %v475_v27 = vpop.f32.mrb[0].mxu0  ;;  %v579_v29 = vpop.f32.mrb[0].mxu1 }
  0xe6   : > { %674 = vst.msk [vmem:[%s1232_s23] sm:$0xff] %vm673_vm2, %v475_v27  ;;  %v904_v28 = vpop.f32.mrb[1].mxu0  ;;  %700 = vst.msk [vmem:[%s1232_s23 + $0xd0] sm:$0xff] %vm673_vm2, %v579_v29  ;;  %v956_v31 = vpop.f32.mrb[1].mxu1 }
  0xe7   : > { %v478_v30 = vpop.f32.mrb[2].mxu0  ;;  %v582_v33 = vpop.f32.mrb[2].mxu1 }
  0xe8   : > { %675 = vst.msk [vmem:[%s1232_s23 + $0x8] sm:$0xff] %vm673_vm2, %v478_v30  ;;  %v905_v32 = vpop.f32.mrb[3].mxu0  ;;  %701 = vst.msk [vmem:[%s1232_s23 + $0xd8] sm:$0xff] %vm673_vm2, %v582_v33  ;;  %v957_v34 = vpop.f32.mrb[3].mxu1 }
  0xed   : > { %v483_v35 = vpop.f32.mrb[4].mxu0  ;;  %v587_v37 = vpop.f32.mrb[4].mxu1 }
  0xee   : > { %676 = vst.msk [vmem:[%s1232_s23 + $0x10] sm:$0xff] %vm673_vm2, %v483_v35  ;;  %v908_v36 = vpop.f32.mrb[5].mxu0  ;;  %702 = vst.msk [vmem:[%s1232_s23 + $0xe0] sm:$0xff] %vm673_vm2, %v587_v37  ;;  %v960_v39 = vpop.f32.mrb[5].mxu1 }
  0xef   : > { %v486_v38 = vpop.f32.mrb[6].mxu0  ;;  %v590_v41 = vpop.f32.mrb[6].mxu1 }
  0xf0   : > { %677 = vst.msk [vmem:[%s1232_s23 + $0x18] sm:$0xff] %vm673_vm2, %v486_v38  ;;  %v909_v40 = vpop.f32.mrb[7].mxu0  ;;  %703 = vst.msk [vmem:[%s1232_s23 + $0xe8] sm:$0xff] %vm673_vm2, %v590_v41  ;;  %v961_v42 = vpop.f32.mrb[7].mxu1 }
  0xf5   : > { %v491_v43 = vpop.f32.mrb[8].mxu0  ;;  %v595_v45 = vpop.f32.mrb[8].mxu1 }
  0xf6   : > { %678 = vst.msk [vmem:[%s1232_s23 + $0x20] sm:$0xff] %vm673_vm2, %v491_v43  ;;  %v912_v44 = vpop.f32.mrb[9].mxu0  ;;  %704 = vst.msk [vmem:[%s1232_s23 + $0xf0] sm:$0xff] %vm673_vm2, %v595_v45  ;;  %v964_v47 = vpop.f32.mrb[9].mxu1 }
  0xf7   : > { %v494_v46 = vpop.f32.mrb[10].mxu0  ;;  %v598_v49 = vpop.f32.mrb[10].mxu1 }
  0xf8   : > { %679 = vst.msk [vmem:[%s1232_s23 + $0x28] sm:$0xff] %vm673_vm2, %v494_v46  ;;  %v913_v48 = vpop.f32.mrb[11].mxu0  ;;  %705 = vst.msk [vmem:[%s1232_s23 + $0xf8] sm:$0xff] %vm673_vm2, %v598_v49  ;;  %v965_v50 = vpop.f32.mrb[11].mxu1 }
  0xfd   : > { %v499_v51 = vpop.f32.mrb[12].mxu0  ;;  %v603_v53 = vpop.f32.mrb[12].mxu1 }
  0xfe   : > { %680 = vst.msk [vmem:[%s1232_s23 + $0x30] sm:$0xff] %vm673_vm2, %v499_v51  ;;  %v916_v52 = vpop.f32.mrb[13].mxu0  ;;  %706 = vst.msk [vmem:[%s1232_s23 + $0x100] sm:$0xff] %vm673_vm2, %v603_v53  ;;  %v968_v55 = vpop.f32.mrb[13].mxu1 }
  0xff   : > { %v502_v54 = vpop.f32.mrb[14].mxu0  ;;  %v606_v57 = vpop.f32.mrb[14].mxu1 }
 0x100   : > { %681 = vst.msk [vmem:[%s1232_s23 + $0x38] sm:$0xff] %vm673_vm2, %v502_v54  ;;  %v917_v56 = vpop.f32.mrb[15].mxu0  ;;  %707 = vst.msk [vmem:[%s1232_s23 + $0x108] sm:$0xff] %vm673_vm2, %v606_v57  ;;  %v969_v58 = vpop.f32.mrb[15].mxu1 }
 0x105   : > { %v507_v59 = vpop.f32.mrb[16].mxu0  ;;  %v611_v61 = vpop.f32.mrb[16].mxu1 }
 0x106   : > { %682 = vst.msk [vmem:[%s1232_s23 + $0x40] sm:$0xff] %vm673_vm2, %v507_v59  ;;  %v920_v60 = vpop.f32.mrb[17].mxu0  ;;  %708 = vst.msk [vmem:[%s1232_s23 + $0x110] sm:$0xff] %vm673_vm2, %v611_v61  ;;  %v972_v63 = vpop.f32.mrb[17].mxu1 }
 0x107   : > { %v510_v62 = vpop.f32.mrb[18].mxu0  ;;  %v614_v1 = vpop.f32.mrb[18].mxu1 }
 0x108   : > { %683 = vst.msk [vmem:[%s1232_s23 + $0x48] sm:$0xff] %vm673_vm2, %v510_v62  ;;  %v921_v0 = vpop.f32.mrb[19].mxu0  ;;  %709 = vst.msk [vmem:[%s1232_s23 + $0x118] sm:$0xff] %vm673_vm2, %v614_v1  ;;  %v973_v2 = vpop.f32.mrb[19].mxu1 }
 0x10d   : > { %v515_v3 = vpop.f32.mrb[20].mxu0  ;;  %v619_v5 = vpop.f32.mrb[20].mxu1 }
 0x10e   : > { %684 = vst.msk [vmem:[%s1232_s23 + $0x50] sm:$0xff] %vm673_vm2, %v515_v3  ;;  %v924_v4 = vpop.f32.mrb[21].mxu0  ;;  %710 = vst.msk [vmem:[%s1232_s23 + $0x120] sm:$0xff] %vm673_vm2, %v619_v5  ;;  %v976_v7 = vpop.f32.mrb[21].mxu1 }
 0x10f   : > { %v518_v6 = vpop.f32.mrb[22].mxu0  ;;  %v622_v9 = vpop.f32.mrb[22].mxu1 }
 0x110   : > { %685 = vst.msk [vmem:[%s1232_s23 + $0x58] sm:$0xff] %vm673_vm2, %v518_v6  ;;  %v925_v8 = vpop.f32.mrb[23].mxu0  ;;  %711 = vst.msk [vmem:[%s1232_s23 + $0x128] sm:$0xff] %vm673_vm2, %v622_v9  ;;  %v977_v10 = vpop.f32.mrb[23].mxu1 }
 0x115   : > { %v523_v11 = vpop.f32.mrb[24].mxu0  ;;  %v627_v13 = vpop.f32.mrb[24].mxu1 }
 0x116   : > { %686 = vst.msk [vmem:[%s1232_s23 + $0x60] sm:$0xff] %vm673_vm2, %v523_v11  ;;  %v928_v12 = vpop.f32.mrb[25].mxu0  ;;  %712 = vst.msk [vmem:[%s1232_s23 + $0x130] sm:$0xff] %vm673_vm2, %v627_v13  ;;  %v980_v15 = vpop.f32.mrb[25].mxu1 }
 0x117   : > { %v526_v14 = vpop.f32.mrb[26].mxu0  ;;  %v630_v17 = vpop.f32.mrb[26].mxu1 }
 0x118   : > { %687 = vst.msk [vmem:[%s1232_s23 + $0x68] sm:$0xff] %vm673_vm2, %v526_v14  ;;  %v929_v16 = vpop.f32.mrb[27].mxu0  ;;  %713 = vst.msk [vmem:[%s1232_s23 + $0x138] sm:$0xff] %vm673_vm2, %v630_v17  ;;  %v981_v18 = vpop.f32.mrb[27].mxu1 }
 0x11d   : > { %v531_v19 = vpop.f32.mrb[28].mxu0  ;;  %v635_v21 = vpop.f32.mrb[28].mxu1 }
 0x11e   : > { %688 = vst.msk [vmem:[%s1232_s23 + $0x70] sm:$0xff] %vm673_vm2, %v531_v19  ;;  %v932_v20 = vpop.f32.mrb[29].mxu0  ;;  %714 = vst.msk [vmem:[%s1232_s23 + $0x140] sm:$0xff] %vm673_vm2, %v635_v21  ;;  %v984_v23 = vpop.f32.mrb[29].mxu1 }
 0x11f   : > { %v534_v22 = vpop.f32.mrb[30].mxu0  ;;  %v638_v25 = vpop.f32.mrb[30].mxu1 }
 0x120   : > { %689 = vst.msk [vmem:[%s1232_s23 + $0x78] sm:$0xff] %vm673_vm2, %v534_v22  ;;  %v933_v24 = vpop.f32.mrb[31].mxu0  ;;  %715 = vst.msk [vmem:[%s1232_s23 + $0x148] sm:$0xff] %vm673_vm2, %v638_v25  ;;  %v985_v26 = vpop.f32.mrb[31].mxu1 }
 0x125   : > { %v539_v27 = vpop.f32.mrb[32].mxu0  ;;  %v643_v29 = vpop.f32.mrb[32].mxu1 }
 0x126   : > { %690 = vst.msk [vmem:[%s1232_s23 + $0x80] sm:$0xff] %vm673_vm2, %v539_v27  ;;  %v936_v28 = vpop.f32.mrb[33].mxu0  ;;  %716 = vst.msk [vmem:[%s1232_s23 + $0x150] sm:$0xff] %vm673_vm2, %v643_v29  ;;  %v988_v31 = vpop.f32.mrb[33].mxu1 }
 0x127   : > { %v542_v30 = vpop.f32.mrb[34].mxu0  ;;  %v646_v33 = vpop.f32.mrb[34].mxu1 }
 0x128   : > { %691 = vst.msk [vmem:[%s1232_s23 + $0x88] sm:$0xff] %vm673_vm2, %v542_v30  ;;  %v937_v32 = vpop.f32.mrb[35].mxu0  ;;  %717 = vst.msk [vmem:[%s1232_s23 + $0x158] sm:$0xff] %vm673_vm2, %v646_v33  ;;  %v989_v34 = vpop.f32.mrb[35].mxu1 }
 0x12d   : > { %v547_v35 = vpop.f32.mrb[36].mxu0  ;;  %v651_v37 = vpop.f32.mrb[36].mxu1 }
 0x12e   : > { %692 = vst.msk [vmem:[%s1232_s23 + $0x90] sm:$0xff] %vm673_vm2, %v547_v35  ;;  %v940_v36 = vpop.f32.mrb[37].mxu0  ;;  %718 = vst.msk [vmem:[%s1232_s23 + $0x160] sm:$0xff] %vm673_vm2, %v651_v37  ;;  %v992_v39 = vpop.f32.mrb[37].mxu1 }
 0x12f   : > { %v550_v38 = vpop.f32.mrb[38].mxu0  ;;  %v654_v41 = vpop.f32.mrb[38].mxu1 }
 0x130   : > { %693 = vst.msk [vmem:[%s1232_s23 + $0x98] sm:$0xff] %vm673_vm2, %v550_v38  ;;  %v941_v40 = vpop.f32.mrb[39].mxu0  ;;  %719 = vst.msk [vmem:[%s1232_s23 + $0x168] sm:$0xff] %vm673_vm2, %v654_v41  ;;  %v993_v42 = vpop.f32.mrb[39].mxu1 }
 0x135   : > { %v555_v43 = vpop.f32.mrb[40].mxu0  ;;  %v659_v45 = vpop.f32.mrb[40].mxu1 }
 0x136   : > { %694 = vst.msk [vmem:[%s1232_s23 + $0xa0] sm:$0xff] %vm673_vm2, %v555_v43  ;;  %v944_v44 = vpop.f32.mrb[41].mxu0  ;;  %720 = vst.msk [vmem:[%s1232_s23 + $0x170] sm:$0xff] %vm673_vm2, %v659_v45  ;;  %v996_v47 = vpop.f32.mrb[41].mxu1 }
 0x137   : > { %v558_v46 = vpop.f32.mrb[42].mxu0  ;;  %v662_v49 = vpop.f32.mrb[42].mxu1 }
 0x138   : > { %695 = vst.msk [vmem:[%s1232_s23 + $0xa8] sm:$0xff] %vm673_vm2, %v558_v46  ;;  %v945_v48 = vpop.f32.mrb[43].mxu0  ;;  %721 = vst.msk [vmem:[%s1232_s23 + $0x178] sm:$0xff] %vm673_vm2, %v662_v49  ;;  %v997_v50 = vpop.f32.mrb[43].mxu1 }
 0x13d   : > { %v563_v51 = vpop.f32.mrb[44].mxu0  ;;  %v667_v53 = vpop.f32.mrb[44].mxu1 }
 0x13e   : > { %696 = vst.msk [vmem:[%s1232_s23 + $0xb0] sm:$0xff] %vm673_vm2, %v563_v51  ;;  %v948_v52 = vpop.f32.mrb[45].mxu0  ;;  %722 = vst.msk [vmem:[%s1232_s23 + $0x180] sm:$0xff] %vm673_vm2, %v667_v53  ;;  %v1000_v55 = vpop.f32.mrb[45].mxu1 }
 0x13f   : > { %v566_v54 = vpop.f32.mrb[46].mxu0  ;;  %v670_v57 = vpop.f32.mrb[46].mxu1 }
 0x140   : > { %697 = vst.msk [vmem:[%s1232_s23 + $0xb8] sm:$0xff] %vm673_vm2, %v566_v54  ;;  %v949_v56 = vpop.f32.mrb[47].mxu0  ;;  %v1001_v58 = vpop.f32.mrb[47].mxu1 }
 0x145   : > { %v571_v59 = vpop.f32.mrb[48].mxu0 }
 0x146   : > { %698 = vst.msk [vmem:[%s1232_s23 + $0xc0] sm:$0xff] %vm673_vm2, %v571_v59  ;;  %v952_v60 = vpop.f32.mrb[49].mxu0 }
 0x147   : > { %v574_v61 = vpop.f32.mrb[50].mxu0 }
 0x148   : > { %699 = vst.msk [vmem:[%s1232_s23 + $0xc8] sm:$0xff] %vm673_vm2, %v574_v61  ;;  %v953_v62 = vpop.f32.mrb[51].mxu0 }
 0x149 PF: > { %s12_s11 = sadd.s32 1, %s1078_s11   ;;  %s1344_s9 = smov %s1074_s10 }
 0x14a   : > { %p9_p5 = scmp.ge.s32.totalorder %s12_s11, 6   ;;  %s1345_s10 = smov %s1347_s12 }
 0x14c   :  { %11 = sbr.rel (!%p9_p5) target bundleno = 2 (0x2), region = 61 }

// kernel: tile.74
= control target key start
LH: loop header
LB: loop body
LE: loop exit
PB: predicated region body
PF: predicated region fallthrough
CT: control target
= control target key end

     0   :  { %s58_s0 = inlined_call_operand.vmem [shape: f32[3], index: 0, kind: input, shape index: {}]   ;;  %s59_s1 = inlined_call_operand.vmem [shape: f32[49,3], index: 1, kind: output, shape index: {}]  }
   0x1   :  { %v4_v0 = vld [vmem:[%s58_s0] ss:$0 sm:$0xff] }
   0x2   :  { %5 = vst [vmem:[%s59_s1] sm:$0xff] %v4_v0  ;;  %18 = vst [vmem:[%s59_s1 + $0x8] sm:$0xff] %v4_v0 }
   0x3   :  { %19 = vst [vmem:[%s59_s1 + $0x10] sm:$0xff] %v4_v0  ;;  %20 = vst [vmem:[%s59_s1 + $0x18] sm:$0xff] %v4_v0 }
   0x4   :  { %21 = vst [vmem:[%s59_s1 + $0x20] sm:$0xff] %v4_v0  ;;  %22 = vst [vmem:[%s59_s1 + $0x28] sm:$0xff] %v4_v0 }
   0x5   :  { %23 = vst [vmem:[%s59_s1 + $0x30] sm:$0xff] %v4_v0 }

// kernel: tile.75
= control target key start
LH: loop header
LB: loop body
LE: loop exit
PB: predicated region body
PF: predicated region fallthrough
CT: control target
= control target key end

     0   :  { %vm9_vm0 = vcmask 15360   ;;  %s415_s10 = smov 120   ;;  %s416_s15 = smov 126   ;;  %vm3_vm1 = vcmask 23552   ;;  %vm13_vm2 = vcmask 7168   ;;  %vm16_vm3 = vcmask 1048560   ;;  %s629_s0 = inlined_call_operand.vmem [shape: f32[49,3], index: 0, kind: input, shape index: {}]   ;;  %s630_s1 = inlined_call_operand.vmem [shape: f32[1,147], index: 1, kind: output, shape index: {}]  }
   0x1   :  { %v320_v0 = vld [vmem:[%s629_s0 + $0x28] sm:$0x1]   ;;  %v317_v1 = vld [vmem:[%s629_s0 + $0x2a] sm:$0x1]   ;;  %v321_v4 = vld [vmem:[%s629_s0 + $0x27] sm:$0x1]  }
   0x2   :  { %26 = vrot.lane.b32.xlu1 %v320_v0, %s415_s10  ;;  %v318_v2 = vld [vmem:[%s629_s0 + $0x2a] sm:$0x1]   ;;  %v319_v5 = vld [vmem:[%s629_s0 + $0x29] sm:$0x1]   ;;  %s417_s18 = smov 117   ;;  %s418_s21 = smov 123  }
   0x3   :  { %v10_v3 = vsel %vm9_vm0, %v318_v2, %v317_v1  ;;  %v323_v6 = vld [vmem:[%s629_s0 + $0x25] sm:$0x1]   ;;  %v322_v7 = vld [vmem:[%s629_s0 + $0x26] sm:$0x1]   ;;  %s419_s24 = smov 111   ;;  %s420_s27 = smov 114  }
   0x4   :  { %11 = vrot.lane.b32.xlu0 %v10_v3, %s416_s15  ;;  %v325_v8 = vld [vmem:[%s629_s0 + $0x23] sm:$0x1]   ;;  %v324_v9 = vld [vmem:[%s629_s0 + $0x24] sm:$0x1]   ;;  %s421_s30 = smov 105   ;;  %s422_s4 = smov 108  }
   0x5   :  { %v327_v10 = vld [vmem:[%s629_s0 + $0x21] sm:$0x1]   ;;  %v326_v11 = vld [vmem:[%s629_s0 + $0x22] sm:$0x1]   ;;  %s423_s7 = smov 99   ;;  %s424_s10 = smov 102  }
   0x6   :  { %32 = vrot.lane.b32.xlu1 %v321_v4, %s417_s18  ;;  %v329_v12 = vld [vmem:[%s629_s0 + $0x1f] sm:$0x1]   ;;  %v328_v13 = vld [vmem:[%s629_s0 + $0x20] sm:$0x1]   ;;  %s425_s13 = smov 93   ;;  %s426_s16 = smov 96  }
   0x7   :  { %v331_v14 = vld [vmem:[%s629_s0 + $0x1d] sm:$0x1]   ;;  %v330_v15 = vld [vmem:[%s629_s0 + $0x1e] sm:$0x1]   ;;  %s427_s19 = smov 87   ;;  %s437_s22 = smov 57  }
   0x8   :  { %20 = vrot.lane.b32.xlu0 %v319_v5, %s418_s21  ;;  %v2_v16 = vld [vmem:[%s629_s0] sm:$0x1]   ;;  %v333_v17 = vld [vmem:[%s629_s0 + $0x1b] sm:$0x1]   ;;  %v332_v18 = vld [vmem:[%s629_s0 + $0x1c] sm:$0x1]  }
   0x9   :  { %4 = vst.msk [vmem:[#allocation0] sm:$0x1] %vm3_vm1, %v2_v16   ;;  %v335_v19 = vld [vmem:[%s629_s0 + $0x19] sm:$0x1]   ;;  %v334_v20 = vld [vmem:[%s629_s0 + $0x1a] sm:$0x1]  }
   0xa   :  { %44 = vrot.lane.b32.xlu1 %v323_v6, %s419_s24  ;;  %s428_s24 = smov 90   ;;  %v337_v21 = vld [vmem:[%s629_s0 + $0x17] sm:$0x1]   ;;  %v336_v22 = vld [vmem:[%s629_s0 + $0x18] sm:$0x1]   ;;  %s438_s25 = smov 60  }
   0xb   :  { %v339_v23 = vld [vmem:[%s629_s0 + $0x15] sm:$0x1]   ;;  %v338_v24 = vld [vmem:[%s629_s0 + $0x16] sm:$0x1]   ;;  %v341_v25 = vld [vmem:[%s629_s0 + $0x13] sm:$0x1]  }
   0xc   :  { %38 = vrot.lane.b32.xlu0 %v322_v7, %s420_s27  ;;  %s429_s27 = smov 81   ;;  %v340_v26 = vld [vmem:[%s629_s0 + $0x14] sm:$0x1]   ;;  %v343_v27 = vld [vmem:[%s629_s0 + $0x11] sm:$0x1]   ;;  %s439_s28 = smov 51  }
   0xd   :  { %v342_v28 = vld [vmem:[%s629_s0 + $0x12] sm:$0x1]   ;;  %v345_v29 = vld [vmem:[%s629_s0 + $0xf] sm:$0x1]   ;;  %s440_s2 = smov 54   ;;  %s441_s5 = smov 45  }
   0xe   :  { %56 = vrot.lane.b32.xlu1 %v325_v8, %s421_s30  ;;  %s430_s30 = smov 84   ;;  %v344_v30 = vld [vmem:[%s629_s0 + $0x10] sm:$0x1]   ;;  %v347_v31 = vld [vmem:[%s629_s0 + $0xd] sm:$0x1]   ;;  %s442_s8 = smov 48  }
   0xf   :  { %v346_v32 = vld [vmem:[%s629_s0 + $0xe] sm:$0x1]   ;;  %s443_s11 = smov 39   ;;  %v349_v33 = vld [vmem:[%s629_s0 + $0xb] sm:$0x1]   ;;  %s444_s14 = smov 42  }
  0x10   :  { %50 = vrot.lane.b32.xlu0 %v324_v9, %s422_s4  ;;  %s431_s4 = smov 75   ;;  %v348_v34 = vld [vmem:[%s629_s0 + $0xc] sm:$0x1]   ;;  %s445_s17 = smov 33   ;;  %v351_v35 = vld [vmem:[%s629_s0 + $0x9] sm:$0x1]  }
  0x11   :  { %s446_s20 = smov 36   ;;  %v350_v36 = vld [vmem:[%s629_s0 + $0xa] sm:$0x1]   ;;  %s447_s23 = smov 27   ;;  %v353_v37 = vld [vmem:[%s629_s0 + $0x7] sm:$0x1]  }
  0x12   :  { %68 = vrot.lane.b32.xlu1 %v327_v10, %s423_s7  ;;  %s432_s7 = smov 78   ;;  %s448_s26 = smov 30   ;;  %v352_v38 = vld [vmem:[%s629_s0 + $0x8] sm:$0x1]   ;;  %v355_v39 = vld [vmem:[%s629_s0 + $0x30] sm:$0x1]  }
  0x13   :  { %s449_s29 = smov 21   ;;  %s450_s3 = smov 24   ;;  %v354_v40 = vld [vmem:[%s629_s0 + $0x6] sm:$0x1]   ;;  %v357_v41 = vld [vmem:[%s629_s0 + $0x2f] sm:$0x1]  }
  0x14   :  { %62 = vrot.lane.b32.xlu0 %v326_v11, %s424_s10  ;;  %s433_s10 = smov 69   ;;  %s451_s6 = smov 16   ;;  %v356_v42 = vld [vmem:[%s629_s0 + $0x5] sm:$0x1]   ;;  %v359_v43 = vld [vmem:[%s629_s0 + $0x2e] sm:$0x1]  }
  0x15   :  { %s452_s9 = smov 18   ;;  %s453_s12 = smov 13   ;;  %v358_v44 = vld [vmem:[%s629_s0 + $0x4] sm:$0x1]   ;;  %v361_v45 = vld [vmem:[%s629_s0 + $0x2d] sm:$0x1]  }
  0x16   :  { %80 = vrot.lane.b32.xlu1 %v329_v12, %s425_s13  ;;  %s434_s13 = smov 72   ;;  %s454_s15 = smov 15   ;;  %v360_v46 = vld [vmem:[%s629_s0 + $0x3] sm:$0x1]   ;;  %v363_v47 = vld [vmem:[%s629_s0 + $0x2c] sm:$0x1]  }
  0x17   :  { %s455_s18 = smov 10   ;;  %s456_s21 = smov 12   ;;  %v362_v48 = vld [vmem:[%s629_s0 + $0x2] sm:$0x1]   ;;  %v365_v49 = vld [vmem:[%s629_s0 + $0x2b] sm:$0x1]  }
  0x18   :  { %74 = vrot.lane.b32.xlu0 %v328_v13, %s426_s16  ;;  %s435_s16 = smov 63   ;;  %v364_v50 = vld [vmem:[%s629_s0 + $0x1] sm:$0x1]   ;;  %s461_s0 = smov 1   ;;  %vm22_vm4 = vcmask 1032152   ;;  %vm28_vm5 = vcmask 1007552  }
  0x19   :  { %vm34_vm6 = vcmask 982952   ;;  %vm40_vm7 = vcmask 958352   ;;  %vm46_vm8 = vcmask 933752   ;;  %vm52_vm9 = vcmask 909152  }
  0x1a   :  { %92 = vrot.lane.b32.xlu1 %v331_v14, %s427_s19  ;;  %s436_s19 = smov 66   ;;  %vm58_vm10 = vcmask 884552   ;;  %vm64_vm11 = vcmask 859952   ;;  %vm70_vm12 = vcmask 835352   ;;  %vm76_vm13 = vcmask 810752  }
  0x1b   :  { %vm82_vm14 = vcmask 786152   ;;  %vm88_vm15 = vcmask 761552   ;;  %vm94_vm0 = vcmask 736952   ;;  %vm100_vm1 = vcmask 712352  }
  0x1c   :  { %86 = vrot.lane.b32.xlu0 %v330_v15, %s428_s24  ;;  %s457_s24 = smov 7  }
  0x1e   :  { %104 = vrot.lane.b32.xlu1 %v333_v17, %s429_s27  ;;  %s458_s27 = smov 9  }
  0x20   :  { %98 = vrot.lane.b32.xlu0 %v332_v18, %s430_s30  ;;  %s459_s30 = smov 4  }
  0x22   :  { %116 = vrot.lane.b32.xlu1 %v335_v19, %s431_s4  ;;  %s460_s4 = smov 6  }
  0x24   :  { %110 = vrot.lane.b32.xlu0 %v334_v20, %s432_s7  ;;  %s462_s7 = smov 3  }
  0x26   :  { %128 = vrot.lane.b32.xlu1 %v337_v21, %s433_s10 }
  0x28   :  { %122 = vrot.lane.b32.xlu0 %v336_v22, %s434_s13 }
  0x2a   :  { %140 = vrot.lane.b32.xlu1 %v339_v23, %s435_s16 }
  0x2c   :  { %134 = vrot.lane.b32.xlu0 %v338_v24, %s436_s19 }
  0x2e   :  { %152 = vrot.lane.b32.xlu1 %v341_v25, %s437_s22 }
  0x30   :  { %146 = vrot.lane.b32.xlu0 %v340_v26, %s438_s25 }
  0x32   :  { %164 = vrot.lane.b32.xlu1 %v343_v27, %s439_s28 }
  0x34   :  { %158 = vrot.lane.b32.xlu0 %v342_v28, %s440_s2 }
  0x36   :  { %176 = vrot.lane.b32.xlu1 %v345_v29, %s441_s5 }
  0x38   :  { %170 = vrot.lane.b32.xlu0 %v344_v30, %s442_s8 }
  0x3a   :  { %188 = vrot.lane.b32.xlu1 %v347_v31, %s443_s11 }
  0x3c   :  { %182 = vrot.lane.b32.xlu0 %v346_v32, %s444_s14 }
  0x3e   :  { %200 = vrot.lane.b32.xlu1 %v349_v33, %s445_s17 }
  0x40   :  { %194 = vrot.lane.b32.xlu0 %v348_v34, %s446_s20 }
  0x42   :  { %212 = vrot.lane.b32.xlu1 %v351_v35, %s447_s23 }
  0x44   :  { %206 = vrot.lane.b32.xlu0 %v350_v36, %s448_s26 }
  0x46   :  { %224 = vrot.lane.b32.xlu1 %v353_v37, %s449_s29 }
  0x48   :  { %218 = vrot.lane.b32.xlu0 %v352_v38, %s450_s3 }
  0x4a   :  { %236 = vrot.lane.b32.xlu1 %v355_v39, %s451_s6 }
  0x4c   :  { %230 = vrot.lane.b32.xlu0 %v354_v40, %s452_s9 }
  0x4e   :  { %249 = vrot.lane.b32.xlu1 %v357_v41, %s453_s12 }
  0x50   :  { %243 = vrot.lane.b32.xlu0 %v356_v42, %s454_s15 }
  0x52   :  { %262 = vrot.lane.b32.xlu1 %v359_v43, %s455_s18 }
  0x54   :  { %256 = vrot.lane.b32.xlu0 %v358_v44, %s456_s21 }
  0x56   :  { %275 = vrot.lane.b32.xlu1 %v361_v45, %s457_s24 }
  0x58   :  { %269 = vrot.lane.b32.xlu0 %v360_v46, %s458_s27 }
  0x5a   :  { %288 = vrot.lane.b32.xlu1 %v363_v47, %s459_s30 }
  0x5c   :  { %282 = vrot.lane.b32.xlu0 %v362_v48, %s460_s4 }
  0x5e   :  { %301 = vrot.lane.b32.xlu1 %v365_v49, %s461_s0 }
  0x60   :  { %295 = vrot.lane.b32.xlu0 %v364_v50, %s462_s7 }
  0x74   :  { %v27_v51 = vpop.permute.xlu1 %26  }
  0x76   :  { %v12_v52 = vpop.permute.xlu0 %11  }
  0x77   :  { %15 = vst.msk [vmem:[#allocation0 + $0x8] sm:$0x1] %vm13_vm2, %v12_v52   ;;  %vm106_vm2 = vcmask 687752  }
  0x78   :  { %17 = vst.msk [vmem:[#allocation0] sm:$0x1] %vm16_vm3, %v12_v52   ;;  %v33_v53 = vpop.permute.xlu1 %32   ;;  %vm112_vm3 = vcmask 663152  }
  0x7a   :  { %v21_v54 = vpop.permute.xlu0 %20  }
  0x7b   :  { %23 = vst.msk [vmem:[#allocation0] sm:$0x1] %vm22_vm4, %v21_v54   ;;  %vm118_vm4 = vcmask 638552  }
  0x7c   :  { %29 = vst.msk [vmem:[#allocation0] sm:$0x1] %vm28_vm5, %v27_v51   ;;  %v45_v55 = vpop.permute.xlu1 %44   ;;  %vm124_vm5 = vcmask 613952  }
  0x7d   :  { %35 = vst.msk [vmem:[#allocation0] sm:$0x1] %vm34_vm6, %v33_v53   ;;  %vm130_vm6 = vcmask 589352  }
  0x7e   :  { %v39_v56 = vpop.permute.xlu0 %38  }
  0x7f   :  { %41 = vst.msk [vmem:[#allocation0] sm:$0x1] %vm40_vm7, %v39_v56   ;;  %vm136_vm7 = vcmask 564752  }
  0x80   :  { %47 = vst.msk [vmem:[#allocation0] sm:$0x1] %vm46_vm8, %v45_v55   ;;  %v57_v57 = vpop.permute.xlu1 %56   ;;  %vm142_vm8 = vcmask 540152  }
  0x82   :  { %v51_v58 = vpop.permute.xlu0 %50  }
  0x83   :  { %53 = vst.msk [vmem:[#allocation0] sm:$0x1] %vm52_vm9, %v51_v58   ;;  %vm148_vm9 = vcmask 515552  }
  0x84   :  { %59 = vst.msk [vmem:[#allocation0] sm:$0x1] %vm58_vm10, %v57_v57   ;;  %v69_v59 = vpop.permute.xlu1 %68   ;;  %vm154_vm10 = vcmask 490952  }
  0x86   :  { %v63_v60 = vpop.permute.xlu0 %62  }
  0x87   :  { %65 = vst.msk [vmem:[#allocation0] sm:$0x1] %vm64_vm11, %v63_v60   ;;  %vm160_vm11 = vcmask 466352  }
  0x88   :  { %71 = vst.msk [vmem:[#allocation0] sm:$0x1] %vm70_vm12, %v69_v59   ;;  %v81_v61 = vpop.permute.xlu1 %80   ;;  %vm166_vm12 = vcmask 441752  }
  0x8a   :  { %v75_v62 = vpop.permute.xlu0 %74  }
  0x8b   :  { %77 = vst.msk [vmem:[#allocation0] sm:$0x1] %vm76_vm13, %v75_v62   ;;  %vm172_vm13 = vcmask 417152  }
  0x8c   :  { %83 = vst.msk [vmem:[#allocation0] sm:$0x1] %vm82_vm14, %v81_v61   ;;  %v93_v63 = vpop.permute.xlu1 %92   ;;  %vm178_vm14 = vcmask 392552  }
  0x8e   :  { %v87_v0 = vpop.permute.xlu0 %86  }
  0x8f   :  { %89 = vst.msk [vmem:[#allocation0] sm:$0x1] %vm88_vm15, %v87_v0   ;;  %vm184_vm15 = vcmask 367952  }
  0x90   :  { %95 = vst.msk [vmem:[#allocation0] sm:$0x1] %vm94_vm0, %v93_v63   ;;  %v105_v1 = vpop.permute.xlu1 %104   ;;  %vm190_vm0 = vcmask 343352  }
  0x92   :  { %v99_v2 = vpop.permute.xlu0 %98  }
  0x93   :  { %101 = vst.msk [vmem:[#allocation0] sm:$0x1] %vm100_vm1, %v99_v2   ;;  %vm196_vm1 = vcmask 318752  }
  0x94   :  { %107 = vst.msk [vmem:[#allocation0] sm:$0x1] %vm106_vm2, %v105_v1   ;;  %v117_v3 = vpop.permute.xlu1 %116   ;;  %vm202_vm2 = vcmask 294152  }
  0x96   :  { %v111_v4 = vpop.permute.xlu0 %110  }
  0x97   :  { %113 = vst.msk [vmem:[#allocation0] sm:$0x1] %vm112_vm3, %v111_v4   ;;  %vm208_vm3 = vcmask 269552  }
  0x98   :  { %119 = vst.msk [vmem:[#allocation0] sm:$0x1] %vm118_vm4, %v117_v3   ;;  %v129_v5 = vpop.permute.xlu1 %128   ;;  %vm214_vm4 = vcmask 244952  }
  0x9a   :  { %v123_v6 = vpop.permute.xlu0 %122  }
  0x9b   :  { %125 = vst.msk [vmem:[#allocation0] sm:$0x1] %vm124_vm5, %v123_v6   ;;  %vm220_vm5 = vcmask 220352  }
  0x9c   :  { %131 = vst.msk [vmem:[#allocation0] sm:$0x1] %vm130_vm6, %v129_v5   ;;  %v141_v7 = vpop.permute.xlu1 %140   ;;  %vm226_vm6 = vcmask 195752  }
  0x9e   :  { %v135_v8 = vpop.permute.xlu0 %134  }
  0x9f   :  { %137 = vst.msk [vmem:[#allocation0] sm:$0x1] %vm136_vm7, %v135_v8   ;;  %vm238_vm7 = vcmask 154752  }
  0xa0   :  { %143 = vst.msk [vmem:[#allocation0] sm:$0x1] %vm142_vm8, %v141_v7   ;;  %v153_v9 = vpop.permute.xlu1 %152   ;;  %vm232_vm8 = vcmask 171152  }
  0xa2   :  { %v147_v10 = vpop.permute.xlu0 %146  }
  0xa3   :  { %149 = vst.msk [vmem:[#allocation0] sm:$0x1] %vm148_vm9, %v147_v10   ;;  %vm251_vm9 = vcmask 130152  }
  0xa4   :  { %155 = vst.msk [vmem:[#allocation0] sm:$0x1] %vm154_vm10, %v153_v9   ;;  %v165_v11 = vpop.permute.xlu1 %164   ;;  %vm245_vm10 = vcmask 146552  }
  0xa6   :  { %v159_v12 = vpop.permute.xlu0 %158  }
  0xa7   :  { %161 = vst.msk [vmem:[#allocation0] sm:$0x1] %vm160_vm11, %v159_v12   ;;  %vm264_vm11 = vcmask 105552  }
  0xa8   :  { %167 = vst.msk [vmem:[#allocation0] sm:$0x1] %vm166_vm12, %v165_v11   ;;  %v177_v13 = vpop.permute.xlu1 %176   ;;  %vm258_vm12 = vcmask 121952  }
  0xaa   :  { %v171_v14 = vpop.permute.xlu0 %170  }
  0xab   :  { %173 = vst.msk [vmem:[#allocation0] sm:$0x1] %vm172_vm13, %v171_v14   ;;  %vm277_vm13 = vcmask 80952  }
  0xac   :  { %179 = vst.msk [vmem:[#allocation0] sm:$0x1] %vm178_vm14, %v177_v13   ;;  %v189_v15 = vpop.permute.xlu1 %188   ;;  %vm271_vm14 = vcmask 97352  }
  0xae   :  { %v183_v16 = vpop.permute.xlu0 %182  }
  0xaf   :  { %185 = vst.msk [vmem:[#allocation0] sm:$0x1] %vm184_vm15, %v183_v16   ;;  %vm290_vm15 = vcmask 56352  }
  0xb0   :  { %191 = vst.msk [vmem:[#allocation0] sm:$0x1] %vm190_vm0, %v189_v15   ;;  %v201_v17 = vpop.permute.xlu1 %200   ;;  %vm284_vm0 = vcmask 72752  }
  0xb2   :  { %v195_v18 = vpop.permute.xlu0 %194  }
  0xb3   :  { %197 = vst.msk [vmem:[#allocation0] sm:$0x1] %vm196_vm1, %v195_v18   ;;  %vm303_vm1 = vcmask 31752  }
  0xb4   :  { %203 = vst.msk [vmem:[#allocation0] sm:$0x1] %vm202_vm2, %v201_v17   ;;  %v213_v19 = vpop.permute.xlu1 %212   ;;  %vm297_vm2 = vcmask 48152  }
  0xb6   :  { %v207_v20 = vpop.permute.xlu0 %206  }
  0xb7   :  { %209 = vst.msk [vmem:[#allocation0] sm:$0x1] %vm208_vm3, %v207_v20  }
  0xb8   :  { %215 = vst.msk [vmem:[#allocation0] sm:$0x1] %vm214_vm4, %v213_v19   ;;  %v225_v21 = vpop.permute.xlu1 %224  }
  0xba   :  { %v219_v22 = vpop.permute.xlu0 %218  }
  0xbb   :  { %221 = vst.msk [vmem:[#allocation0] sm:$0x1] %vm220_vm5, %v219_v22  }
  0xbc   :  { %227 = vst.msk [vmem:[#allocation0] sm:$0x1] %vm226_vm6, %v225_v21   ;;  %v237_v23 = vpop.permute.xlu1 %236  }
  0xbd   :  { %240 = vst.msk [vmem:[#allocation0 + $0x8] sm:$0x1] %vm238_vm7, %v237_v23  }
  0xbe   :  { %v231_v24 = vpop.permute.xlu0 %230  }
  0xbf   :  { %233 = vst.msk [vmem:[#allocation0] sm:$0x1] %vm232_vm8, %v231_v24  }
  0xc0   :  { %v250_v25 = vpop.permute.xlu1 %249  }
  0xc1   :  { %253 = vst.msk [vmem:[#allocation0 + $0x8] sm:$0x1] %vm251_vm9, %v250_v25  }
  0xc2   :  { %v244_v26 = vpop.permute.xlu0 %243  }
  0xc3   :  { %246 = vst.msk [vmem:[#allocation0] sm:$0x1] %vm245_vm10, %v244_v26  }
  0xc4   :  { %v263_v27 = vpop.permute.xlu1 %262  }
  0xc5   :  { %266 = vst.msk [vmem:[#allocation0 + $0x8] sm:$0x1] %vm264_vm11, %v263_v27  }
  0xc6   :  { %v257_v28 = vpop.permute.xlu0 %256  }
  0xc7   :  { %259 = vst.msk [vmem:[#allocation0] sm:$0x1] %vm258_vm12, %v257_v28  }
  0xc8   :  { %v276_v29 = vpop.permute.xlu1 %275  }
  0xc9   :  { %279 = vst.msk [vmem:[#allocation0 + $0x8] sm:$0x1] %vm277_vm13, %v276_v29  }
  0xca   :  { %v270_v30 = vpop.permute.xlu0 %269  }
  0xcb   :  { %272 = vst.msk [vmem:[#allocation0] sm:$0x1] %vm271_vm14, %v270_v30  }
  0xcc   :  { %v289_v31 = vpop.permute.xlu1 %288  }
  0xcd   :  { %292 = vst.msk [vmem:[#allocation0 + $0x8] sm:$0x1] %vm290_vm15, %v289_v31  }
  0xce   :  { %v283_v32 = vpop.permute.xlu0 %282  }
  0xcf   :  { %285 = vst.msk [vmem:[#allocation0] sm:$0x1] %vm284_vm0, %v283_v32  }
  0xd0   :  { %v302_v33 = vpop.permute.xlu1 %301  }
  0xd1   :  { %305 = vst.msk [vmem:[#allocation0 + $0x8] sm:$0x1] %vm303_vm1, %v302_v33  }
  0xd2   :  { %v296_v34 = vpop.permute.xlu0 %295  }
  0xd3   :  { %298 = vst.msk [vmem:[#allocation0] sm:$0x1] %vm297_vm2, %v296_v34  }
  0xd8   :  { %v313_v35 = vld [vmem:[#allocation0 + $0x8] sm:$0x1] }
  0xd9   :  { %366 = vst [vmem:[%s630_s1 + $0x1] sm:$0x1] %v313_v35 }
  0xda   :  { %v309_v36 = vld [vmem:[#allocation0] sm:$0x1] }
  0xdb   :  { %311 = vst [vmem:[%s630_s1] sm:$0x1] %v309_v36 }

// kernel: tile.38
= control target key start
LH: loop header
LB: loop body
LE: loop exit
PB: predicated region body
PF: predicated region fallthrough
CT: control target
= control target key end

     0   :  { %s26_s0 = inlined_call_operand.<no memory space> [shape: f32[], index: 0, kind: input, shape index: {}]   ;;  %s27_s1 = inlined_call_operand.vmem [shape: f32[1,147], index: 1, kind: output, shape index: {}]  }
   0x1   :  { %v2_v0 = vstv %s26_s0 }
   0x2   :  { %3 = vst [vmem:[%s27_s1] sm:$0x1] %v2_v0  ;;  %6 = vst [vmem:[%s27_s1 + $0x1] sm:$0x1] %v2_v0 }

// kernel: dcgan28_generator.27
= control target key start
LH: loop header
LB: loop body
LE: loop exit
PB: predicated region body
PF: predicated region fallthrough
CT: control target
= control target key end

     0   :  { %v24_v0 = vlaneseq  ;;  %vm71_vm0 = vcmask 154624   ;;  %s177_s1 = inlined_call_operand.vmem [shape: f32[1,147], index: 1, kind: input, shape index: {}]   ;;  %s178_s2 = inlined_call_operand.vmem [shape: f32[1,147], index: 2, kind: input, shape index: {}]   ;;  %s179_s0 = inlined_call_operand.vmem [shape: f32[32,147], index: 0, kind: input, shape index: {}]   ;;  %s180_s3 = inlined_call_operand.vmem [shape: f32[32,147], index: 3, kind: output, shape index: {}]  }
   0x1   :  { %v22_v2 = vld [vmem:[%s177_s1] sm:$0x3]  ;;  %v15_v7 = vld [vmem:[%s179_s0 + $0x8] sm:$0xff]  ;;  %v16_v8 = vld [vmem:[%s179_s0 + $0x10] sm:$0xff] }
   0x2   :  { %v25_v1 = vshrl.u32 %v24_v0, 7  ;;  %v42_v3 = vld [vmem:[%s178_s2] sm:$0x3]  ;;  %v17_v9 = vld [vmem:[%s179_s0 + $0x18] sm:$0xff]  ;;  %v19_v15 = vld [vmem:[%s179_s0 + $0x28] sm:$0xff] }
   0x3   :  { %v14_v4 = vld [vmem:[%s179_s0] sm:$0xff]  ;;  %v20_v16 = vld [vmem:[%s179_s0 + $0x30] sm:$0xff]  ;;  %v21_v21 = vld [vmem:[%s179_s0 + $0x38] sm:$0xff] }
   0x4   :  { %v26_v5 = vsub.s32 0, %v25_v1  ;;  %v30_v6 = vsub.s32 1, %v25_v1  ;;  %v18_v14 = vld [vmem:[%s179_s0 + $0x20] sm:$0xff] }
   0x6   :  { %v27_v10 = vrot.slane %v22_v2, %v26_v5  ;;  %v31_v11 = vrot.slane %v22_v2, %v30_v6  ;;  %v47_v12 = vrot.slane %v42_v3, %v26_v5  ;;  %v51_v13 = vrot.slane %v42_v3, %v30_v6 }
   0x8   :  { %v34_v17 = vmul.f32 %v27_v10, %v14_v4  ;;  %v35_v18 = vmul.f32 %v31_v11, %v15_v7  ;;  %v36_v19 = vmul.f32 %v27_v10, %v16_v8  ;;  %v37_v20 = vmul.f32 %v31_v11, %v17_v9 }
   0x9   :  { %v38_v22 = vmul.f32 %v27_v10, %v18_v14  ;;  %v39_v23 = vmul.f32 %v31_v11, %v19_v15  ;;  %v40_v27 = vmul.f32 %v27_v10, %v20_v16  ;;  %v41_v29 = vmul.f32 %v31_v11, %v21_v21 }
   0xa   :  { %v54_v24 = vadd.f32 %v47_v12, %v34_v17  ;;  %v55_v25 = vadd.f32 %v51_v13, %v35_v18  ;;  %v56_v26 = vadd.f32 %v47_v12, %v36_v19  ;;  %v57_v28 = vadd.f32 %v51_v13, %v37_v20 }
   0xb   :  { %v58_v30 = vadd.f32 %v47_v12, %v38_v22  ;;  %v59_v31 = vadd.f32 %v51_v13, %v39_v23  ;;  %v60_v32 = vadd.f32 %v47_v12, %v40_v27  ;;  %v61_v33 = vadd.f32 %v51_v13, %v41_v29 }
   0xc   :  { %83 = vtanh.f32 %v54_v24 }
   0xd   :  { %85 = vtanh.f32 %v55_v25 }
   0xe   :  { %87 = vtanh.f32 %v56_v26 }
   0xf   :  { %89 = vtanh.f32 %v57_v28 }
  0x10   :  { %91 = vtanh.f32 %v58_v30 }
  0x11   :  { %93 = vtanh.f32 %v59_v31 }
  0x12   :  { %95 = vtanh.f32 %v60_v32 }
  0x13   :  { %97 = vtanh.f32 %v61_v33 }
  0x16   :  { %v84_v34 = vpop.eup %83 }
  0x17   :  { %v86_v35 = vpop.eup %85  ;;  %70 = vst [vmem:[%s180_s3] sm:$0xff] %v84_v34 }
  0x18   :  { %v88_v36 = vpop.eup %87  ;;  %72 = vst.msk [vmem:[%s180_s3 + $0x8] sm:$0xff] %vm71_vm0, %v86_v35 }
  0x19   :  { %v90_v37 = vpop.eup %89  ;;  %73 = vst [vmem:[%s180_s3 + $0x10] sm:$0xff] %v88_v36 }
  0x1a   :  { %v92_v38 = vpop.eup %91  ;;  %74 = vst.msk [vmem:[%s180_s3 + $0x18] sm:$0xff] %vm71_vm0, %v90_v37 }
  0x1b   :  { %v94_v39 = vpop.eup %93  ;;  %75 = vst [vmem:[%s180_s3 + $0x20] sm:$0xff] %v92_v38 }
  0x1c   :  { %v96_v40 = vpop.eup %95  ;;  %76 = vst.msk [vmem:[%s180_s3 + $0x28] sm:$0xff] %vm71_vm0, %v94_v39 }
  0x1d   :  { %v98_v41 = vpop.eup %97  ;;  %77 = vst [vmem:[%s180_s3 + $0x30] sm:$0xff] %v96_v40 }
  0x1e   :  { %78 = vst.msk [vmem:[%s180_s3 + $0x38] sm:$0xff] %vm71_vm0, %v98_v41 }

</bundles_post_ra>
